<compile_context>
chip_gen: v7x
topology: tpu7x:2x2x1
jax: 0.10.0
libtpu: 0.0.40
codegen_flags: <defaults>
</compile_context>

<pallas_src>
import functools

import jax
import jax.numpy as jnp
from jax.experimental import pallas as pl
from jax.experimental.pallas import tpu as pltpu


def cross_attention_kernel(x1_ref, x2_ref, wrp_ref, brp_ref, gamma_ref,
                           beta_ref, o_ref, *, head_count, eps):
    # x1_ref : (1, N, C)   values source
    # x2_ref : (1, N, C)   keys / queries source
    # wrp_ref: (C, 2C)     1x1-conv weight, pre-transposed
    # brp_ref: (1, 2C)     1x1-conv bias
    # gamma_ref/beta_ref: (1, 2C) LayerNorm affine params
    # o_ref  : (1, N, 2C)
    x1 = x1_ref[0].astype(jnp.float32)          # (N, C)
    x2 = x2_ref[0].astype(jnp.float32)          # (N, C)
    n, c = x1.shape
    d = c // head_count

    head_outputs = []
    for h in range(head_count):
        sl = slice(h * d, (h + 1) * d)
        k = x2[:, sl]                            # (N, d)
        q = x2[:, sl]                            # (N, d)
        v = x1[:, sl]                            # (N, d)

        # key softmax over the spatial axis N (sublane-direction reduction)
        k = k - jnp.max(k, axis=0, keepdims=True)
        k = jnp.exp(k)
        k = k / jnp.sum(k, axis=0, keepdims=True)

        # query softmax over the head-channel axis (lane-direction reduction)
        q = q - jnp.max(q, axis=1, keepdims=True)
        q = jnp.exp(q)
        q = q / jnp.sum(q, axis=1, keepdims=True)

        # ctx = K_s^T @ Q_s : (d, d), contraction over N on the MXU
        ctx = jax.lax.dot_general(
            k, q, (((0,), (0,)), ((), ())),
            preferred_element_type=jnp.float32)

        # attended = V @ ctx : (N, d)
        att = jnp.dot(v, ctx, preferred_element_type=jnp.float32)
        head_outputs.append(att)

    agg = head_outputs[0] if head_count == 1 else jnp.concatenate(
        head_outputs, axis=1)                    # (N, C)

    # 1x1-conv reprojection: (N, C) @ (C, 2C) + bias
    y = jnp.dot(agg, wrp_ref[...].astype(jnp.float32),
                preferred_element_type=jnp.float32)
    y = y + brp_ref[0].astype(jnp.float32)       # (N, 2C)

    # LayerNorm over the last (2C) dim, eps matching nn.LayerNorm default
    mean = jnp.mean(y, axis=-1, keepdims=True)
    yc = y - mean
    var = jnp.mean(yc * yc, axis=-1, keepdims=True)
    inv = jax.lax.rsqrt(var + eps)
    y = yc * inv * gamma_ref[0].astype(jnp.float32) + beta_ref[0].astype(jnp.float32)

    o_ref[0] = y.astype(o_ref.dtype)


def cross_attention(x1, x2, w_rp, b_rp, gamma, beta, *, head_count=1, eps=1e-5):
    """Fused Cross_Attention forward.

    x1, x2 : (B, H, W, C)   channels-last inputs (as in the PyTorch module)
    w_rp   : (2C, C)        nn.Conv2d(C, 2C, 1) weight (squeezed 1x1 taps)
    b_rp   : (2C,)          conv bias
    gamma, beta : (2C,)     LayerNorm affine parameters
    returns: (B, H, W, 2C)
    """
    B, H, W, C = x1.shape
    N = H * W
    C2 = 2 * C

    # Free reshape views (no HBM copy) + one tiny one-time weight transpose.
    x1f = x1.reshape(B, N, C)
    x2f = x2.reshape(B, N, C)
    wrp_t = jnp.transpose(w_rp)          # (C, 2C)
    brp2 = b_rp.reshape(1, C2)
    g2 = gamma.reshape(1, C2)
    be2 = beta.reshape(1, C2)

    kernel = functools.partial(cross_attention_kernel,
                               head_count=head_count, eps=eps)

    out = pl.pallas_call(
        kernel,
        out_shape=jax.ShapeDtypeStruct((B, N, C2), x1.dtype),
        grid_spec=pltpu.PrefetchScalarGridSpec(
            num_scalar_prefetch=0,
            grid=(B,),
            in_specs=[
                pl.BlockSpec((1, N, C), lambda b: (b, 0, 0)),
                pl.BlockSpec((1, N, C), lambda b: (b, 0, 0)),
                pl.BlockSpec((C, C2), lambda b: (0, 0)),
                pl.BlockSpec((1, C2), lambda b: (0, 0)),
                pl.BlockSpec((1, C2), lambda b: (0, 0)),
                pl.BlockSpec((1, C2), lambda b: (0, 0)),
            ],
            out_specs=pl.BlockSpec((1, N, C2), lambda b: (b, 0, 0)),
        ),
        compiler_params=pltpu.CompilerParams(
            dimension_semantics=("parallel",),
        ),
    )(x1f, x2f, wrp_t, brp2, g2, be2)

    return out.reshape(B, H, W, C2)


def cross_attention_reference(x1, x2, w_rp, b_rp, gamma, beta, *,
                              head_count=1, eps=1e-5):
    """Pure-JAX reference that mirrors the PyTorch forward op-for-op
    (including the (N,N) context) for numerical validation."""
    B, H, W, C = x1.shape
    N = H * W
    x1f = x1.reshape(B, N, C).astype(jnp.float32)
    x2f = x2.reshape(B, N, C).astype(jnp.float32)
    keys = jnp.swapaxes(x2f, 1, 2)       # (B, C, N)
    queries = keys
    values = jnp.swapaxes(x1f, 1, 2)     # (B, C, N)
    dk = C // head_count
    dv = C // head_count
    attended = []
    for i in range(head_count):
        key = jax.nn.softmax(keys[:, i * dk:(i + 1) * dk, :], axis=2)
        query = jax.nn.softmax(queries[:, i * dk:(i + 1) * dk, :], axis=1)
        value = values[:, i * dv:(i + 1) * dv, :]
        context = jnp.matmul(jnp.swapaxes(value, 1, 2), key)       # (B, N, N)
        att = jnp.matmul(query, jnp.swapaxes(context, 1, 2))       # (B, dk, N)
        attended.append(att)
    agg = jnp.concatenate(attended, axis=1).reshape(B, C, H, W)
    y = jnp.einsum('oc,bchw->bhwo', w_rp.astype(jnp.float32), agg)
    y = y + b_rp.astype(jnp.float32)
    mean = jnp.mean(y, axis=-1, keepdims=True)
    var = jnp.mean((y - mean) ** 2, axis=-1, keepdims=True)
    y = (y - mean) / jnp.sqrt(var + eps)
    y = y * gamma.astype(jnp.float32) + beta.astype(jnp.float32)
    return y.astype(x1.dtype)


if __name__ == "__main__":
    # Keep the comparison honest: force f32 matmuls in the XLA reference.
    jax.config.update("jax_default_matmul_precision", "highest")

    B, H, W, C = 2, 16, 16, 4        # key_channels = value_channels = C
    head_count = 1
    C2 = 2 * C

    key = jax.random.PRNGKey(0)
    k1, k2, kw, kb, kg, kbe = jax.random.split(key, 6)

    x1 = jax.random.normal(k1, (B, H, W, C), dtype=jnp.float32)
    x2 = jax.random.normal(k2, (B, H, W, C), dtype=jnp.float32)
    # nn.Conv2d(C, 2C, 1) weight (2C, C, 1, 1) stored squeezed as (2C, C)
    w_rp = jax.random.normal(kw, (C2, C), dtype=jnp.float32) * 0.1
    b_rp = jax.random.normal(kb, (C2,), dtype=jnp.float32) * 0.1
    gamma = 1.0 + 0.1 * jax.random.normal(kg, (C2,), dtype=jnp.float32)
    beta = 0.1 * jax.random.normal(kbe, (C2,), dtype=jnp.float32)

    out = cross_attention(x1, x2, w_rp, b_rp, gamma, beta,
                          head_count=head_count)
    out = jax.block_until_ready(out)

    ref = cross_attention_reference(x1, x2, w_rp, b_rp, gamma, beta,
                                    head_count=head_count)
    assert out.shape == (B, H, W, C2), out.shape
    assert jnp.allclose(out, ref, atol=1e-3, rtol=1e-3), (
        "mismatch vs reference: max abs err = "
        f"{float(jnp.max(jnp.abs(out - ref)))}")

    print("KERNEL_OK")
</pallas_src>

<mosaic_0001>
module attributes {stable_mosaic.version = 11 : i64} {
  func.func @cross_attention_kernel(%arg0: i32, %arg1: memref<1x256x4xf32, #tpu.memory_space<vmem>>, %arg2: memref<1x256x4xf32, #tpu.memory_space<vmem>>, %arg3: memref<4x8xf32, #tpu.memory_space<vmem>>, %arg4: memref<1x8xf32, #tpu.memory_space<vmem>>, %arg5: memref<1x8xf32, #tpu.memory_space<vmem>>, %arg6: memref<1x8xf32, #tpu.memory_space<vmem>>, %arg7: memref<1x256x8xf32, #tpu.memory_space<vmem>>) attributes {dimension_semantics = [#tpu.dimension_semantics<parallel>], iteration_bounds = array<i64: 2>, scalar_prefetch = 0 : i64, scratch_operands = 0 : i64, tpu.core_type = #tpu.core_type<tc>, window_params = [{transform_indices = @transform_0, window_bounds = array<i64: 1, 256, 4>}, {transform_indices = @transform_1, window_bounds = array<i64: 1, 256, 4>}, {pipeline_mode = #tpu.pipeline_mode<synchronous>, transform_indices = @transform_2, window_bounds = array<i64: 4, 8>}, {pipeline_mode = #tpu.pipeline_mode<synchronous>, transform_indices = @transform_3, window_bounds = array<i64: 1, 8>}, {pipeline_mode = #tpu.pipeline_mode<synchronous>, transform_indices = @transform_4, window_bounds = array<i64: 1, 8>}, {pipeline_mode = #tpu.pipeline_mode<synchronous>, transform_indices = @transform_5, window_bounds = array<i64: 1, 8>}, {transform_indices = @transform_6, window_bounds = array<i64: 1, 256, 8>}]} {
    %c0 = arith.constant 0 : index
    %c0_0 = arith.constant 0 : index
    %c0_1 = arith.constant 0 : index
    %0 = vector.load %arg1[%c0, %c0_0, %c0_1] : memref<1x256x4xf32, #tpu.memory_space<vmem>>, vector<1x256x4xf32>
    %1 = vector.shape_cast %0 : vector<1x256x4xf32> to vector<256x4xf32>
    %c0_2 = arith.constant 0 : index
    %c0_3 = arith.constant 0 : index
    %c0_4 = arith.constant 0 : index
    %2 = vector.load %arg2[%c0_2, %c0_3, %c0_4] : memref<1x256x4xf32, #tpu.memory_space<vmem>>, vector<1x256x4xf32>
    %3 = vector.shape_cast %2 : vector<1x256x4xf32> to vector<256x4xf32>
    %cst = arith.constant dense<0xFF800000> : vector<4xf32>
    %4 = vector.multi_reduction <maximumf>, %3, %cst [0] : vector<256x4xf32> to vector<4xf32>
    %5 = vector.shape_cast %4 : vector<4xf32> to vector<1x4xf32>
    %6 = vector.broadcast %5 : vector<1x4xf32> to vector<256x4xf32>
    %7 = arith.subf %3, %6 : vector<256x4xf32>
    %8 = math.exp %7 : vector<256x4xf32>
    %cst_5 = arith.constant dense<0.000000e+00> : vector<4xf32>
    %9 = vector.multi_reduction <add>, %8, %cst_5 [0] : vector<256x4xf32> to vector<4xf32>
    %10 = vector.shape_cast %9 : vector<4xf32> to vector<1x4xf32>
    %11 = vector.broadcast %10 : vector<1x4xf32> to vector<256x4xf32>
    %12 = arith.divf %8, %11 : vector<256x4xf32>
    %cst_6 = arith.constant dense<0xFF800000> : vector<256xf32>
    %13 = vector.multi_reduction <maximumf>, %3, %cst_6 [1] : vector<256x4xf32> to vector<256xf32>
    %14 = vector.shape_cast %13 : vector<256xf32> to vector<256x1xf32>
    %15 = vector.broadcast %14 : vector<256x1xf32> to vector<256x4xf32>
    %16 = arith.subf %3, %15 : vector<256x4xf32>
    %17 = math.exp %16 : vector<256x4xf32>
    %cst_7 = arith.constant dense<0.000000e+00> : vector<256xf32>
    %18 = vector.multi_reduction <add>, %17, %cst_7 [1] : vector<256x4xf32> to vector<256xf32>
    %19 = vector.shape_cast %18 : vector<256xf32> to vector<256x1xf32>
    %20 = vector.broadcast %19 : vector<256x1xf32> to vector<256x4xf32>
    %21 = arith.divf %17, %20 : vector<256x4xf32>
    %cst_8 = arith.constant dense<0.000000e+00> : vector<4x4xf32>
    %22 = tpu.matmul %12, %21, %cst_8 {dimension_numbers = #tpu.dot_dimension_numbers<[0], [0], [1], [1], [0, 1, 1, 1], [], []>, precision = #tpu.contract_precision<fp32>} : vector<256x4xf32>, vector<256x4xf32>, vector<4x4xf32> -> vector<4x4xf32>
    %cst_9 = arith.constant dense<0.000000e+00> : vector<256x4xf32>
    %23 = tpu.matmul %1, %22, %cst_9 {dimension_numbers = #tpu.dot_dimension_numbers<[1], [0], [0], [1], [0, 0, 1, 1], [], []>, precision = #tpu.contract_precision<fp32>} : vector<256x4xf32>, vector<4x4xf32>, vector<256x4xf32> -> vector<256x4xf32>
    %c0_10 = arith.constant 0 : index
    %c0_11 = arith.constant 0 : index
    %24 = vector.load %arg3[%c0_10, %c0_11] : memref<4x8xf32, #tpu.memory_space<vmem>>, vector<4x8xf32>
    %cst_12 = arith.constant dense<0.000000e+00> : vector<256x8xf32>
    %25 = tpu.matmul %23, %24, %cst_12 {dimension_numbers = #tpu.dot_dimension_numbers<[1], [0], [0], [1], [0, 0, 1, 1], [], []>, precision = #tpu.contract_precision<fp32>} : vector<256x4xf32>, vector<4x8xf32>, vector<256x8xf32> -> vector<256x8xf32>
    %c0_13 = arith.constant 0 : index
    %c0_14 = arith.constant 0 : index
    %26 = vector.load %arg4[%c0_13, %c0_14] : memref<1x8xf32, #tpu.memory_space<vmem>>, vector<1x8xf32>
    %27 = vector.shape_cast %26 : vector<1x8xf32> to vector<8xf32>
    %28 = vector.shape_cast %27 : vector<8xf32> to vector<1x8xf32>
    %29 = vector.broadcast %28 : vector<1x8xf32> to vector<256x8xf32>
    %30 = arith.addf %25, %29 : vector<256x8xf32>
    %cst_15 = arith.constant dense<0.000000e+00> : vector<256xf32>
    %31 = vector.multi_reduction <add>, %30, %cst_15 [1] : vector<256x8xf32> to vector<256xf32>
    %32 = vector.shape_cast %31 : vector<256xf32> to vector<256x1xf32>
    %cst_16 = arith.constant 8.000000e+00 : f32
    %33 = vector.broadcast %cst_16 : f32 to vector<256x1xf32>
    %34 = arith.divf %32, %33 : vector<256x1xf32>
    %35 = vector.broadcast %34 : vector<256x1xf32> to vector<256x8xf32>
    %36 = arith.subf %30, %35 : vector<256x8xf32>
    %37 = arith.mulf %36, %36 : vector<256x8xf32>
    %cst_17 = arith.constant dense<0.000000e+00> : vector<256xf32>
    %38 = vector.multi_reduction <add>, %37, %cst_17 [1] : vector<256x8xf32> to vector<256xf32>
    %39 = vector.shape_cast %38 : vector<256xf32> to vector<256x1xf32>
    %cst_18 = arith.constant 8.000000e+00 : f32
    %40 = vector.broadcast %cst_18 : f32 to vector<256x1xf32>
    %41 = arith.divf %39, %40 : vector<256x1xf32>
    %cst_19 = arith.constant 9.99999974E-6 : f32
    %42 = vector.broadcast %cst_19 : f32 to vector<256x1xf32>
    %43 = arith.addf %41, %42 : vector<256x1xf32>
    %44 = math.rsqrt %43 : vector<256x1xf32>
    %45 = vector.broadcast %44 : vector<256x1xf32> to vector<256x8xf32>
    %46 = arith.mulf %36, %45 : vector<256x8xf32>
    %c0_20 = arith.constant 0 : index
    %c0_21 = arith.constant 0 : index
    %47 = vector.load %arg5[%c0_20, %c0_21] : memref<1x8xf32, #tpu.memory_space<vmem>>, vector<1x8xf32>
    %48 = vector.shape_cast %47 : vector<1x8xf32> to vector<8xf32>
    %49 = vector.shape_cast %48 : vector<8xf32> to vector<1x8xf32>
    %50 = vector.broadcast %49 : vector<1x8xf32> to vector<256x8xf32>
    %51 = arith.mulf %46, %50 : vector<256x8xf32>
    %c0_22 = arith.constant 0 : index
    %c0_23 = arith.constant 0 : index
    %52 = vector.load %arg6[%c0_22, %c0_23] : memref<1x8xf32, #tpu.memory_space<vmem>>, vector<1x8xf32>
    %53 = vector.shape_cast %52 : vector<1x8xf32> to vector<8xf32>
    %54 = vector.shape_cast %53 : vector<8xf32> to vector<1x8xf32>
    %55 = vector.broadcast %54 : vector<1x8xf32> to vector<256x8xf32>
    %56 = arith.addf %51, %55 : vector<256x8xf32>
    %c0_24 = arith.constant 0 : index
    %c0_25 = arith.constant 0 : index
    %c0_26 = arith.constant 0 : index
    %57 = vector.load %arg7[%c0_24, %c0_25, %c0_26] : memref<1x256x8xf32, #tpu.memory_space<vmem>>, vector<1x256x8xf32>
    %58 = vector.shape_cast %57 : vector<1x256x8xf32> to vector<256x8xf32>
    %59 = vector.shape_cast %56 : vector<256x8xf32> to vector<1x256x8xf32>
    tpu.vector_store %arg7[%c0_24, %c0_25, %c0_26], %59 {strides = array<i32>} : memref<1x256x8xf32, #tpu.memory_space<vmem>>, vector<1x256x8xf32>,
    return
  }
  func.func @transform_0(%arg0: i32) -> (i32, i32, i32) {
    %c0_i32 = arith.constant 0 : i32
    %c0_i32_0 = arith.constant 0 : i32
    %c0_i32_1 = arith.constant 0 : i32
    return %arg0, %c0_i32, %c0_i32_0 : i32, i32, i32
  }
  func.func @transform_1(%arg0: i32) -> (i32, i32, i32) {
    %c0_i32 = arith.constant 0 : i32
    %c0_i32_0 = arith.constant 0 : i32
    %c0_i32_1 = arith.constant 0 : i32
    return %arg0, %c0_i32, %c0_i32_0 : i32, i32, i32
  }
  func.func @transform_2(%arg0: i32) -> (i32, i32) {
    %c0_i32 = arith.constant 0 : i32
    %c0_i32_0 = arith.constant 0 : i32
    %c0_i32_1 = arith.constant 0 : i32
    return %c0_i32, %c0_i32_0 : i32, i32
  }
  func.func @transform_3(%arg0: i32) -> (i32, i32) {
    %c0_i32 = arith.constant 0 : i32
    %c0_i32_0 = arith.constant 0 : i32
    %c0_i32_1 = arith.constant 0 : i32
    return %c0_i32, %c0_i32_0 : i32, i32
  }
  func.func @transform_4(%arg0: i32) -> (i32, i32) {
    %c0_i32 = arith.constant 0 : i32
    %c0_i32_0 = arith.constant 0 : i32
    %c0_i32_1 = arith.constant 0 : i32
    return %c0_i32, %c0_i32_0 : i32, i32
  }
  func.func @transform_5(%arg0: i32) -> (i32, i32) {
    %c0_i32 = arith.constant 0 : i32
    %c0_i32_0 = arith.constant 0 : i32
    %c0_i32_1 = arith.constant 0 : i32
    return %c0_i32, %c0_i32_0 : i32, i32
  }
  func.func @transform_6(%arg0: i32) -> (i32, i32, i32) {
    %c0_i32 = arith.constant 0 : i32
    %c0_i32_0 = arith.constant 0 : i32
    %c0_i32_1 = arith.constant 0 : i32
    return %arg0, %c0_i32, %c0_i32_0 : i32, i32, i32
  }
}

</mosaic_0001>

<bundles_post_ra>
// kernel: tpu_custom_call.1
= control target key start
LH: loop header
LB: loop body
LE: loop exit
PB: predicated region body
PF: predicated region fallthrough
CT: control target
= control target key end

     0   :  { %s8288_s21 = smov 0   ;;  %s11065_s0 = inlined_call_operand.vmem [shape: f32[2,256,4], index: 0, kind: input, shape index: {}]   ;;  %s11066_s1 = inlined_call_operand.vmem [shape: f32[2,256,4], index: 1, kind: input, shape index: {}]   ;;  %s11067_s2 = inlined_call_operand.vmem [shape: f32[4,8], index: 2, kind: input, shape index: {}]   ;;  %s11068_s3 = inlined_call_operand.vmem [shape: f32[1,8], index: 3, kind: input, shape index: {}]   ;;  %s11069_s4 = inlined_call_operand.vmem [shape: f32[1,8], index: 4, kind: input, shape index: {}]   ;;  %s11070_s5 = inlined_call_operand.vmem [shape: f32[1,8], index: 5, kind: input, shape index: {}]   ;;  %s11071_s6 = inlined_call_operand.vmem [shape: f32[2,256,8], index: 6, kind: output, shape index: {}]  }
   0x1 LB: > { %s6210_s22 = sadd.s32 4294967295, %s8251_s21   ;;  %p6214_p0 = scmp.ge.s32.totalorder %s8251_s21, 1  ;;  %s8251_s21 = sphi %s8288_s21, %s16_s21  }
   0x2   : > { %p222_p1 = scmp.lt.s32.totalorder %s8251_s21, 3 }
   0x4   : > { %p223_p2 = pnand %p6214_p0, %p222_p1 }
   0x6   : > { %226 = sbr.rel (%p223_p2) target bundleno = 2175 (0x87f), region = 44 }
   0xd   : > { %p257_p3 = scmp.lt.s32.totalorder %s6210_s22, 1  ;;  %vm336_vm0 = vcmask 31744   ;;  %vm1946_vm1 = vcmask 1043456   ;;  %vm5615_vm2 = vcmask 64512  }
   0xf   : > { %s11570_s22 = smov (!%p257_p3, %s6210_s22), 1 }
  0x10   : > { %s8296_s23 = sshll.u32 %s11570_s22, 8 }
  0x11   : > { %s8302_s26 = scalar_lea.vmem %s11066_s1, %s8296_s23  ;;  %s9422_s29 = scalar_lea.vmem %s11065_s0, %s8296_s23 }
  0x12   : > { %v8305_v0 = vld [vmem:[%s8302_s26 + $0x80] sm:$0xff]  ;;  %v8308_v1 = vld [vmem:[%s8302_s26 + $0x88] sm:$0xff]  ;;  %v8313_v3 = vld [vmem:[%s8302_s26 + $0x90] sm:$0xff]  ;;  %s10903_s16 = scalar_lea.vmem %s11071_s6, %s8296_s23 }
  0x13   : > { %v365_v2 = vsel %vm336_vm0, %v8305_v0, -inf  ;;  %v8316_v4 = vld [vmem:[%s8302_s26 + $0x98] sm:$0xff]  ;;  %v367_v5 = vsel %vm336_vm0, %v8308_v1, -inf  ;;  %v369_v6 = vsel %vm336_vm0, %v8313_v3, -inf  ;;  %v8323_v7 = vld [vmem:[%s8302_s26] sm:$0xff]  ;;  %v8326_v8 = vld [vmem:[%s8302_s26 + $0x8] sm:$0xff] }
  0x14   : > { %636 = vmax.xlane.f32.xlu0 %v365_v2  ;;  %v371_v9 = vsel %vm336_vm0, %v8316_v4, -inf  ;;  %v8331_v10 = vld [vmem:[%s8302_s26 + $0x10] sm:$0xff]  ;;  %v8334_v11 = vld [vmem:[%s8302_s26 + $0x18] sm:$0xff]  ;;  %v8337_v12 = vld [vmem:[%s8302_s26 + $0x20] sm:$0xff]  ;;  %v337_v13 = vsel %vm336_vm0, %v8323_v7, -inf  ;;  %v338_v14 = vsel %vm336_vm0, %v8326_v8, -inf }
  0x15   : > { %v8344_v15 = vld [vmem:[%s8302_s26 + $0x28] sm:$0xff]  ;;  %v8347_v16 = vld [vmem:[%s8302_s26 + $0x30] sm:$0xff]  ;;  %v8350_v17 = vld [vmem:[%s8302_s26 + $0x38] sm:$0xff]  ;;  %v339_v18 = vsel %vm336_vm0, %v8331_v10, -inf  ;;  %v8356_v19 = vsel %vm336_vm0, %v8334_v11, -inf  ;;  %v8360_v20 = vsel %vm336_vm0, %v8337_v12, -inf  ;;  %604 = vmax.xlane.f32.xlu1 %v337_v13 }
  0x16   : > { %v8363_v21 = vld [vmem:[%s8302_s26 + $0x40] sm:$0xff]  ;;  %v8366_v22 = vld [vmem:[%s8302_s26 + $0x48] sm:$0xff]  ;;  %v8369_v23 = vld [vmem:[%s8302_s26 + $0x50] sm:$0xff]  ;;  %v342_v24 = vmax.f32 %v337_v13, %v8360_v20  ;;  %v8374_v25 = vsel %vm336_vm0, %v8344_v15, -inf  ;;  %v8378_v26 = vsel %vm336_vm0, %v8347_v16, -inf  ;;  %v8382_v27 = vsel %vm336_vm0, %v8350_v17, -inf }
  0x17   : > { %v8385_v28 = vld [vmem:[%s8302_s26 + $0x58] sm:$0xff]  ;;  %v8388_v29 = vld [vmem:[%s8302_s26 + $0x60] sm:$0xff]  ;;  %v8391_v30 = vld [vmem:[%s8302_s26 + $0x68] sm:$0xff]  ;;  %v344_v31 = vmax.f32 %v338_v14, %v8374_v25  ;;  %v346_v32 = vmax.f32 %v339_v18, %v8378_v26  ;;  %v348_v33 = vmax.f32 %v8356_v19, %v8382_v27  ;;  %v8399_v34 = vsel %vm336_vm0, %v8363_v21, -inf }
  0x18   : > { %638 = vmax.xlane.f32.xlu0 %v367_v5  ;;  %v8402_v35 = vld [vmem:[%s8302_s26 + $0x70] sm:$0xff]  ;;  %v8405_v36 = vld [vmem:[%s8302_s26 + $0x78] sm:$0xff]  ;;  %v350_v37 = vmax.f32 %v342_v24, %v8399_v34  ;;  %v8410_v38 = vsel %vm336_vm0, %v8366_v22, -inf  ;;  %v8414_v39 = vsel %vm336_vm0, %v8369_v23, -inf  ;;  %v8418_v40 = vsel %vm336_vm0, %v8385_v28, -inf  ;;  %v8428_v45 = vld [vmem:[%s8302_s26 + $0xa0] sm:$0xff] }
  0x19   : > { %v352_v41 = vmax.f32 %v344_v31, %v8410_v38  ;;  %v354_v42 = vmax.f32 %v346_v32, %v8414_v39  ;;  %v356_v43 = vmax.f32 %v348_v33, %v8418_v40  ;;  %v8425_v44 = vsel %vm336_vm0, %v8388_v29, -inf  ;;  %606 = vmax.xlane.f32.xlu1 %v338_v14  ;;  %v8444_v50 = vld [vmem:[%s8302_s26 + $0xa8] sm:$0xff]  ;;  %v8447_v51 = vld [vmem:[%s8302_s26 + $0xb0] sm:$0xff]  ;;  %v8450_v52 = vld [vmem:[%s8302_s26 + $0xb8] sm:$0xff] }
  0x1a   : > { %v358_v46 = vmax.f32 %v350_v37, %v8425_v44  ;;  %v8433_v47 = vsel %vm336_vm0, %v8391_v30, -inf  ;;  %v8437_v48 = vsel %vm336_vm0, %v8402_v35, -inf  ;;  %v8441_v49 = vsel %vm336_vm0, %v8405_v36, -inf  ;;  %v8456_v56 = vld [vmem:[%s8302_s26 + $0xc0] sm:$0xff]  ;;  %v8459_v58 = vld [vmem:[%s8302_s26 + $0xc8] sm:$0xff]  ;;  %v8462_v59 = vld [vmem:[%s8302_s26 + $0xd0] sm:$0xff] }
  0x1b   : > { %v360_v53 = vmax.f32 %v352_v41, %v8433_v47  ;;  %v362_v54 = vmax.f32 %v354_v42, %v8437_v48  ;;  %v364_v55 = vmax.f32 %v356_v43, %v8441_v49  ;;  %11283 = vst [vmem:[#allocation2_spill] sm:$0xff] %v8456_v56  ;;  %v8465_v60 = vld [vmem:[%s8302_s26 + $0xd8] sm:$0xff]  ;;  %v373_v61 = vsel %vm336_vm0, %v8428_v45, -inf  ;;  %v8470_v14 = vld [vmem:[%s8302_s26 + $0xe0] sm:$0xff]  ;;  %v8479_v32 = vld [vmem:[%s8302_s26 + $0xe8] sm:$0xff] }
  0x1c   : > { %640 = vmax.xlane.f32.xlu0 %v369_v6  ;;  %v366_v57 = vmax.f32 %v358_v46, %v365_v2  ;;  %11284 = vst [vmem:[#allocation3_spill] sm:$0xff] %v8470_v14  ;;  %v375_v2 = vsel %vm336_vm0, %v8444_v50, -inf  ;;  %v379_v24 = vsel %vm336_vm0, %v8450_v52, -inf  ;;  %11285 = vst [vmem:[#allocation4_spill] sm:$0xff] %v8479_v32  ;;  %v8482_v33 = vld [vmem:[%s8302_s26 + $0xf0] sm:$0xff]  ;;  %v383_v42 = vsel %vm336_vm0, %v8459_v58, -inf }
  0x1d   : > { %v368_v62 = vmax.f32 %v360_v53, %v367_v5  ;;  %v370_v63 = vmax.f32 %v362_v54, %v369_v6  ;;  %v372_v13 = vmax.f32 %v364_v55, %v371_v9  ;;  %642 = vmax.xlane.f32.xlu1 %v371_v9  ;;  %11286 = vst [vmem:[#allocation5_spill] sm:$0xff] %v8482_v33  ;;  %v8485_v5 = vld [vmem:[%s8302_s26 + $0xf8] sm:$0xff]  ;;  %v381_v6 = vsel %vm336_vm0, %v8456_v56, -inf }
  0x1e   : > { %v374_v31 = vmax.f32 %v366_v57, %v373_v61  ;;  %11287 = vst [vmem:[#allocation6_spill] sm:$0xff] %v8485_v5  ;;  %v385_v43 = vsel %vm336_vm0, %v8462_v59, -inf  ;;  %v387_v46 = vsel %vm336_vm0, %v8465_v60, -inf  ;;  %v389_v54 = vsel %vm336_vm0, %v8470_v14, -inf }
  0x1f   : > { %v376_v9 = vmax.f32 %v368_v62, %v375_v2  ;;  %v380_v41 = vmax.f32 %v372_v13, %v379_v24  ;;  %v391_v62 = vsel %vm336_vm0, %v8479_v32, -inf  ;;  %v8506_v13 = vsel %vm336_vm0, %v8485_v5, -inf }
  0x20   : > { %608 = vmax.xlane.f32.xlu0 %v339_v18  ;;  %v377_v18 = vsel %vm336_vm0, %v8447_v51, -inf  ;;  %v382_v53 = vmax.f32 %v374_v31, %v381_v6 }
  0x21   : > { %v378_v37 = vmax.f32 %v370_v63, %v377_v18  ;;  %v384_v55 = vmax.f32 %v376_v9, %v383_v42  ;;  %v388_v56 = vmax.f32 %v380_v41, %v387_v46  ;;  %610 = vmax.xlane.f32.xlu1 %v8356_v19  ;;  %v8502_v63 = vsel %vm336_vm0, %v8482_v33, -inf }
  0x23   : > { %v386_v57 = vmax.f32 %v378_v37, %v385_v43  ;;  %v392_v31 = vmax.f32 %v384_v55, %v391_v62  ;;  %v396_v9 = vmax.f32 %v388_v56, %v8506_v13 }
  0x24   : > { %644 = vmax.xlane.f32.xlu0 %v373_v61  ;;  %v390_v61 = vmax.f32 %v382_v53, %v389_v54 }
  0x25   : > { %v394_v14 = vmax.f32 %v386_v57, %v8502_v63  ;;  %646 = vmax.xlane.f32.xlu1 %v375_v2 }
  0x26   : > { %v397_v19 = vmax.f32 %v390_v61, %v392_v31 }
  0x27   : > { %v398_v37 = vmax.f32 %v394_v14, %v396_v9 }
  0x28   : > { %612 = vmax.xlane.f32.xlu0 %v8360_v20 }
  0x29   : > { %v399_v41 = vmax.f32 %v397_v19, %v398_v37  ;;  %614 = vmax.xlane.f32.xlu1 %v8374_v25 }
  0x2b   : > { %v400_v32 = vrot.slane %v399_v41, 4 }
  0x2c   : > { %648 = vmax.xlane.f32.xlu0 %v377_v18 }
  0x2d   : > { %v401_v33 = vmax.f32 %v399_v41, %v400_v32  ;;  %650 = vmax.xlane.f32.xlu1 %v379_v24 }
  0x2f   : > { %v402_v5 = vrot.slane %v401_v33, 2 }
  0x30   : > { %616 = vmax.xlane.f32.xlu0 %v8378_v26 }
  0x31   : > { %v403_v53 = vmax.f32 %v401_v33, %v402_v5  ;;  %618 = vmax.xlane.f32.xlu1 %v8382_v27 }
  0x33   : > { %v404_v55 = vrot.slane %v403_v53, 1 }
  0x34   : > { %652 = vmax.xlane.f32.xlu0 %v381_v6 }
  0x35   : > { %v8514_v56 = vmax.f32 %v403_v53, %v404_v55  ;;  %654 = vmax.xlane.f32.xlu1 %v383_v42 }
  0x37   : > { %v406_v20 = vsub.f32 %v8323_v7, %v8514_v56  ;;  %v407_v25 = vsub.f32 %v8326_v8, %v8514_v56  ;;  %v408_v26 = vsub.f32 %v8331_v10, %v8514_v56  ;;  %v409_v27 = vsub.f32 %v8334_v11, %v8514_v56 }
  0x38   : > { %620 = vmax.xlane.f32.xlu0 %v8399_v34  ;;  %v410_v34 = vsub.f32 %v8337_v12, %v8514_v56  ;;  %v411_v32 = vsub.f32 %v8344_v15, %v8514_v56  ;;  %v412_v5 = vsub.f32 %v8347_v16, %v8514_v56  ;;  %v413_v6 = vsub.f32 %v8350_v17, %v8514_v56 }
  0x39   : > { %v438_v14 = vmul.f32 1.442695, %v406_v20  ;;  %v440_v2 = vmul.f32 1.442695, %v407_v25  ;;  %622 = vmax.xlane.f32.xlu1 %v8410_v38  ;;  %v442_v18 = vmul.f32 1.442695, %v408_v26  ;;  %v414_v42 = vsub.f32 %v8363_v21, %v8514_v56 }
  0x3a   : > { %v444_v24 = vmul.f32 1.442695, %v409_v27  ;;  %v446_v33 = vmul.f32 1.442695, %v410_v34  ;;  %v448_v38 = vmul.f32 1.442695, %v411_v32  ;;  %v416_v61 = vsub.f32 %v8369_v23, %v8514_v56 }
  0x3b   : > { %7987 = vpow2.f32 %v438_v14  ;;  %v417_v19 = vsub.f32 %v8385_v28, %v8514_v56  ;;  %v418_v55 = vsub.f32 %v8388_v29, %v8514_v56  ;;  %v419_v27 = vsub.f32 %v8391_v30, %v8514_v56 }
  0x3c   : > { %656 = vmax.xlane.f32.xlu0 %v385_v43  ;;  %7989 = vpow2.f32 %v440_v2  ;;  %v458_v53 = vmul.f32 1.442695, %v416_v61  ;;  %v420_v34 = vsub.f32 %v8402_v35, %v8514_v56 }
  0x3d   : > { %658 = vmax.xlane.f32.xlu1 %v387_v46  ;;  %7991 = vpow2.f32 %v442_v18  ;;  %v452_v46 = vmul.f32 1.442695, %v413_v6  ;;  %v460_v14 = vmul.f32 1.442695, %v417_v19  ;;  %v462_v18 = vmul.f32 1.442695, %v418_v55 }
  0x3e   : > { %7993 = vpow2.f32 %v444_v24  ;;  %v425_v19 = vsub.f32 %v8316_v4, %v8514_v56 }
  0x3f   : > { %7995 = vpow2.f32 %v446_v33 }
  0x40   : > { %624 = vmax.xlane.f32.xlu0 %v8414_v39  ;;  %v450_v39 = vmul.f32 1.442695, %v412_v5  ;;  %7997 = vpow2.f32 %v448_v38  ;;  %v423_v5 = vsub.f32 %v8308_v1, %v8514_v56 }
  0x41   : > { %626 = vmax.xlane.f32.xlu1 %v8418_v40  ;;  %v454_v40 = vmul.f32 1.442695, %v414_v42  ;;  %v464_v42 = vmul.f32 1.442695, %v419_v27 }
  0x42   : > { %7999 = vpow2.f32 %v450_v39 }
  0x43   : > { %8001 = vpow2.f32 %v452_v46  ;;  %v466_v46 = vmul.f32 1.442695, %v420_v34 }
  0x44   : > { %660 = vmax.xlane.f32.xlu0 %v389_v54  ;;  %v415_v54 = vsub.f32 %v8366_v22, %v8514_v56  ;;  %8003 = vpow2.f32 %v454_v40  ;;  %v424_v40 = vsub.f32 %v8313_v3, %v8514_v56 }
  0x45   : > { %v8539_v43 = vpop.eup %7987  ;;  %662 = vmax.xlane.f32.xlu1 %v391_v62 }
  0x46   : > { %v502_v57 = vsel %vm336_vm0, %v8539_v43, 0.0  ;;  %v8547_v31 = vpop.eup %7989  ;;  %v456_v41 = vmul.f32 1.442695, %v415_v54 }
  0x47   : > { %v8549_v9 = vpop.eup %7991 }
  0x48   : > { %628 = vmax.xlane.f32.xlu0 %v8425_v44  ;;  %v503_v44 = vsel %vm336_vm0, %v8547_v31, 0.0  ;;  %v505_v37 = vsel %vm336_vm0, %v8549_v9, 0.0  ;;  %v8561_v20 = vpop.eup %7993  ;;  %8005 = vpow2.f32 %v456_v41  ;;  %v472_v41 = vmul.f32 1.442695, %v423_v5 }
  0x49   : > { %v504_v62 = vadd.f32 %v503_v44, %v502_v57  ;;  %630 = vmax.xlane.f32.xlu1 %v8433_v47  ;;  %v8563_v26 = vpop.eup %7995  ;;  %8007 = vpow2.f32 %v458_v53 }
  0x4a   : > { %v509_v47 = vsel %vm336_vm0, %v8563_v26, 0.0  ;;  %v8575_v24 = vpop.eup %7997  ;;  %8009 = vpow2.f32 %v460_v14 }
  0x4b   : > { %v506_v25 = vadd.f32 %v505_v37, %v504_v62  ;;  %11288 = vst [vmem:[#allocation7_spill] sm:$0xff] %v8575_v24  ;;  %v511_v38 = vsel %vm336_vm0, %v8575_v24, 0.0  ;;  %8011 = vpow2.f32 %v462_v18  ;;  %v427_v18 = vsub.f32 %v8444_v50, %v8514_v56 }
  0x4c   : > { %664 = vmax.xlane.f32.xlu0 %v8502_v63  ;;  %v507_v63 = vsel %vm336_vm0, %v8561_v20, 0.0  ;;  %v8579_v33 = vpop.eup %7999  ;;  %8013 = vpow2.f32 %v464_v42 }
  0x4d   : > { %v508_v2 = vadd.f32 %v507_v63, %v506_v25  ;;  %666 = vmax.xlane.f32.xlu1 %v8506_v13  ;;  %11289 = vst [vmem:[#allocation8_spill] sm:$0xff] %v8579_v33  ;;  %v421_v13 = vsub.f32 %v8405_v36, %v8514_v56  ;;  %v513_v39 = vsel %vm336_vm0, %v8579_v33, 0.0  ;;  %v8590_v54 = vpop.eup %8001  ;;  %8015 = vpow2.f32 %v466_v46 }
  0x4e   : > { %11290 = vst [vmem:[#allocation9_spill] sm:$0xff] %v8590_v54  ;;  %v8594_v44 = vpop.eup %8003  ;;  %v515_v62 = vsel %vm336_vm0, %v8590_v54, 0.0  ;;  %v474_v25 = vmul.f32 1.442695, %v424_v40  ;;  %v426_v63 = vsub.f32 %v8428_v45, %v8514_v56  ;;  %v480_v46 = vmul.f32 1.442695, %v427_v18 }
  0x4f   : > { %v510_v32 = vadd.f32 %v509_v47, %v508_v2  ;;  %11291 = vst [vmem:[#allocation10_spill] sm:$0xff] %v8594_v44  ;;  %v468_v37 = vmul.f32 1.442695, %v421_v13  ;;  %v517_v53 = vsel %vm336_vm0, %v8594_v44, 0.0  ;;  %v476_v47 = vmul.f32 1.442695, %v425_v19 }
  0x50   : > { %632 = vmax.xlane.f32.xlu0 %v8437_v48  ;;  %v422_v48 = vsub.f32 %v8305_v0, %v8514_v56  ;;  %v478_v5 = vmul.f32 1.442695, %v426_v63 }
  0x51   : > { %v512_v6 = vadd.f32 %v511_v38, %v510_v32  ;;  %634 = vmax.xlane.f32.xlu1 %v8441_v49  ;;  %v428_v38 = vsub.f32 %v8447_v51, %v8514_v56 }
  0x52   : > { %v470_v57 = vmul.f32 1.442695, %v422_v48  ;;  %v8602_v55 = vpop.eup %8005 }
  0x53   : > { %v514_v61 = vadd.f32 %v513_v39, %v512_v6  ;;  %11292 = vst [vmem:[#allocation11_spill] sm:$0xff] %v8602_v55  ;;  %v8606_v2 = vpop.eup %8007  ;;  %v519_v27 = vsel %vm336_vm0, %v8602_v55, 0.0  ;;  %v429_v39 = vsub.f32 %v8450_v52, %v8514_v56 }
  0x54   : > { %8017 = vpow2.f32 %v470_v57  ;;  %11293 = vst [vmem:[#allocation12_spill] sm:$0xff] %v8606_v2  ;;  %v521_v48 = vsel %vm336_vm0, %v8606_v2, 0.0  ;;  %v8614_v32 = vpop.eup %8009 }
  0x55   : > { %v516_v49 = vadd.f32 %v515_v62, %v514_v61  ;;  %8019 = vpow2.f32 %v468_v37  ;;  %11294 = vst [vmem:[#allocation13_spill] sm:$0xff] %v8614_v32  ;;  %v8618_v6 = vpop.eup %8011  ;;  %v523_v42 = vsel %vm336_vm0, %v8614_v32, 0.0  ;;  %v11296_v61 = vld [vmem:[#allocation2_spill] sm:$0xff]  ;;  %v482_v37 = vmul.f32 1.442695, %v428_v38 }
  0x56   : > { %8021 = vpow2.f32 %v472_v41  ;;  %11295 = vst [vmem:[#allocation14_spill] sm:$0xff] %v8618_v6  ;;  %v525_v40 = vsel %vm336_vm0, %v8618_v6, 0.0  ;;  %v430_v19 = vsub.f32 %v11296_v61, %v8514_v56  ;;  %v8628_v62 = vpop.eup %8013 }
  0x57   : > { %v518_v14 = vadd.f32 %v517_v53, %v516_v49  ;;  %8023 = vpow2.f32 %v474_v25  ;;  %11297 = vst [vmem:[#allocation2_spill] sm:$0xff] %v8628_v62  ;;  %v8630_v49 = vpop.eup %8015  ;;  %v484_v53 = vmul.f32 1.442695, %v429_v39  ;;  %v527_v25 = vsel %vm336_vm0, %v8628_v62, 0.0 }
  0x58   : > { %8025 = vpow2.f32 %v476_v47  ;;  %11298 = vst [vmem:[#allocation15_spill] sm:$0xff] %v8630_v49 }
  0x59   : > { %v520_v34 = vadd.f32 %v519_v27, %v518_v14  ;;  %8027 = vpow2.f32 %v478_v5  ;;  %v431_v14 = vsub.f32 %v8459_v58, %v8514_v56  ;;  %v529_v27 = vsel %vm336_vm0, %v8630_v49, 0.0 }
  0x5a   : > { %8029 = vpow2.f32 %v480_v46  ;;  %v432_v5 = vsub.f32 %v8462_v59, %v8514_v56 }
  0x5b   : > { %v522_v13 = vadd.f32 %v521_v48, %v520_v34  ;;  %v486_v34 = vmul.f32 1.442695, %v430_v19  ;;  %8031 = vpow2.f32 %v482_v37  ;;  %v488_v46 = vmul.f32 1.442695, %v431_v14 }
  0x5c   : > { %8033 = vpow2.f32 %v484_v53 }
  0x5d   : > { %v524_v57 = vadd.f32 %v523_v42, %v522_v13  ;;  %8035 = vpow2.f32 %v486_v34 }
  0x5e   : > { %v8634_v63 = vpop.eup %8017  ;;  %8037 = vpow2.f32 %v488_v46 }
  0x5f   : > { %v526_v41 = vadd.f32 %v525_v40, %v524_v57  ;;  %v8640_v18 = vpop.eup %8019  ;;  %v533_v39 = vsel %vm336_vm0, %v8634_v63, 0.0  ;;  %v433_v57 = vsub.f32 %v8465_v60, %v8514_v56 }
  0x60   : > { %11299 = vst [vmem:[#allocation16_spill] sm:$0xff] %v8640_v18  ;;  %v8642_v48 = vpop.eup %8021  ;;  %v531_v13 = vsel %vm336_vm0, %v8640_v18, 0.0 }
  0x61   : > { %v528_v47 = vadd.f32 %v527_v25, %v526_v41  ;;  %v8650_v42 = vpop.eup %8023  ;;  %v535_v19 = vsel %vm336_vm0, %v8642_v48, 0.0  ;;  %v490_v41 = vmul.f32 1.442695, %v432_v5  ;;  %v11300_v25 = vld [vmem:[#allocation3_spill] sm:$0xff]  ;;  %v492_v14 = vmul.f32 1.442695, %v433_v57 }
  0x62   : > { %v8656_v37 = vpop.eup %8025  ;;  %v537_v18 = vsel %vm336_vm0, %v8650_v42, 0.0 }
  0x63   : > { %v530_v38 = vadd.f32 %v529_v27, %v528_v47  ;;  %v434_v47 = vsub.f32 %v11300_v25, %v8514_v56  ;;  %v8662_v53 = vpop.eup %8027  ;;  %v539_v62 = vsel %vm336_vm0, %v8656_v37, 0.0  ;;  %8039 = vpow2.f32 %v490_v41 }
  0x64   : > { %v8668_v34 = vpop.eup %8029  ;;  %v541_v32 = vsel %vm336_vm0, %v8662_v53, 0.0  ;;  %8041 = vpow2.f32 %v492_v14 }
  0x65   : > { %v532_v40 = vadd.f32 %v531_v13, %v530_v38  ;;  %v11301_v38 = vld [vmem:[#allocation4_spill] sm:$0xff]  ;;  %v494_v5 = vmul.f32 1.442695, %v434_v47  ;;  %v8674_v46 = vpop.eup %8031  ;;  %v543_v55 = vsel %vm336_vm0, %v8668_v34, 0.0 }
  0x66   : > { %v435_v13 = vsub.f32 %v11301_v38, %v8514_v56  ;;  %v8680_v41 = vpop.eup %8033 }
  0x67   : > { %v534_v27 = vadd.f32 %v533_v39, %v532_v40  ;;  %v11302_v39 = vld [vmem:[#allocation5_spill] sm:$0xff]  ;;  %8043 = vpow2.f32 %v494_v5 }
  0x68   : > { %v436_v40 = vsub.f32 %v11302_v39, %v8514_v56  ;;  %v496_v57 = vmul.f32 1.442695, %v435_v13 }
  0x69   : > { %v536_v49 = vadd.f32 %v535_v19, %v534_v27  ;;  %v11303_v19 = vld [vmem:[#allocation6_spill] sm:$0xff] }
  0x6a   : > { %v437_v27 = vsub.f32 %v11303_v19, %v8514_v56  ;;  %v498_v47 = vmul.f32 1.442695, %v436_v40  ;;  %8045 = vpow2.f32 %v496_v57  ;;  %v547_v56 = vsel %vm336_vm0, %v8680_v41, 0.0 }
  0x6b   : > { %v538_v6 = vadd.f32 %v537_v18, %v536_v49  ;;  %v545_v49 = vsel %vm336_vm0, %v8674_v46, 0.0  ;;  %v8684_v18 = vpop.eup %8035 }
  0x6c   : > { %11304 = vst [vmem:[#allocation3_spill] sm:$0xff] %v8684_v18  ;;  %v500_v14 = vmul.f32 1.442695, %v437_v27  ;;  %8047 = vpow2.f32 %v498_v47  ;;  %v549_v5 = vsel %vm336_vm0, %v8684_v18, 0.0 }
  0x6d   : > { %v540_v2 = vadd.f32 %v539_v62, %v538_v6  ;;  %v8688_v6 = vpop.eup %8037 }
  0x6e   : > { %11305 = vst [vmem:[#allocation4_spill] sm:$0xff] %v8688_v6  ;;  %v8692_v40 = vpop.eup %8039  ;;  %8049 = vpow2.f32 %v500_v14 }
  0x6f   : > { %v542_v44 = vadd.f32 %v541_v32, %v540_v2  ;;  %11306 = vst [vmem:[#allocation5_spill] sm:$0xff] %v8692_v40  ;;  %v551_v32 = vsel %vm336_vm0, %v8688_v6, 0.0  ;;  %v8696_v57 = vpop.eup %8041 }
  0x70   : > { %11307 = vst [vmem:[#allocation6_spill] sm:$0xff] %v8696_v57 }
  0x71   : > { %v544_v13 = vadd.f32 %v543_v55, %v542_v44  ;;  %v553_v55 = vsel %vm336_vm0, %v8692_v40, 0.0  ;;  %v8700_v27 = vpop.eup %8043 }
  0x72   : > { %11308 = vst [vmem:[#allocation17_spill] sm:$0xff] %v8700_v27  ;;  %v557_v14 = vsel %vm336_vm0, %v8700_v27, 0.0 }
  0x73   : > { %v546_v62 = vadd.f32 %v545_v49, %v544_v13  ;;  %v555_v49 = vsel %vm336_vm0, %v8696_v57, 0.0 }
  0x74   : > { %v8704_v13 = vpop.eup %8045 }
  0x75   : > { %v548_v2 = vadd.f32 %v547_v56, %v546_v62  ;;  %11309 = vst [vmem:[#allocation18_spill] sm:$0xff] %v8704_v13 }
  0x76   : > { %v8708_v56 = vpop.eup %8047 }
  0x77   : > { %v550_v44 = vadd.f32 %v549_v5, %v548_v2  ;;  %v559_v5 = vsel %vm336_vm0, %v8704_v13, 0.0 }
  0x78   : > { %v8712_v2 = vpop.eup %8049 }
  0x79   : > { %v552_v47 = vadd.f32 %v551_v32, %v550_v44  ;;  %v561_v32 = vsel %vm336_vm0, %v8708_v56, 0.0  ;;  %v563_v57 = vsel %vm336_vm0, %v8712_v2, 0.0 }
  0x7b   : > { %v554_v54 = vadd.f32 %v553_v55, %v552_v47 }
  0x7d   : > { %v556_v62 = vadd.f32 %v555_v49, %v554_v54 }
  0x7f   : > { %v558_v40 = vadd.f32 %v557_v14, %v556_v62 }
  0x81   : > { %v560_v44 = vadd.f32 %v559_v5, %v558_v40 }
  0x83   : > { %v562_v55 = vadd.f32 %v561_v32, %v560_v44 }
  0x85   : > { %v564_v47 = vadd.f32 %v563_v57, %v562_v55 }
  0x87   : > { %v565_v6 = vrot.slane %v564_v47, 4 }
  0x89   : > { %v566_v27 = vadd.f32 %v565_v6, %v564_v47 }
  0x8b   : > { %v567_v33 = vrot.slane %v566_v27, 2 }
  0x8d   : > { %v568_v18 = vadd.f32 %v567_v33, %v566_v27 }
  0x8f   : > { %v569_v54 = vrot.slane %v568_v18, 1 }
  0x91   : > { %v570_v49 = vadd.f32 %v569_v54, %v568_v18 }
  0x93   : > { %8051 = vrcp.f32 %v570_v49 }
  0x9d   : > { %v8718_v13 = vpop.eup %8051 }
  0x9e   : > { %v8723_v40 = vmul.f32 %v8718_v13, %v8634_v63  ;;  %v8727_v62 = vmul.f32 %v8718_v13, %v8642_v48  ;;  %v8732_v27 = vmul.f32 %v8718_v13, %v8650_v42  ;;  %v8738_v44 = vmul.f32 %v8718_v13, %v8656_v37 }
  0x9f   : > { %v8744_v49 = vmul.f32 %v8718_v13, %v8662_v53 }
  0xa1   : > { %v637_v24 = vpop.xlane.xlu0 %636 }
  0xa2   : > { %v684_v14 = vsub.f32 %v8305_v0, %v637_v24  ;;  %v605_v18 = vpop.xlane.xlu1 %604 }
  0xa3   : > { %v668_v0 = vsub.f32 %v8323_v7, %v605_v18 }
  0xa4   : > { %v732_v57 = vmul.f32 1.442695, %v684_v14 }
  0xa5   : > { %v639_v6 = vpop.xlane.xlu0 %638  ;;  %v700_v5 = vmul.f32 1.442695, %v668_v0 }
  0xa6   : > { %8053 = vpow2.f32 %v732_v57  ;;  %v685_v33 = vsub.f32 %v8308_v1, %v639_v6  ;;  %v607_v48 = vpop.xlane.xlu1 %606 }
  0xa7   : > { %v669_v1 = vsub.f32 %v8326_v8, %v607_v48 }
  0xa8   : > { %v734_v24 = vmul.f32 1.442695, %v685_v33 }
  0xa9   : > { %v641_v63 = vpop.xlane.xlu0 %640  ;;  %v702_v47 = vmul.f32 1.442695, %v669_v1 }
  0xaa   : > { %8055 = vpow2.f32 %v734_v24  ;;  %v686_v32 = vsub.f32 %v8313_v3, %v641_v63  ;;  %v643_v54 = vpop.xlane.xlu1 %642 }
  0xab   : > { %8057 = vpow2.f32 %v700_v5  ;;  %v687_v3 = vsub.f32 %v8316_v4, %v643_v54 }
  0xac   : > { %v736_v55 = vmul.f32 1.442695, %v686_v32 }
  0xad   : > { %v609_v42 = vpop.xlane.xlu0 %608  ;;  %v738_v57 = vmul.f32 1.442695, %v687_v3 }
  0xae   : > { %8059 = vpow2.f32 %v736_v55  ;;  %v670_v7 = vsub.f32 %v8331_v10, %v609_v42  ;;  %v611_v10 = vpop.xlane.xlu1 %610 }
  0xaf   : > { %8061 = vpow2.f32 %v702_v47  ;;  %v671_v53 = vsub.f32 %v8334_v11, %v611_v10 }
  0xb0   : > { %v8747_v14 = vpop.eup %8053  ;;  %v704_v37 = vmul.f32 1.442695, %v670_v7 }
  0xb1   : > { %v645_v6 = vpop.xlane.xlu0 %644  ;;  %v812_v8 = vsel %vm336_vm0, %v8747_v14, 0.0  ;;  %v706_v24 = vmul.f32 1.442695, %v671_v53 }
  0xb2   : > { %8063 = vpow2.f32 %v704_v37  ;;  %v688_v33 = vsub.f32 %v8428_v45, %v645_v6  ;;  %813 = vadd.xlane.f32.xlu0 %v812_v8  ;;  %v647_v48 = vpop.xlane.xlu1 %646 }
  0xb3   : > { %8065 = vpow2.f32 %v738_v57  ;;  %v689_v11 = vsub.f32 %v8444_v50, %v647_v48 }
  0xb4   : > { %v8753_v18 = vpop.eup %8055  ;;  %v740_v0 = vmul.f32 1.442695, %v688_v33 }
  0xb5   : > { %v8755_v4 = vpop.eup %8057  ;;  %v613_v5 = vpop.xlane.xlu0 %612  ;;  %v815_v63 = vsel %vm336_vm0, %v8753_v18, 0.0  ;;  %v742_v42 = vmul.f32 1.442695, %v689_v11 }
  0xb6   : > { %8067 = vpow2.f32 %v740_v0  ;;  %v672_v32 = vsub.f32 %v8337_v12, %v613_v5  ;;  %816 = vadd.xlane.f32.xlu1 %v815_v63  ;;  %v764_v45 = vsel %vm336_vm0, %v8755_v4, 0.0  ;;  %v615_v3 = vpop.xlane.xlu1 %614 }
  0xb7   : > { %8069 = vpow2.f32 %v706_v24  ;;  %765 = vadd.xlane.f32.xlu0 %v764_v45  ;;  %v673_v50 = vsub.f32 %v8344_v15, %v615_v3 }
  0xb8   : > { %v8763_v1 = vpop.eup %8059  ;;  %v708_v55 = vmul.f32 1.442695, %v672_v32 }
  0xb9   : > { %v8765_v47 = vpop.eup %8061  ;;  %v649_v7 = vpop.xlane.xlu0 %648  ;;  %v818_v54 = vsel %vm336_vm0, %v8763_v1, 0.0  ;;  %v710_v33 = vmul.f32 1.442695, %v673_v50 }
  0xba   : > { %8071 = vpow2.f32 %v708_v55  ;;  %v690_v12 = vsub.f32 %v8447_v51, %v649_v7  ;;  %v767_v37 = vsel %vm336_vm0, %v8765_v47, 0.0  ;;  %v651_v0 = vpop.xlane.xlu1 %650 }
  0xbb   : > { %8073 = vpow2.f32 %v742_v42  ;;  %819 = vadd.xlane.f32.xlu0 %v818_v54  ;;  %768 = vadd.xlane.f32.xlu1 %v767_v37  ;;  %v691_v15 = vsub.f32 %v8450_v52, %v651_v0 }
  0xbc   : > { %v8773_v57 = vpop.eup %8063  ;;  %v744_v6 = vmul.f32 1.442695, %v690_v12 }
  0xbd   : > { %v8775_v8 = vpop.eup %8065  ;;  %v617_v10 = vpop.xlane.xlu0 %616  ;;  %v770_v53 = vsel %vm336_vm0, %v8773_v57, 0.0  ;;  %v746_v48 = vmul.f32 1.442695, %v691_v15 }
  0xbe   : > { %8075 = vpow2.f32 %v744_v6  ;;  %v674_v51 = vsub.f32 %v8347_v16, %v617_v10  ;;  %v821_v24 = vsel %vm336_vm0, %v8775_v8, 0.0  ;;  %v619_v55 = vpop.xlane.xlu1 %618 }
  0xbf   : > { %8077 = vpow2.f32 %v710_v33  ;;  %771 = vadd.xlane.f32.xlu0 %v770_v53  ;;  %822 = vadd.xlane.f32.xlu1 %v821_v24  ;;  %v675_v52 = vsub.f32 %v8350_v17, %v619_v55 }
  0xc0   : > { %v8783_v5 = vpop.eup %8067  ;;  %v712_v63 = vmul.f32 1.442695, %v674_v51 }
  0xc1   : > { %v8785_v32 = vpop.eup %8069  ;;  %v653_v45 = vpop.xlane.xlu0 %652  ;;  %v824_v11 = vsel %vm336_vm0, %v8783_v5, 0.0  ;;  %v714_v3 = vmul.f32 1.442695, %v675_v52 }
  0xc2   : > { %8079 = vpow2.f32 %v712_v63  ;;  %v692_v16 = vsub.f32 %v11296_v61, %v653_v45  ;;  %v773_v42 = vsel %vm336_vm0, %v8785_v32, 0.0  ;;  %v655_v6 = vpop.xlane.xlu1 %654 }
  0xc3   : > { %8081 = vpow2.f32 %v746_v48  ;;  %825 = vadd.xlane.f32.xlu0 %v824_v11  ;;  %774 = vadd.xlane.f32.xlu1 %v773_v42  ;;  %v693_v17 = vsub.f32 %v8459_v58, %v655_v6 }
  0xc4   : > { %v8793_v7 = vpop.eup %8071  ;;  %v748_v54 = vmul.f32 1.442695, %v692_v16 }
  0xc5   : > { %v8795_v12 = vpop.eup %8073  ;;  %v621_v37 = vpop.xlane.xlu0 %620  ;;  %v776_v50 = vsel %vm336_vm0, %v8793_v7, 0.0  ;;  %v750_v0 = vmul.f32 1.442695, %v693_v17 }
  0xc6   : > { %8083 = vpow2.f32 %v748_v54  ;;  %v676_v61 = vsub.f32 %v8363_v21, %v621_v37  ;;  %v827_v33 = vsel %vm336_vm0, %v8795_v12, 0.0  ;;  %v623_v63 = vpop.xlane.xlu1 %622 }
  0xc7   : > { %8085 = vpow2.f32 %v714_v3  ;;  %777 = vadd.xlane.f32.xlu0 %v776_v50  ;;  %828 = vadd.xlane.f32.xlu1 %v827_v33  ;;  %v677_v58 = vsub.f32 %v8366_v22, %v623_v63 }
  0xc8   : > { %v8803_v10 = vpop.eup %8075  ;;  %v716_v53 = vmul.f32 1.442695, %v676_v61 }
  0xc9   : > { %v8805_v51 = vpop.eup %8077  ;;  %v657_v24 = vpop.xlane.xlu0 %656  ;;  %v830_v15 = vsel %vm336_vm0, %v8803_v10, 0.0  ;;  %v718_v55 = vmul.f32 1.442695, %v677_v58 }
  0xca   : > { %8087 = vpow2.f32 %v716_v53  ;;  %v694_v21 = vsub.f32 %v8462_v59, %v657_v24  ;;  %v779_v48 = vsel %vm336_vm0, %v8805_v51, 0.0  ;;  %v659_v54 = vpop.xlane.xlu1 %658 }
  0xcb   : > { %8089 = vpow2.f32 %v750_v0  ;;  %831 = vadd.xlane.f32.xlu0 %v830_v15  ;;  %780 = vadd.xlane.f32.xlu1 %v779_v48  ;;  %v695_v22 = vsub.f32 %v8465_v60, %v659_v54 }
  0xcc   : > { %v8813_v45 = vpop.eup %8079  ;;  %v752_v11 = vmul.f32 1.442695, %v694_v21 }
  0xcd   : > { %v8815_v16 = vpop.eup %8081  ;;  %v625_v42 = vpop.xlane.xlu0 %624  ;;  %v782_v52 = vsel %vm336_vm0, %v8813_v45, 0.0  ;;  %v754_v6 = vmul.f32 1.442695, %v695_v22 }
  0xce   : > { %8091 = vpow2.f32 %v752_v11  ;;  %v678_v59 = vsub.f32 %v8369_v23, %v625_v42  ;;  %v833_v3 = vsel %vm336_vm0, %v8815_v16, 0.0  ;;  %v627_v53 = vpop.xlane.xlu1 %626 }
  0xcf   : > { %8093 = vpow2.f32 %v718_v55  ;;  %783 = vadd.xlane.f32.xlu0 %v782_v52  ;;  %834 = vadd.xlane.f32.xlu1 %v833_v3  ;;  %v679_v60 = vsub.f32 %v8385_v28, %v627_v53 }
  0xd0   : > { %v8823_v37 = vpop.eup %8083  ;;  %v720_v50 = vmul.f32 1.442695, %v678_v59 }
  0xd1   : > { %v8825_v61 = vpop.eup %8085  ;;  %v661_v33 = vpop.xlane.xlu0 %660  ;;  %v836_v17 = vsel %vm336_vm0, %v8823_v37, 0.0  ;;  %v722_v63 = vmul.f32 1.442695, %v679_v60 }
  0xd2   : > { %8095 = vpow2.f32 %v720_v50  ;;  %v696_v23 = vsub.f32 %v11300_v25, %v661_v33  ;;  %v785_v0 = vsel %vm336_vm0, %v8825_v61, 0.0  ;;  %v663_v11 = vpop.xlane.xlu1 %662 }
  0xd3   : > { %8097 = vpow2.f32 %v754_v6  ;;  %837 = vadd.xlane.f32.xlu0 %v836_v17  ;;  %786 = vadd.xlane.f32.xlu1 %v785_v0  ;;  %v697_v28 = vsub.f32 %v11301_v38, %v663_v11 }
  0xd4   : > { %v8833_v24 = vpop.eup %8087  ;;  %v756_v15 = vmul.f32 1.442695, %v696_v23 }
  0xd5   : > { %v8835_v21 = vpop.eup %8089  ;;  %v629_v48 = vpop.xlane.xlu0 %628  ;;  %v788_v58 = vsel %vm336_vm0, %v8833_v24, 0.0  ;;  %v758_v54 = vmul.f32 1.442695, %v697_v28 }
  0xd6   : > { %8099 = vpow2.f32 %v756_v15  ;;  %v680_v25 = vsub.f32 %v8388_v29, %v629_v48  ;;  %v839_v55 = vsel %vm336_vm0, %v8835_v21, 0.0  ;;  %v631_v50 = vpop.xlane.xlu1 %630 }
  0xd7   : > { %8101 = vpow2.f32 %v722_v63  ;;  %789 = vadd.xlane.f32.xlu0 %v788_v58  ;;  %840 = vadd.xlane.f32.xlu1 %v839_v55  ;;  %v681_v38 = vsub.f32 %v8391_v30, %v631_v50 }
  0xd8   : > { %v8843_v42 = vpop.eup %8091  ;;  %v724_v52 = vmul.f32 1.442695, %v680_v25 }
  0xd9   : > { %v8845_v59 = vpop.eup %8093  ;;  %v665_v3 = vpop.xlane.xlu0 %664  ;;  %v842_v22 = vsel %vm336_vm0, %v8843_v42, 0.0  ;;  %v726_v53 = vmul.f32 1.442695, %v681_v38 }
  0xda   : > { %8103 = vpow2.f32 %v724_v52  ;;  %v698_v29 = vsub.f32 %v11302_v39, %v665_v3  ;;  %v791_v6 = vsel %vm336_vm0, %v8845_v59, 0.0  ;;  %v667_v15 = vpop.xlane.xlu1 %666 }
  0xdb   : > { %8105 = vpow2.f32 %v758_v54  ;;  %843 = vadd.xlane.f32.xlu0 %v842_v22  ;;  %792 = vadd.xlane.f32.xlu1 %v791_v6  ;;  %v699_v30 = vsub.f32 %v11303_v19, %v667_v15 }
  0xdc   : > { %v8853_v33 = vpop.eup %8095  ;;  %v760_v17 = vmul.f32 1.442695, %v698_v29 }
  0xdd   : > { %v8855_v23 = vpop.eup %8097  ;;  %v633_v0 = vpop.xlane.xlu0 %632  ;;  %v794_v60 = vsel %vm336_vm0, %v8853_v33, 0.0  ;;  %v762_v11 = vmul.f32 1.442695, %v699_v30  ;;  %v573_v30 = vmul.f32 %v8718_v13, %v8547_v31  ;;  %v576_v31 = vmul.f32 %v8718_v13, %v8563_v26 }
  0xde   : > { %8107 = vpow2.f32 %v760_v17  ;;  %v682_v39 = vsub.f32 %v8402_v35, %v633_v0  ;;  %v845_v63 = vsel %vm336_vm0, %v8855_v23, 0.0  ;;  %v635_v35 = vpop.xlane.xlu1 %634 }
  0xdf   : > { %8109 = vpow2.f32 %v726_v53  ;;  %795 = vadd.xlane.f32.xlu0 %v794_v60  ;;  %846 = vadd.xlane.f32.xlu1 %v845_v63  ;;  %v683_v52 = vsub.f32 %v8405_v36, %v635_v35  ;;  %v572_v63 = vmul.f32 %v8718_v13, %v8539_v43  ;;  %v575_v43 = vmul.f32 %v8718_v13, %v8561_v20 }
  0xe0   : > { %v8863_v48 = vpop.eup %8099  ;;  %v728_v58 = vmul.f32 1.442695, %v682_v39 }
  0xe1   : > { %v8865_v25 = vpop.eup %8101  ;;  %v848_v55 = vsel %vm336_vm0, %v8863_v48, 0.0  ;;  %v730_v3 = vmul.f32 1.442695, %v683_v52 }
  0xe2   : > { %8111 = vpow2.f32 %v728_v58  ;;  %v797_v28 = vsel %vm336_vm0, %v8865_v25, 0.0  ;;  %v574_v58 = vmul.f32 %v8718_v13, %v8549_v9  ;;  %v595_v9 = vmul.f32 %v8718_v13, %v8680_v41 }
  0xe3   : > { %8113 = vpow2.f32 %v762_v11  ;;  %849 = vadd.xlane.f32.xlu0 %v848_v55  ;;  %798 = vadd.xlane.f32.xlu1 %v797_v28  ;;  %v11313_v11 = vld [vmem:[#allocation4_spill] sm:$0xff]  ;;  %v11314_v55 = vld [vmem:[#allocation9_spill] sm:$0xff] }
  0xe4   : > { %v8872_v19 = vpop.eup %8103  ;;  %8115 = vpow2.f32 %v730_v3  ;;  %v597_v26 = vmul.f32 %v8718_v13, %v11313_v11  ;;  %v579_v41 = vmul.f32 %v8718_v13, %v11314_v55  ;;  %v11315_v28 = vld [vmem:[#allocation5_spill] sm:$0xff]  ;;  %v11316_v3 = vld [vmem:[#allocation10_spill] sm:$0xff] }
  0xe5   : > { %v8874_v54 = vpop.eup %8105  ;;  %v800_v22 = vsel %vm336_vm0, %v8872_v19, 0.0  ;;  %v598_v52 = vmul.f32 %v8718_v13, %v11315_v28  ;;  %v11322_v11 = vld [vmem:[#allocation13_spill] sm:$0xff] }
  0xe6   : > { %v851_v29 = vsel %vm336_vm0, %v8874_v54, 0.0 }
  0xe7   : > { %801 = vadd.xlane.f32.xlu0 %v800_v22  ;;  %852 = vadd.xlane.f32.xlu1 %v851_v29  ;;  %v580_v22 = vmul.f32 %v8718_v13, %v11316_v3 }
  0xe8   : > { %v8880_v50 = vpop.eup %8107 }
  0xe9   : > { %v8882_v6 = vpop.eup %8109  ;;  %v854_v36 = vsel %vm336_vm0, %v8880_v50, 0.0 }
  0xea   : > { %v803_v38 = vsel %vm336_vm0, %v8882_v6, 0.0 }
  0xeb   : > { %855 = vadd.xlane.f32.xlu0 %v854_v36  ;;  %804 = vadd.xlane.f32.xlu1 %v803_v38  ;;  %v11317_v38 = vld [vmem:[#allocation6_spill] sm:$0xff] }
  0xec   : > { %v8888_v17 = vpop.eup %8111 }
  0xed   : > { %v8890_v53 = vpop.eup %8113  ;;  %v806_v0 = vsel %vm336_vm0, %v8888_v17, 0.0 }
  0xee   : > { %v857_v60 = vsel %vm336_vm0, %v8890_v53, 0.0  ;;  %v8896_v39 = vpop.eup %8115 }
  0xef   : > { %807 = vadd.xlane.f32.xlu0 %v806_v0  ;;  %858 = vadd.xlane.f32.xlu1 %v857_v60  ;;  %v809_v15 = vsel %vm336_vm0, %v8896_v39, 0.0  ;;  %v599_v0 = vmul.f32 %v8718_v13, %v11317_v38  ;;  %v11318_v60 = vld [vmem:[#allocation11_spill] sm:$0xff] }
  0xf3   : > { %810 = vadd.xlane.f32.xlu1 %v809_v15  ;;  %v581_v15 = vmul.f32 %v8718_v13, %v11318_v60 }
 0x11c   : > { %956 = vxpose.xlu0.b32.start [1/16] (narrow) %v8723_v40, 8  ;;  %v593_v40 = vmul.f32 %v8718_v13, %v8668_v34 }
 0x120   : > { %957 = vxpose.xlu0.b32.cont [2/16] (narrow) %v8727_v62, 8  ;;  %v594_v62 = vmul.f32 %v8718_v13, %v8674_v46 }
 0x124   : > { %958 = vxpose.xlu0.b32.cont [3/16] (narrow) %v8732_v27, 8  ;;  %v11310_v27 = vld [vmem:[#allocation7_spill] sm:$0xff] }
 0x125   : > { %v577_v34 = vmul.f32 %v8718_v13, %v11310_v27 }
 0x126   : > { %924 = vxpose.xlu1.b32.start [1/16] (narrow) %v572_v63, 8 }
 0x128   : > { %959 = vxpose.xlu0.b32.cont [4/16] (narrow) %v8738_v44, 8  ;;  %v11311_v44 = vld [vmem:[#allocation3_spill] sm:$0xff] }
 0x129   : > { %v596_v20 = vmul.f32 %v8718_v13, %v11311_v44  ;;  %v11321_v44 = vld [vmem:[#allocation18_spill] sm:$0xff] }
 0x12a   : > { %925 = vxpose.xlu1.b32.cont [2/16] (narrow) %v573_v30, 8 }
 0x12c   : > { %960 = vxpose.xlu0.b32.cont [5/16] (narrow) %v8744_v49, 8  ;;  %v11312_v49 = vld [vmem:[#allocation8_spill] sm:$0xff] }
 0x12d   : > { %v578_v46 = vmul.f32 %v8718_v13, %v11312_v49 }
 0x12e   : > { %926 = vxpose.xlu1.b32.cont [3/16] (narrow) %v574_v58, 8  ;;  %v11319_v58 = vld [vmem:[#allocation17_spill] sm:$0xff] }
 0x130   : > { %961 = vxpose.xlu0.b32.cont [6/16] (narrow) %v593_v40, 8  ;;  %v600_v40 = vmul.f32 %v8718_v13, %v11319_v58  ;;  %v603_v58 = vmul.f32 %v8718_v13, %v8712_v2 }
 0x132   : > { %927 = vxpose.xlu1.b32.cont [4/16] (narrow) %v575_v43, 8 }
 0x134   : > { %962 = vxpose.xlu0.b32.cont [7/16] (narrow) %v594_v62, 8  ;;  %v11320_v62 = vld [vmem:[#allocation12_spill] sm:$0xff] }
 0x136   : > { %928 = vxpose.xlu1.b32.cont [5/16] (narrow) %v576_v31, 8  ;;  %v582_v31 = vmul.f32 %v8718_v13, %v11320_v62  ;;  %v11324_v62 = vld [vmem:[#allocation2_spill] sm:$0xff] }
 0x138   : > { %963 = vxpose.xlu0.b32.cont [8/16] (narrow) %v595_v9, 8 }
 0x13a   : > { %929 = vxpose.xlu1.b32.cont [6/16] (narrow) %v577_v34, 8 }
 0x13c   : > { %964 = vxpose.xlu0.b32.cont [9/16] (narrow) %v596_v20, 8  ;;  %v601_v20 = vmul.f32 %v8718_v13, %v11321_v44 }
 0x13e   : > { %930 = vxpose.xlu1.b32.cont [7/16] (narrow) %v578_v46, 8 }
 0x13f   : > { %v814_v35 = vpop.xlane.xlu0 %813 }
 0x140   : > { %8117 = vrcp.f32 %v814_v35  ;;  %965 = vxpose.xlu0.b32.cont [10/16] (narrow) %v597_v26, 8  ;;  %v583_v26 = vmul.f32 %v8718_v13, %v11322_v11 }
 0x142   : > { %931 = vxpose.xlu1.b32.cont [8/16] (narrow) %v579_v41, 8 }
 0x143   : > { %v817_v29 = vpop.xlane.xlu1 %816 }
 0x144   : > { %v766_v36 = vpop.xlane.xlu0 %765  ;;  %8119 = vrcp.f32 %v817_v29  ;;  %966 = vxpose.xlu0.b32.cont [11/16] (narrow) %v598_v52, 8  ;;  %v602_v52 = vmul.f32 %v8718_v13, %v8708_v56  ;;  %v11323_v29 = vld [vmem:[#allocation14_spill] sm:$0xff] }
 0x145   : > { %8121 = vrcp.f32 %v766_v36  ;;  %v584_v36 = vmul.f32 %v8718_v13, %v11323_v29 }
 0x146   : > { %932 = vxpose.xlu1.b32.cont [9/16] (narrow) %v580_v22, 8 }
 0x148   : > { %v820_v63 = vpop.xlane.xlu0 %819  ;;  %v769_v30 = vpop.xlane.xlu1 %768  ;;  %967 = vxpose.xlu0.b32.cont [12/16] (narrow) %v599_v0, 8 }
 0x149   : > { %8123 = vrcp.f32 %v820_v63 }
 0x14a   : > { %v8118_v43 = vpop.eup %8117  ;;  %8125 = vrcp.f32 %v769_v30  ;;  %933 = vxpose.xlu1.b32.cont [10/16] (narrow) %v581_v15, 8 }
 0x14b   : > { %v893_v9 = vmul.f32 %v8118_v43, %v8747_v14 }
 0x14c   : > { %v772_v27 = vpop.xlane.xlu0 %771  ;;  %v823_v34 = vpop.xlane.xlu1 %822  ;;  %968 = vxpose.xlu0.b32.cont [13/16] (narrow) %v600_v40, 8 }
 0x14d   : > { %8127 = vrcp.f32 %v772_v27  ;;  %v1037_v49 = vand.u32 4294901760, %v893_v9 }
 0x14e   : > { %v8120_v46 = vpop.eup %8119  ;;  %8129 = vrcp.f32 %v823_v34  ;;  %934 = vxpose.xlu1.b32.cont [11/16] (narrow) %v582_v31, 8  ;;  %v585_v31 = vmul.f32 %v8718_v13, %v11324_v62 }
 0x14f   : > { %v8122_v55 = vpop.eup %8121  ;;  %v895_v41 = vmul.f32 %v8120_v46, %v8753_v18  ;;  %v8949_v35 = vsub.f32 %v893_v9, %v1037_v49 }
 0x150   : > { %v826_v14 = vpop.xlane.xlu0 %825  ;;  %v775_v28 = vpop.xlane.xlu1 %774  ;;  %969 = vxpose.xlu0.b32.cont [14/16] (narrow) %v601_v20, 8  ;;  %v861_v3 = vmul.f32 %v8122_v55, %v8755_v4 }
 0x151   : > { %8131 = vrcp.f32 %v826_v14  ;;  %v1040_v22 = vand.u32 4294901760, %v895_v41  ;;  %v1215_v18 = vand.u32 4294901760, %v8949_v35 }
 0x152   : > { %8133 = vrcp.f32 %v775_v28  ;;  %935 = vxpose.xlu1.b32.cont [12/16] (narrow) %v583_v26, 8  ;;  %v989_v38 = vand.u32 4294901760, %v861_v3 }
 0x153   : > { %v8124_v0 = vpop.eup %8123  ;;  %v8957_v60 = vpack.c.bf16 %v1040_v22, %v1037_v49  ;;  %v8959_v15 = vsub.f32 %v895_v41, %v1040_v22  ;;  %v1216_v34 = vsub.f32 %v8949_v35, %v1215_v18  ;;  %v11325_v49 = vld [vmem:[#allocation15_spill] sm:$0xff] }
 0x154   : > { %v8126_v63 = vpop.eup %8125  ;;  %v778_v30 = vpop.xlane.xlu0 %777  ;;  %970 = vxpose.xlu0.b32.cont [15/16] (narrow) %v602_v52, 8  ;;  %v8961_v4 = vsub.f32 %v861_v3, %v989_v38  ;;  %v897_v40 = vmul.f32 %v8124_v0, %v8763_v1  ;;  %v586_v46 = vmul.f32 %v8718_v13, %v11325_v49  ;;  %v11327_v52 = vld [vmem:[#allocation16_spill] sm:$0xff] }
 0x155   : > { %v829_v56 = vpop.xlane.xlu1 %828  ;;  %8135 = vrcp.f32 %v778_v30  ;;  %7436 = vmatprep.subr.bf16.mxu0 %v8957_v60  ;;  %v863_v43 = vmul.f32 %v8126_v63, %v8765_v47  ;;  %v1222_v9 = vand.u32 4294901760, %v8959_v15  ;;  %v587_v3 = vmul.f32 %v8718_v13, %v11327_v52 }
 0x156   : > { %8137 = vrcp.f32 %v829_v56  ;;  %936 = vxpose.xlu1.b32.cont [13/16] (narrow) %v584_v36, 8  ;;  %v1043_v27 = vand.u32 4294901760, %v897_v40  ;;  %v11113_v44 = vand.u32 4294901760, %v8961_v4 }
 0x157   : > { %v8128_v2 = vpop.eup %8127  ;;  %v992_v20 = vand.u32 4294901760, %v863_v43  ;;  %v1223_v1 = vsub.f32 %v8959_v15, %v1222_v9  ;;  %v8976_v47 = vpack.c.bf16 %v1222_v9, %v1215_v18  ;;  %v1217_v18 = vand.u32 4294901760, %v1216_v34 }
 0x158   : > { %v8130_v11 = vpop.eup %8129  ;;  %v832_v26 = vpop.xlane.xlu0 %831  ;;  %971 = vxpose.xlu0.b32.end [16/16] (narrow) %v603_v58, 8  ;;  %v8978_v41 = vsub.f32 %v897_v40, %v1043_v27  ;;  %v865_v14 = vmul.f32 %v8128_v2, %v8773_v57  ;;  %v1104_v28 = vsub.f32 %v8961_v4, %v11113_v44 }
 0x159   : > { %11326 = vst [vmem:[#allocation7_spill] sm:$0xff] %v8976_v47  ;;  %v781_v55 = vpop.xlane.xlu1 %780  ;;  %8139 = vrcp.f32 %v832_v26  ;;  %v8986_v22 = vpack.c.bf16 %v992_v20, %v989_v38  ;;  %v8988_v29 = vsub.f32 %v863_v43, %v992_v20  ;;  %v899_v36 = vmul.f32 %v8130_v11, %v8775_v8 }
 0x15a   : > { %8141 = vrcp.f32 %v781_v55  ;;  %937 = vxpose.xlu1.b32.cont [14/16] (narrow) %v585_v31, 8  ;;  %v1224_v0 = vand.u32 4294901760, %v1223_v1  ;;  %v995_v63 = vand.u32 4294901760, %v865_v14  ;;  %v11107_v13 = vand.u32 4294901760, %v8978_v41 }
 0x15b   : > { %v8132_v57 = vpop.eup %8131  ;;  %7438 = vmatpush3.bf16.msra.mxu0 %v8986_v22  ;;  %v1046_v30 = vand.u32 4294901760, %v899_v36  ;;  %v11108_v56 = vand.u32 4294901760, %v8988_v29  ;;  %v1105_v31 = vand.u32 4294901760, %v1104_v28 }
 0x15c   : > { %v8134_v58 = vpop.eup %8133  ;;  %v784_v40 = vpop.xlane.xlu0 %783  ;;  %v7467_v8 = vpack.c.bf16 %v1224_v0, %v1217_v18  ;;  %v8996_v62 = vsub.f32 %v865_v14, %v995_v63  ;;  %v901_v9 = vmul.f32 %v8132_v57, %v8783_v5  ;;  %v1230_v11 = vsub.f32 %v8978_v41, %v11107_v13 }
 0x15d   : > { %v835_v43 = vpop.xlane.xlu1 %834  ;;  %8143 = vrcp.f32 %v784_v40  ;;  %v8999_v34 = vpack.c.bf16 %v1046_v30, %v1043_v27  ;;  %v9001_v2 = vsub.f32 %v899_v36, %v1046_v30  ;;  %v867_v20 = vmul.f32 %v8134_v58, %v8785_v32 }
 0x15e   : > { %8145 = vrcp.f32 %v835_v43  ;;  %7468 = vmatprep.subr.bf16.mxu1 %v7467_v8  ;;  %938 = vxpose.xlu1.b32.cont [15/16] (narrow) %v586_v46, 8  ;;  %v1111_v1 = vsub.f32 %v8988_v29, %v11108_v56  ;;  %v1049_v49 = vand.u32 4294901760, %v901_v9  ;;  %v11103_v32 = vand.u32 4294901760, %v8996_v62 }
 0x15f   : > { %v8136_v5 = vpop.eup %8135  ;;  %7440 = vmatprep.subr.bf16.mxu0 %v8999_v34  ;;  %v998_v27 = vand.u32 4294901760, %v867_v20  ;;  %v11106_v26 = vand.u32 4294901760, %v9001_v2  ;;  %v1231_v18 = vand.u32 4294901760, %v1230_v11 }
 0x160   : > { %v8138_v55 = vpop.eup %8137  ;;  %v838_v14 = vpop.xlane.xlu0 %837  ;;  %v1112_v52 = vand.u32 4294901760, %v1111_v1  ;;  %v9015_v36 = vsub.f32 %v901_v9, %v1049_v49  ;;  %v869_v0 = vmul.f32 %v8136_v5, %v8793_v7  ;;  %v1118_v7 = vsub.f32 %v8996_v62, %v11103_v32 }
 0x161   : > { %v787_v28 = vpop.xlane.xlu1 %786  ;;  %8147 = vrcp.f32 %v838_v14  ;;  %v9018_v57 = vpack.c.bf16 %v998_v27, %v995_v63  ;;  %v9020_v30 = vsub.f32 %v867_v20, %v998_v27  ;;  %v903_v58 = vmul.f32 %v8138_v55, %v8795_v12 }
 0x162   : > { %8149 = vrcp.f32 %v787_v28  ;;  %v7469_v40 = vpack.c.bf16 %v1112_v52, %v1105_v31  ;;  %939 = vxpose.xlu1.b32.end [16/16] (narrow) %v587_v3, 8  ;;  %v1237_v43 = vsub.f32 %v9001_v2, %v11106_v26  ;;  %v1001_v8 = vand.u32 4294901760, %v869_v0 }
 0x163   : > { %v8140_v9 = vpop.eup %8139  ;;  %7442 = vmatpush3.bf16.msra.mxu0 %v9018_v57  ;;  %v1052_v1 = vand.u32 4294901760, %v903_v58  ;;  %v11100_v63 = vand.u32 4294901760, %v9020_v30  ;;  %v11099_v12 = vand.u32 4294901760, %v9015_v36 }
 0x164   : > { %v8142_v20 = vpop.eup %8141  ;;  %7470 = vmatpush3.bf16.msra.mxu1 %v7469_v40  ;;  %v790_v3 = vpop.xlane.xlu0 %789  ;;  %v1238_v11 = vand.u32 4294901760, %v1237_v43  ;;  %v9032_v5 = vsub.f32 %v869_v0, %v1001_v8  ;;  %v905_v27 = vmul.f32 %v8140_v9, %v8803_v10  ;;  %v1119_v40 = vand.u32 4294901760, %v1118_v7 }
 0x165   : > { %v841_v31 = vpop.xlane.xlu1 %840  ;;  %8151 = vrcp.f32 %v790_v3  ;;  %v9037_v14 = vpack.c.bf16 %v1052_v1, %v1049_v49  ;;  %v9039_v28 = vsub.f32 %v903_v58, %v1052_v1  ;;  %v871_v52 = vmul.f32 %v8142_v20, %v8805_v51 }
 0x166   : > { %8153 = vrcp.f32 %v841_v31  ;;  %v7471_v46 = vpack.c.bf16 %v1238_v11, %v1231_v18  ;;  %v1125_v0 = vsub.f32 %v9020_v30, %v11100_v63  ;;  %v1055_v9 = vand.u32 4294901760, %v905_v27 }
 0x167   : > { %v8144_v43 = vpop.eup %8143  ;;  %7444 = vmatprep.subr.bf16.mxu0 %v9037_v14  ;;  %v1004_v10 = vand.u32 4294901760, %v871_v52  ;;  %v1244_v49 = vsub.f32 %v9015_v36, %v11099_v12  ;;  %v11102_v58 = vand.u32 4294901760, %v9039_v28  ;;  %v11101_v3 = vand.u32 4294901760, %v9032_v5 }
 0x168   : > { %v8146_v1 = vpop.eup %8145  ;;  %7472 = vmatprep.subr.bf16.mxu1 %v7471_v46  ;;  %v844_v51 = vpop.xlane.xlu0 %843  ;;  %v1126_v7 = vand.u32 4294901760, %v1125_v0  ;;  %v873_v20 = vmul.f32 %v8144_v43, %v8813_v45  ;;  %v9059_v46 = vsub.f32 %v905_v27, %v1055_v9 }
 0x169   : > { %v793_v18 = vpop.xlane.xlu1 %792  ;;  %8155 = vrcp.f32 %v844_v51  ;;  %v9054_v11 = vpack.c.bf16 %v1004_v10, %v1001_v8  ;;  %v9056_v55 = vsub.f32 %v871_v52, %v1004_v10  ;;  %v907_v38 = vmul.f32 %v8146_v1, %v8815_v16 }
 0x16a   : > { %8157 = vrcp.f32 %v793_v18  ;;  %v7473_v12 = vpack.c.bf16 %v1126_v7, %v1119_v40  ;;  %v1245_v63 = vand.u32 4294901760, %v1244_v49  ;;  %v1251_v43 = vsub.f32 %v9039_v28, %v11102_v58 }
 0x16b   : > { %v8148_v0 = vpop.eup %8147  ;;  %7446 = vmatpush3.bf16.msra.mxu0 %v9054_v11  ;;  %v1058_v45 = vand.u32 4294901760, %v907_v38  ;;  %v1007_v51 = vand.u32 4294901760, %v873_v20  ;;  %v1132_v8 = vsub.f32 %v9032_v5, %v11101_v3  ;;  %v11105_v27 = vand.u32 4294901760, %v9056_v55 }
 0x16c   : > { %v8150_v52 = vpop.eup %8149  ;;  %7474 = vmatpush3.bf16.msra.mxu1 %v7473_v12  ;;  %v796_v16 = vpop.xlane.xlu0 %795  ;;  %v909_v10 = vmul.f32 %v8148_v0, %v8823_v37  ;;  %v11104_v49 = vand.u32 4294901760, %v9059_v46  ;;  %v1252_v31 = vand.u32 4294901760, %v1251_v43 }
 0x16d   : > { %v847_v40 = vpop.xlane.xlu1 %846  ;;  %8159 = vrcp.f32 %v796_v16  ;;  %v9073_v18 = vpack.c.bf16 %v1058_v45, %v1055_v9  ;;  %v9075_v7 = vsub.f32 %v907_v38, %v1058_v45  ;;  %v875_v12 = vmul.f32 %v8150_v52, %v8825_v61 }
 0x16e   : > { %8161 = vrcp.f32 %v847_v40  ;;  %v9078_v3 = vsub.f32 %v873_v20, %v1007_v51  ;;  %v1133_v58 = vand.u32 4294901760, %v1132_v8  ;;  %v7475_v37 = vpack.c.bf16 %v1252_v31, %v1245_v63 }
 0x16f   : > { %v8152_v32 = vpop.eup %8151  ;;  %7448 = vmatprep.subr.bf16.mxu0 %v9073_v18  ;;  %v1139_v0 = vsub.f32 %v9056_v55, %v11105_v27  ;;  %v1061_v16 = vand.u32 4294901760, %v909_v10  ;;  %v1258_v38 = vsub.f32 %v9059_v46, %v11104_v49  ;;  %v1010_v61 = vand.u32 4294901760, %v875_v12 }
 0x170   : > { %v8154_v9 = vpop.eup %8153  ;;  %v850_v45 = vpop.xlane.xlu0 %849  ;;  %v11110_v20 = vand.u32 4294901760, %v9075_v7  ;;  %v877_v8 = vmul.f32 %v8152_v32, %v8833_v24  ;;  %v11109_v52 = vand.u32 4294901760, %v9078_v3  ;;  %7476 = vmatprep.subr.bf16.mxu1 %v7475_v37 }
 0x171   : > { %v799_v43 = vpop.xlane.xlu1 %798  ;;  %8163 = vrcp.f32 %v850_v45  ;;  %v1140_v63 = vand.u32 4294901760, %v1139_v0  ;;  %v911_v31 = vmul.f32 %v8154_v9, %v8835_v21  ;;  %v9091_v40 = vsub.f32 %v909_v10, %v1061_v16 }
 0x172   : > { %8165 = vrcp.f32 %v799_v43  ;;  %v9093_v1 = vpack.c.bf16 %v1010_v61, %v1007_v51  ;;  %v9095_v49 = vsub.f32 %v875_v12, %v1010_v61  ;;  %v1259_v27 = vand.u32 4294901760, %v1258_v38 }
 0x173   : > { %v8156_v26 = vpop.eup %8155  ;;  %v7477_v13 = vpack.c.bf16 %v1140_v63, %v1133_v58  ;;  %v1064_v56 = vand.u32 4294901760, %v911_v31  ;;  %v1265_v24 = vsub.f32 %v9075_v7, %v11110_v20  ;;  %v1013_v32 = vand.u32 4294901760, %v877_v8 }
 0x174   : > { %v8158_v37 = vpop.eup %8157  ;;  %7450 = vmatpush3.bf16.msra.mxu0 %v9093_v1  ;;  %v802_v21 = vpop.xlane.xlu0 %801  ;;  %v1146_v51 = vsub.f32 %v9078_v3, %v11109_v52  ;;  %v11112_v12 = vand.u32 4294901760, %v9095_v49  ;;  %v913_v0 = vmul.f32 %v8156_v26, %v8843_v42  ;;  %v11111_v58 = vand.u32 4294901760, %v9091_v40 }
 0x175   : > { %v853_v10 = vpop.xlane.xlu1 %852  ;;  %7478 = vmatpush3.bf16.msra.mxu1 %v7477_v13  ;;  %8167 = vrcp.f32 %v802_v21  ;;  %v9107_v38 = vpack.c.bf16 %v1064_v56, %v1061_v16  ;;  %v9109_v9 = vsub.f32 %v911_v31, %v1064_v56  ;;  %v1266_v45 = vand.u32 4294901760, %v1265_v24 }
 0x176   : > { %8169 = vrcp.f32 %v853_v10  ;;  %v879_v43 = vmul.f32 %v8158_v37, %v8845_v59  ;;  %v9112_v61 = vsub.f32 %v877_v8, %v1013_v32  ;;  %v1147_v63 = vand.u32 4294901760, %v1146_v51 }
 0x177   : > { %v8160_v52 = vpop.eup %8159  ;;  %7452 = vmatprep.subr.bf16.mxu0 %v9107_v38  ;;  %v7479_v20 = vpack.c.bf16 %v1266_v45, %v1259_v27  ;;  %v1153_v42 = vsub.f32 %v9095_v49, %v11112_v12  ;;  %v1067_v13 = vand.u32 4294901760, %v913_v0  ;;  %v1272_v56 = vsub.f32 %v9091_v40, %v11111_v58 }
 0x178   : > { %v8162_v26 = vpop.eup %8161  ;;  %v856_v16 = vpop.xlane.xlu0 %855  ;;  %v1016_v59 = vand.u32 4294901760, %v879_v43  ;;  %v881_v24 = vmul.f32 %v8160_v52, %v8853_v33  ;;  %v11114_v37 = vand.u32 4294901760, %v9112_v61  ;;  %v11328_v33 = vand.u32 4294901760, %v9109_v9 }
 0x179   : > { %v805_v31 = vpop.xlane.xlu1 %804  ;;  %7480 = vmatprep.subr.bf16.mxu1 %v7479_v20  ;;  %8171 = vrcp.f32 %v856_v16  ;;  %v1154_v27 = vand.u32 4294901760, %v1153_v42  ;;  %v915_v21 = vmul.f32 %v8162_v26, %v8855_v23  ;;  %v9125_v10 = vsub.f32 %v913_v0, %v1067_v13 }
 0x17a   : > { %8173 = vrcp.f32 %v805_v31  ;;  %v9127_v51 = vpack.c.bf16 %v1016_v59, %v1013_v32  ;;  %v9129_v45 = vsub.f32 %v879_v43, %v1016_v59  ;;  %v1273_v58 = vand.u32 4294901760, %v1272_v56 }
 0x17b   : > { %v8164_v12 = vpop.eup %8163  ;;  %v7481_v44 = vpack.c.bf16 %v1154_v27, %v1147_v63  ;;  %v1070_v8 = vand.u32 4294901760, %v915_v21  ;;  %v1279_v52 = vsub.f32 %v9109_v9, %v11328_v33  ;;  %v1019_v20 = vand.u32 4294901760, %v881_v24 }
 0x17c   : > { %v8166_v16 = vpop.eup %8165  ;;  %7454 = vmatpush3.bf16.msra.mxu0 %v9127_v51  ;;  %v808_v23 = vpop.xlane.xlu0 %807  ;;  %v1160_v32 = vsub.f32 %v9112_v61, %v11114_v37  ;;  %v917_v42 = vmul.f32 %v8164_v12, %v8863_v48  ;;  %v11115_v63 = vand.u32 4294901760, %v9125_v10  ;;  %v11330_v48 = vand.u32 4294901760, %v9129_v45 }
 0x17d   : > { %v859_v0 = vpop.xlane.xlu1 %858  ;;  %7482 = vmatpush3.bf16.msra.mxu1 %v7481_v44  ;;  %8175 = vrcp.f32 %v808_v23  ;;  %v9141_v56 = vpack.c.bf16 %v1070_v8, %v1067_v13  ;;  %v9143_v26 = vsub.f32 %v915_v21, %v1070_v8  ;;  %v1280_v31 = vand.u32 4294901760, %v1279_v52 }
 0x17e   : > { %8177 = vrcp.f32 %v859_v0  ;;  %v883_v59 = vmul.f32 %v8166_v16, %v8865_v25  ;;  %v9146_v27 = vsub.f32 %v881_v24, %v1019_v20  ;;  %v1161_v33 = vand.u32 4294901760, %v1160_v32 }
 0x17f   : > { %11329 = vst [vmem:[#allocation3_spill] sm:$0xff] %v9141_v56  ;;  %v8168_v37 = vpop.eup %8167  ;;  %7456 = vmatprep.subr.bf16.mxu0 %v9141_v56  ;;  %v7483_v43 = vpack.c.bf16 %v1280_v31, %v1273_v58  ;;  %v1167_v44 = vsub.f32 %v9129_v45, %v11330_v48  ;;  %v1073_v12 = vand.u32 4294901760, %v917_v42  ;;  %v1286_v13 = vsub.f32 %v9125_v10, %v11115_v63 }
 0x180   : > { %v8170_v8 = vpop.eup %8169  ;;  %v1022_v52 = vand.u32 4294901760, %v883_v59  ;;  %v11116_v25 = vand.u32 4294901760, %v9143_v26  ;;  %v885_v24 = vmul.f32 %v8168_v37, %v8872_v19 }
 0x181   : > { %v811_v21 = vpop.xlane.xlu1 %810  ;;  %7484 = vmatprep.subr.bf16.mxu1 %v7483_v43  ;;  %v1168_v58 = vand.u32 4294901760, %v1167_v44  ;;  %v919_v23 = vmul.f32 %v8170_v8, %v8874_v54  ;;  %v9159_v0 = vsub.f32 %v917_v42, %v1073_v12  ;;  %v1287_v48 = vand.u32 4294901760, %v1286_v13 }
 0x182   : > { %8179 = vrcp.f32 %v811_v21  ;;  %v9161_v32 = vpack.c.bf16 %v1022_v52, %v1019_v20  ;;  %v9163_v31 = vsub.f32 %v883_v59, %v1022_v52  ;;  %v1293_v63 = vsub.f32 %v9143_v26, %v11116_v25 }
 0x183   : > { %v8172_v47 = vpop.eup %8171  ;;  %v7485_v19 = vpack.c.bf16 %v1168_v58, %v1161_v33  ;;  %v1076_v37 = vand.u32 4294901760, %v919_v23  ;;  %v1025_v16 = vand.u32 4294901760, %v885_v24  ;;  %v11332_v43 = vand.u32 4294901760, %v9146_v27 }
 0x184   : > { %11331 = vst [vmem:[#allocation8_spill] sm:$0xff] %v9161_v32  ;;  %v8174_v54 = vpop.eup %8173  ;;  %7458 = vmatpush3.bf16.msra.mxu0 %v9161_v32  ;;  %v1294_v20 = vand.u32 4294901760, %v1293_v63  ;;  %v11120_v42 = vand.u32 4294901760, %v9163_v31  ;;  %v921_v59 = vmul.f32 %v8172_v47, %v8880_v50  ;;  %v11119_v13 = vand.u32 4294901760, %v9159_v0 }
 0x185   : > { %v1174_v44 = vsub.f32 %v9146_v27, %v11332_v43  ;;  %7486 = vmatpush3.bf16.msra.mxu1 %v7485_v19  ;;  %v9175_v8 = vpack.c.bf16 %v1076_v37, %v1073_v12  ;;  %v9177_v33 = vsub.f32 %v919_v23, %v1076_v37  ;;  %v887_v21 = vmul.f32 %v8174_v54, %v8882_v6 }
 0x186   : > { %v9180_v52 = vsub.f32 %v885_v24, %v1025_v16  ;;  %v7487_v58 = vpack.c.bf16 %v1294_v20, %v1287_v48  ;;  %v1181_v63 = vsub.f32 %v9163_v31, %v11120_v42  ;;  %v1079_v25 = vand.u32 4294901760, %v921_v59 }
 0x187   : > { %11333 = vst [vmem:[#allocation4_spill] sm:$0xff] %v9175_v8  ;;  %v1175_v43 = vand.u32 4294901760, %v1174_v44  ;;  %v8176_v32 = vpop.eup %8175  ;;  %7460 = vmatprep.subr.bf16.mxu0 %v9175_v8  ;;  %v1028_v50 = vand.u32 4294901760, %v887_v21  ;;  %v1300_v47 = vsub.f32 %v9159_v0, %v11119_v13  ;;  %v11122_v12 = vand.u32 4294901760, %v9177_v33 }
 0x188   : > { %v11121_v6 = vand.u32 4294901760, %v9180_v52  ;;  %v8178_v24 = vpop.eup %8177  ;;  %7488 = vmatprep.subr.bf16.mxu1 %v7487_v58  ;;  %v1182_v23 = vand.u32 4294901760, %v1181_v63  ;;  %v9191_v48 = vsub.f32 %v921_v59, %v1079_v25  ;;  %v889_v19 = vmul.f32 %v8176_v32, %v8888_v17 }
 0x189   : > { %v9196_v44 = vpack.c.bf16 %v1028_v50, %v1025_v16  ;;  %v9198_v54 = vsub.f32 %v887_v21, %v1028_v50  ;;  %v923_v20 = vmul.f32 %v8178_v24, %v8890_v53  ;;  %v1307_v42 = vsub.f32 %v9177_v33, %v11122_v12 }
 0x18a   : > { %v7489_v13 = vpack.c.bf16 %v1182_v23, %v1175_v43  ;;  %v1031_v58 = vand.u32 4294901760, %v889_v19  ;;  %v1188_v59 = vsub.f32 %v9180_v52, %v11121_v6  ;;  %v1313_v21 = vand.u32 4294901760, %v9191_v48 }
 0x18b   : > { %11334 = vst [vmem:[#allocation9_spill] sm:$0xff] %v9196_v44  ;;  %7462 = vmatpush3.bf16.msra.mxu0 %v9196_v44  ;;  %v1082_v32 = vand.u32 4294901760, %v923_v20  ;;  %v1194_v16 = vand.u32 4294901760, %v9198_v54  ;;  %v1301_v43 = vand.u32 4294901760, %v1300_v47  ;;  %v1308_v63 = vand.u32 4294901760, %v1307_v42 }
 0x18c   : > { %v8180_v17 = vpop.eup %8179  ;;  %7490 = vmatpush3.bf16.msra.mxu1 %v7489_v13  ;;  %v9213_v24 = vsub.f32 %v889_v19, %v1031_v58  ;;  %v1314_v12 = vsub.f32 %v9191_v48, %v1313_v21  ;;  %v11341_v47 = vand.u32 4294901760, %v8996_v62  ;;  %v11348_v13 = vand.u32 4294901760, %v9056_v55 }
 0x18d   : > { %v891_v50 = vmul.f32 %v8180_v17, %v8896_v39  ;;  %v9215_v23 = vpack.c.bf16 %v1082_v32, %v1079_v25  ;;  %v9217_v37 = vsub.f32 %v923_v20, %v1082_v32  ;;  %v1195_v6 = vsub.f32 %v9198_v54, %v1194_v16 }
 0x18e   : > { %v7491_v44 = vpack.c.bf16 %v1308_v63, %v1301_v43  ;;  %v1201_v56 = vand.u32 4294901760, %v9213_v24  ;;  %v1189_v39 = vand.u32 4294901760, %v1188_v59  ;;  %v7499_v59 = vpack.c.bf16 %v8959_v15, %v8949_v35 }
 0x18f   : > { %v1034_v8 = vand.u32 4294901760, %v891_v50  ;;  %7464 = vmatprep.subr.bf16.mxu0 %v9215_v23  ;;  %v1196_v42 = vand.u32 4294901760, %v1195_v6  ;;  %v1320_v25 = vand.u32 4294901760, %v9217_v37  ;;  %v11335_v32 = vand.u32 4294901760, %v8961_v4 }
 0x190   : > { %7492 = vmatprep.subr.bf16.mxu1 %v7491_v44  ;;  %v1202_v17 = vsub.f32 %v9213_v24, %v1201_v56  ;;  %v1315_v44 = vand.u32 4294901760, %v1314_v12  ;;  %v11338_v35 = vand.u32 4294901760, %v8978_v41  ;;  %v11339_v15 = vand.u32 4294901760, %v9001_v2 }
 0x191   : > { %v9228_v19 = vpack.c.bf16 %v1034_v8, %v1031_v58  ;;  %v9230_v20 = vsub.f32 %v891_v50, %v1034_v8  ;;  %v7493_v43 = vpack.c.bf16 %v1196_v42, %v1189_v39  ;;  %v1321_v6 = vsub.f32 %v9217_v37, %v1320_v25 }
 0x192   : > { %v1203_v50 = vand.u32 4294901760, %v1202_v17  ;;  %v11336_v39 = vand.u32 4294901760, %v8988_v29  ;;  %v9252_v63 = vpack.c.bf16 %v11339_v15, %v11338_v35  ;;  %v11344_v17 = vand.u32 4294901760, %v9015_v36 }
 0x193   : > { %7466 = vmatpush3.bf16.msra.mxu0 %v9228_v19  ;;  %v1208_v8 = vand.u32 4294901760, %v9230_v20  ;;  %7494 = vmatpush3.bf16.msra.mxu1 %v7493_v43  ;;  %v1322_v58 = vand.u32 4294901760, %v1321_v6  ;;  %v11342_v43 = vand.u32 4294901760, %v9020_v30  ;;  %v11345_v6 = vand.u32 4294901760, %v9039_v28 }
 0x194   : > { %7500 = vmatprep.subr.bf16.mxu0 %v7499_v59  ;;  %v9246_v42 = vpack.c.bf16 %v11336_v39, %v11335_v32  ;;  %11340 = vst [vmem:[#allocation10_spill] sm:$0xff] %v9252_v63  ;;  %v11347_v39 = vand.u32 4294901760, %v9032_v5  ;;  %v11349_v53 = vand.u32 4294901760, %v9059_v46  ;;  %v11350_v63 = vand.u32 4294901760, %v9075_v7 }
 0x195   : > { %v1209_v12 = vsub.f32 %v9230_v20, %v1208_v8  ;;  %v9259_v59 = vpack.c.bf16 %v11342_v43, %v11341_v47  ;;  %v9265_v32 = vpack.c.bf16 %v11345_v6, %v11344_v17  ;;  %v7495_v15 = vpack.c.bf16 %v1322_v58, %v1315_v44 }
 0x196   : > { %11337 = vst [vmem:[#allocation5_spill] sm:$0xff] %v9246_v42  ;;  %v9271_v35 = vpack.c.bf16 %v11348_v13, %v11347_v39  ;;  %v9277_v42 = vpack.c.bf16 %v11350_v63, %v11349_v53  ;;  %v11352_v47 = vand.u32 4294901760, %v9078_v3  ;;  %v11353_v43 = vand.u32 4294901760, %v9095_v49 }
 0x197   : > { %11343 = vst [vmem:[#allocation6_spill] sm:$0xff] %v9259_v59  ;;  %11346 = vst [vmem:[#allocation11_spill] sm:$0xff] %v9265_v32  ;;  %v11355_v17 = vand.u32 4294901760, %v9091_v40  ;;  %v11356_v6 = vand.u32 4294901760, %v9109_v9  ;;  %v1210_v13 = vand.u32 4294901760, %v1209_v12  ;;  %v11357_v44 = vand.u32 4294901760, %v9112_v61  ;;  %7496 = vmatprep.subr.bf16.mxu1 %v7495_v15 }
 0x198   : > { %11351 = vst [vmem:[#allocation17_spill] sm:$0xff] %v9277_v42  ;;  %v9283_v59 = vpack.c.bf16 %v11353_v43, %v11352_v47  ;;  %v11358_v58 = vand.u32 4294901760, %v9129_v45  ;;  %v11360_v53 = vand.u32 4294901760, %v9125_v10  ;;  %v11361_v63 = vand.u32 4294901760, %v9143_v26 }
 0x199   : > { %v9289_v32 = vpack.c.bf16 %v11356_v6, %v11355_v17  ;;  %v11363_v47 = vand.u32 4294901760, %v9146_v27  ;;  %v11364_v43 = vand.u32 4294901760, %v9163_v31  ;;  %v11366_v12 = vand.u32 4294901760, %v9159_v0 }
 0x19a   : > { %11354 = vst [vmem:[#allocation12_spill] sm:$0xff] %v9283_v59  ;;  %v9295_v39 = vpack.c.bf16 %v11358_v58, %v11357_v44  ;;  %v9301_v42 = vpack.c.bf16 %v11361_v63, %v11360_v53  ;;  %v11367_v17 = vand.u32 4294901760, %v9177_v33  ;;  %v11369_v44 = vand.u32 4294901760, %v9180_v52 }
 0x19b   : > { %v9307_v59 = vpack.c.bf16 %v11364_v43, %v11363_v47  ;;  %v9321_v53 = vpack.c.bf16 %v1208_v8, %v1201_v56  ;;  %v7497_v63 = vpack.c.bf16 %v1210_v13, %v1203_v50  ;;  %v11370_v8 = vpack.c.bf16 %v8988_v29, %v8961_v4  ;;  %v11376_v29 = vld [vmem:[#allocation3_spill] sm:$0xff] }
 0x19c   : > { %11359 = vst [vmem:[#allocation18_spill] sm:$0xff] %v9295_v39  ;;  %11362 = vst [vmem:[#allocation13_spill] sm:$0xff] %v9301_v42  ;;  %v9313_v6 = vpack.c.bf16 %v11367_v17, %v11366_v12  ;;  %v9317_v58 = vpack.c.bf16 %v1194_v16, %v11369_v44  ;;  %v9319_v39 = vpack.c.bf16 %v1320_v25, %v1313_v21  ;;  %v972_v47 = vpop.trf.xlu0 }
 0x19d   : > { %11365 = vst [vmem:[#allocation14_spill] sm:$0xff] %v9307_v59  ;;  %7498 = vmatpush3.bf16.msra.mxu1 %v7497_v63  ;;  %v1084_v15 = vand.u32 4294901760, %v972_v47  ;;  %v11371_v50 = vpack.c.bf16 %v9001_v2, %v8978_v41  ;;  %v11374_v4 = vpack.c.bf16 %v9056_v55, %v9032_v5  ;;  %v11375_v41 = vpack.c.bf16 %v9075_v7, %v9059_v46  ;;  %v11378_v2 = vld [vmem:[#allocation8_spill] sm:$0xff]  ;;  %v11382_v55 = vld [vmem:[#allocation9_spill] sm:$0xff] }
 0x19e   : > { %11368 = vst [vmem:[#allocation2_spill] sm:$0xff] %v9313_v6  ;;  %7532 = vmatprep.subr.bf16.mxu1 %v8957_v60  ;;  %v11381_v5 = vpack.c.bf16 %v9129_v45, %v9112_v61  ;;  %v11384_v46 = vpack.c.bf16 %v9163_v31, %v9146_v27  ;;  %v7527_v7 = vpack.c.bf16 %v9217_v37, %v9191_v48  ;;  %v11389_v61 = vld [vmem:[#allocation11_spill] sm:$0xff]  ;;  %v272_v45 = vld [vmem:[%s9422_s29] sm:$0xff] }
 0x19f   : > { %v1085_v43 = vsub.f32 %v972_v47, %v1084_v15  ;;  %1325 = vmatprep.mubr.f32.mxu1 %v1084_v15  ;;  %v1851_v27 = vsel %vm336_vm0, %v272_v45, 0  ;;  %v273_v47 = vld [vmem:[%s9422_s29 + $0x8] sm:$0xff] }
 0x1a1   : > { %v1086_v59 = vand.u32 4294901760, %v1085_v43 }
 0x1a3   : > { %v1087_v42 = vsub.f32 %v1085_v43, %v1086_v59 }
 0x1a5   : > { %v1088_v12 = vand.u32 4294901760, %v1087_v42  ;;  %v11372_v42 = vpack.c.bf16 %v9020_v30, %v8996_v62  ;;  %v11377_v62 = vpack.c.bf16 %v9095_v49, %v9078_v3  ;;  %v11380_v30 = vld [vmem:[#allocation4_spill] sm:$0xff]  ;;  %v7523_v3 = vpack.c.bf16 %v9177_v33, %v9159_v0 }
 0x1a6   : > { %v940_v17 = vpop.trf.xlu1  ;;  %v7525_v49 = vpack.c.bf16 %v9198_v54, %v9180_v52  ;;  %v9435_v0 = vand.u32 4294901760, %v1851_v27 }
 0x1a7   : > { %v9324_v6 = vand.u32 4294901760, %v940_v17  ;;  %1089 = vmatprep.mubr.f32.mxu0 %v1088_v12 }
 0x1a8   : > { %v9439_v31 = vsub.f32 %v1851_v27, %v9435_v0 }
 0x1a9   : > { %v1091_v16 = vsub.f32 %v940_v17, %v9324_v6  ;;  %1327 = vmatmul.mubr.f32.vlgmr.msra.gmra.mrb[0].mxu1 %v9324_v6  ;;  %v275_v17 = vld [vmem:[%s9422_s29 + $0x18] sm:$0xff] }
 0x1aa   : > { %7534 = vmatpush3.bf16.msra.mxu1 %v8986_v22  ;;  %1569 = vmatprep.mubr.f32.mxu1 %v1086_v59  ;;  %v11373_v59 = vpack.c.bf16 %v9039_v28, %v9015_v36  ;;  %v11379_v36 = vpack.c.bf16 %v9109_v9, %v9091_v40  ;;  %v11383_v28 = vpack.c.bf16 %v9143_v26, %v9125_v10  ;;  %v11386_v9 = vld [vmem:[#allocation5_spill] sm:$0xff]  ;;  %v3729_v10 = vld [vmem:[%s11067_s2] sm:$0xf]  ;;  %v11143_v33 = vand.u32 4294901760, %v9439_v31 }
 0x1ab   : > { %v1092_v56 = vand.u32 4294901760, %v1091_v16  ;;  %7536 = vmatprep.subr.bf16.mxu1 %v8999_v34  ;;  %v7529_v40 = vpack.c.bf16 %v9230_v20, %v9213_v24 }
 0x1ac   : > { %v2019_v52 = vsub.f32 %v9439_v31, %v11143_v33 }
 0x1ad   : > { %v1093_v21 = vsub.f32 %v1091_v16, %v1092_v56 }
 0x1ae   : > { %7538 = vmatpush3.bf16.msra.mxu1 %v9018_v57  ;;  %v2020_v48 = vand.u32 4294901760, %v2019_v52 }
 0x1af   : > { %7540 = vmatprep.subr.bf16.mxu1 %v9037_v14  ;;  %v1094_v25 = vand.u32 4294901760, %v1093_v21 }
 0x1b1   : > { %1095 = vmatmul.mubr.f32.vlgmr.msra.gmra.mrb[0].mxu0 %v1094_v25 }
 0x1b2   : > { %7502 = vmatpush3.bf16.msra.mxu0 %v11370_v8  ;;  %7542 = vmatpush3.bf16.msra.mxu1 %v9054_v11  ;;  %v1860_v8 = vsel %vm336_vm0, %v275_v17, 0  ;;  %v285_v17 = vld [vmem:[%s9422_s29 + $0x68] sm:$0xff] }
 0x1b3   : > { %7504 = vmatprep.subr.bf16.mxu0 %v11371_v50  ;;  %1462 = vmatprep.mubr.f32.mxu0 %v1085_v43  ;;  %v1854_v43 = vsel %vm336_vm0, %v273_v47, 0  ;;  %v277_v50 = vld [vmem:[%s9422_s29 + $0x28] sm:$0xff] }
 0x1b4   : > { %7544 = vmatprep.subr.bf16.mxu1 %v9073_v18  ;;  %v9452_v21 = vand.u32 4294901760, %v1854_v43 }
 0x1b6   : > { %7506 = vmatpush3.bf16.msra.mxu0 %v11372_v42  ;;  %7546 = vmatpush3.bf16.msra.mxu1 %v9093_v1 }
 0x1b7   : > { %7508 = vmatprep.subr.bf16.mxu0 %v11373_v59  ;;  %7548 = vmatprep.subr.bf16.mxu1 %v9107_v38 }
 0x1ba   : > { %7510 = vmatpush3.bf16.msra.mxu0 %v11374_v4  ;;  %7550 = vmatpush3.bf16.msra.mxu1 %v9127_v51 }
 0x1bb   : > { %7512 = vmatprep.subr.bf16.mxu0 %v11375_v41  ;;  %7552 = vmatprep.subr.bf16.mxu1 %v11376_v29  ;;  %v9459_v41 = vand.u32 4294901760, %v1860_v8 }
 0x1be   : > { %7514 = vmatpush3.bf16.msra.mxu0 %v11377_v62  ;;  %7554 = vmatpush3.bf16.msra.mxu1 %v11378_v2  ;;  %v278_v62 = vld [vmem:[%s9422_s29 + $0x30] sm:$0xff] }
 0x1bf   : > { %7516 = vmatprep.subr.bf16.mxu0 %v11379_v36  ;;  %7556 = vmatprep.subr.bf16.mxu1 %v11380_v30 }
 0x1c2   : > { %7518 = vmatpush3.bf16.msra.mxu0 %v11381_v5  ;;  %7558 = vmatpush3.bf16.msra.mxu1 %v11382_v55  ;;  %v279_v5 = vld [vmem:[%s9422_s29 + $0x38] sm:$0xff] }
 0x1c3   : > { %7520 = vmatprep.subr.bf16.mxu0 %v11383_v28  ;;  %7560 = vmatprep.subr.bf16.mxu1 %v9215_v23  ;;  %v1869_v28 = vsel %vm336_vm0, %v278_v62, 0 }
 0x1c6   : > { %7522 = vmatpush3.bf16.msra.mxu0 %v11384_v46  ;;  %7562 = vmatpush3.bf16.msra.mxu1 %v9228_v19  ;;  %v9476_v46 = vsub.f32 %v1860_v8, %v9459_v41 }
 0x1c7   : > { %7524 = vmatprep.subr.bf16.mxu0 %v7523_v3  ;;  %7596 = vmatprep.subr.bf16.mxu1 %v8957_v60  ;;  %v11385_v60 = vld [vmem:[#allocation7_spill] sm:$0xff] }
 0x1c9   : > { %1573 = vmatmul.mubr.f32.vlgmr.msra.gmra.mrb[2].mxu1 %v1092_v56 }
 0x1ca   : > { %7526 = vmatpush3.bf16.msra.mxu0 %v7525_v49  ;;  %7598 = vmatpush3.bf16.msra.mxu1 %v8986_v22  ;;  %v11387_v22 = vld [vmem:[#allocation10_spill] sm:$0xff] }
 0x1cb   : > { %1843 = vmatprep.mubr.f32.mxu1 %v1084_v15  ;;  %7528 = vmatprep.subr.bf16.mxu0 %v7527_v7  ;;  %v280_v49 = vld [vmem:[%s9422_s29 + $0x40] sm:$0xff] }
 0x1cc   : > { %7600 = vmatprep.subr.bf16.mxu1 %v8999_v34  ;;  %v11388_v34 = vld [vmem:[#allocation6_spill] sm:$0xff] }
 0x1ce   : > { %7530 = vmatpush3.bf16.msra.mxu0 %v7529_v40  ;;  %7602 = vmatpush3.bf16.msra.mxu1 %v9018_v57  ;;  %v11390_v57 = vld [vmem:[#allocation17_spill] sm:$0xff] }
 0x1cf   : > { %7564 = vmatprep.subr.bf16.mxu0 %v11385_v60  ;;  %7604 = vmatprep.subr.bf16.mxu1 %v9037_v14  ;;  %v11391_v14 = vld [vmem:[#allocation12_spill] sm:$0xff] }
 0x1d1   : > { %1465 = vmatmul.mubr.f32.vlgmr.msra.gmra.mrb[2].mxu0 %v1091_v16  ;;  %v276_v16 = vld [vmem:[%s9422_s29 + $0x20] sm:$0xff] }
 0x1d2   : > { %7566 = vmatpush3.bf16.msra.mxu0 %v11386_v9  ;;  %1739 = vmatprep.mubr.f32.mxu0 %v1084_v15  ;;  %v274_v15 = vld [vmem:[%s9422_s29 + $0x10] sm:$0xff]  ;;  %v1863_v59 = vsel %vm336_vm0, %v276_v16, 0 }
 0x1d3   : > { %7606 = vmatpush3.bf16.msra.mxu1 %v9054_v11  ;;  %7568 = vmatprep.subr.bf16.mxu0 %v11387_v22  ;;  %v11392_v11 = vld [vmem:[#allocation18_spill] sm:$0xff]  ;;  %v1857_v12 = vsel %vm336_vm0, %v274_v15, 0  ;;  %v1872_v22 = vsel %vm336_vm0, %v279_v5, 0  ;;  %v286_v16 = vld [vmem:[%s9422_s29 + $0x70] sm:$0xff] }
 0x1d4   : > { %7608 = vmatprep.subr.bf16.mxu1 %v9073_v18  ;;  %v11394_v18 = vld [vmem:[#allocation14_spill] sm:$0xff]  ;;  %v9454_v25 = vand.u32 4294901760, %v1857_v12 }
 0x1d6   : > { %7570 = vmatpush3.bf16.msra.mxu0 %v11388_v34  ;;  %v9467_v36 = vsub.f32 %v1857_v12, %v9454_v25 }
 0x1d7   : > { %7610 = vmatpush3.bf16.msra.mxu1 %v9093_v1  ;;  %7572 = vmatprep.subr.bf16.mxu0 %v11389_v61  ;;  %v11393_v1 = vld [vmem:[#allocation13_spill] sm:$0xff]  ;;  %v9485_v61 = vand.u32 4294901760, %v1869_v28 }
 0x1d8   : > { %7612 = vmatprep.subr.bf16.mxu1 %v9107_v38  ;;  %v11395_v38 = vld [vmem:[#allocation2_spill] sm:$0xff]  ;;  %v11140_v60 = vand.u32 4294901760, %v9467_v36 }
 0x1da   : > { %7574 = vmatpush3.bf16.msra.mxu0 %v9271_v35  ;;  %v2039_v27 = vsub.f32 %v9467_v36, %v11140_v60 }
 0x1db   : > { %7614 = vmatpush3.bf16.msra.mxu1 %v9127_v51  ;;  %7576 = vmatprep.subr.bf16.mxu0 %v11390_v57  ;;  %v9428_v51 = vsel %vm1946_vm1, %v3729_v10, 0  ;;  %v281_v57 = vld [vmem:[%s9422_s29 + $0x48] sm:$0xff]  ;;  %v9494_v10 = vand.u32 4294901760, %v1872_v22 }
 0x1dc   : > { %7616 = vmatprep.subr.bf16.mxu1 %v11376_v29  ;;  %11396 = vst [vmem:[#allocation15_spill] sm:$0xff] %v9428_v51  ;;  %v9432_v26 = vand.u32 4294901760, %v9428_v51  ;;  %v1866_v29 = vsel %vm336_vm0, %v277_v50, 0  ;;  %v2040_v47 = vand.u32 4294901760, %v2039_v27 }
 0x1de   : > { %7578 = vmatpush3.bf16.msra.mxu0 %v11391_v14  ;;  %11397 = vst [vmem:[#allocation16_spill] sm:$0xff] %v9432_v26 }
 0x1df   : > { %7618 = vmatpush3.bf16.msra.mxu1 %v11378_v2  ;;  %7580 = vmatprep.subr.bf16.mxu0 %v9289_v32  ;;  %v9464_v2 = vsub.f32 %v1854_v43, %v9452_v21 }
 0x1e0   : > { %7620 = vmatprep.subr.bf16.mxu1 %v11380_v30  ;;  %v9469_v30 = vand.u32 4294901760, %v1863_v59 }
 0x1e1   : > { %v11142_v40 = vand.u32 4294901760, %v9464_v2 }
 0x1e2   : > { %7582 = vmatpush3.bf16.msra.mxu0 %v11392_v11  ;;  %v9482_v9 = vsub.f32 %v1863_v59, %v9469_v30  ;;  %v1875_v11 = vsel %vm336_vm0, %v280_v49, 0 }
 0x1e3   : > { %7622 = vmatpush3.bf16.msra.mxu1 %v11382_v55  ;;  %7584 = vmatprep.subr.bf16.mxu0 %v11393_v1  ;;  %v9472_v55 = vand.u32 4294901760, %v1866_v29  ;;  %v282_v1 = vld [vmem:[%s9422_s29 + $0x50] sm:$0xff]  ;;  %v2029_v45 = vsub.f32 %v9464_v2, %v11142_v40  ;;  %v295_v40 = vld [vmem:[%s9422_s29 + $0xb8] sm:$0xff] }
 0x1e4   : > { %7624 = vmatprep.subr.bf16.mxu1 %v9215_v23  ;;  %v11136_v52 = vand.u32 4294901760, %v9482_v9 }
 0x1e5   : > { %v9489_v14 = vsub.f32 %v1866_v29, %v9472_v55 }
 0x1e6   : > { %7586 = vmatpush3.bf16.msra.mxu0 %v11394_v18  ;;  %v2059_v15 = vsub.f32 %v9482_v9, %v11136_v52  ;;  %v294_v52 = vld [vmem:[%s9422_s29 + $0xb0] sm:$0xff] }
 0x1e7   : > { %7626 = vmatpush3.bf16.msra.mxu1 %v9228_v19  ;;  %7588 = vmatprep.subr.bf16.mxu0 %v11395_v38  ;;  %v11138_v38 = vand.u32 4294901760, %v9476_v46 }
 0x1e8   : > { %7135 = vmatprep.subr.mxu1 %v9432_v26  ;;  %v2060_v49 = vand.u32 4294901760, %v2059_v15  ;;  %v289_v15 = vld [vmem:[%s9422_s29 + $0x88] sm:$0xff] }
 0x1ea   : > { %1845 = vmatmul.mubr.f32.vlgmr.msra.gmra.mrb[4].mxu1 %v9324_v6  ;;  %7590 = vmatpush3.bf16.msra.mxu0 %v9317_v58 }
 0x1eb   : > { %7592 = vmatprep.subr.bf16.mxu0 %v9319_v39  ;;  %7136 = vmatpush3.msra.mxu1 %v9432_v26 }
 0x1ee   : > { %7594 = vmatpush3.bf16.msra.mxu0 %v9321_v53 }
 0x1f1   : > { %1741 = vmatmul.mubr.f32.vlgmr.msra.gmra.mrb[4].mxu0 %v9324_v6 }
 0x1f2   : > { %6837 = vmatprep.mubr.f32.mxu0 %v2020_v48  ;;  %v1878_v48 = vsel %vm336_vm0, %v281_v57, 0  ;;  %v287_v57 = vld [vmem:[%s9422_s29 + $0x78] sm:$0xff] }
 0x27c   : > { %v6296_v37 = vpop.f32.mrb[0].mxu1 }
 0x27d   : > { %v6297_v54 = vpop.f32.mrb[1].mxu1 }
 0x27e   : > { %v6298_v24 = vadd.f32 %v6297_v54, %v6296_v37  ;;  %v9505_v54 = vsub.f32 %v1869_v28, %v9485_v61  ;;  %v1890_v28 = vsel %vm336_vm0, %v285_v17, 0 }
 0x27f   : > { %v9574_v27 = vand.u32 4294901760, %v1890_v28 }
 0x280   : > { %v11134_v43 = vand.u32 4294901760, %v9505_v54 }
 0x284   : > { %v6261_v23 = vpop.f32.mrb[0].mxu0 }
 0x285   : > { %v6262_v19 = vpop.f32.mrb[1].mxu0 }
 0x286   : > { %v6263_v20 = vadd.f32 %v6262_v19, %v6261_v23  ;;  %v1881_v23 = vsel %vm336_vm0, %v282_v1, 0  ;;  %v283_v19 = vld [vmem:[%s9422_s29 + $0x58] sm:$0xff] }
 0x288   : > { %v1329_v32 = vadd.f32 %v6298_v24, %v6263_v20  ;;  %v9507_v24 = vand.u32 4294901760, %v1875_v11  ;;  %v11135_v20 = vand.u32 4294901760, %v9489_v14 }
 0x28a   : > { %v9532_v12 = vsub.f32 %v1875_v11, %v9507_v24  ;;  %v2069_v8 = vsub.f32 %v9489_v14, %v11135_v20 }
 0x28c   : > { %v2070_v1 = vand.u32 4294901760, %v2069_v8 }
 0x29c   : > { %v6366_v35 = vpop.f32.mrb[2].mxu1 }
 0x29d   : > { %v6367_v13 = vpop.f32.mrb[3].mxu1 }
 0x29e   : > { %v6368_v39 = vadd.f32 %v6367_v13, %v6366_v35  ;;  %v2049_v35 = vsub.f32 %v9476_v46, %v11138_v38  ;;  %v9517_v13 = vsub.f32 %v1872_v22, %v9494_v10  ;;  %v11131_v22 = vand.u32 4294901760, %v9532_v12 }
 0x2a0   : > { %v11132_v59 = vand.u32 4294901760, %v9517_v13 }
 0x2a4   : > { %v6331_v6 = vpop.f32.mrb[2].mxu0 }
 0x2a5   : > { %v6332_v44 = vpop.f32.mrb[3].mxu0 }
 0x2a6   : > { %v6333_v58 = vadd.f32 %v6332_v44, %v6331_v6  ;;  %v284_v6 = vld [vmem:[%s9422_s29 + $0x60] sm:$0xff] }
 0x2a7   : > { %v1887_v50 = vsel %vm336_vm0, %v284_v6, 0 }
 0x2a8   : > { %v1467_v53 = vadd.f32 %v6333_v58, %v1329_v32  ;;  %v2030_v58 = vand.u32 4294901760, %v2029_v45 }
 0x2aa   : > { %v1575_v63 = vadd.f32 %v6368_v39, %v1467_v53  ;;  %v9519_v39 = vand.u32 4294901760, %v1878_v48  ;;  %v9524_v53 = vand.u32 4294901760, %v1881_v23 }
 0x2ac   : > { %v9555_v5 = vsub.f32 %v1881_v23, %v9524_v53 }
 0x2ae   : > { %11399 = vst [vmem:[#allocation8_spill] sm:$0xff] %v9555_v5 }
 0x2bd   : > { %v6436_v56 = vpop.f32.mrb[4].mxu1 }
 0x2be   : > { %v6437_v42 = vpop.f32.mrb[5].mxu1 }
 0x2bf   : > { %v6438_v4 = vadd.f32 %v6437_v42, %v6436_v56  ;;  %v2050_v42 = vand.u32 4294901760, %v2049_v35  ;;  %v1896_v35 = vsel %vm336_vm0, %v287_v57, 0 }
 0x2c4   : > { %v6401_v3 = vpop.f32.mrb[4].mxu0 }
 0x2c5   : > { %v6402_v7 = vpop.f32.mrb[5].mxu0 }
 0x2c6   : > { %v6403_v34 = vadd.f32 %v6402_v7, %v6401_v3  ;;  %v1893_v3 = vsel %vm336_vm0, %v286_v16, 0  ;;  %v2079_v7 = vsub.f32 %v9505_v54, %v11134_v43  ;;  %v9592_v16 = vsub.f32 %v1890_v28, %v9574_v27 }
 0x2c8   : > { %v1743_v18 = vadd.f32 %v6403_v34, %v1575_v63  ;;  %v1884_v63 = vsel %vm336_vm0, %v283_v19, 0  ;;  %v9563_v34 = vand.u32 4294901760, %v1887_v50  ;;  %v2080_v6 = vand.u32 4294901760, %v2079_v7  ;;  %11402 = vst [vmem:[#allocation7_spill] sm:$0xff] %v9592_v16 }
 0x2c9   : > { %v9549_v29 = vand.u32 4294901760, %v1884_v63 }
 0x2ca   : > { %v1847_v37 = vadd.f32 %v6438_v4, %v1743_v18  ;;  %v9547_v4 = vsub.f32 %v1878_v48, %v9519_v39  ;;  %v2089_v18 = vsub.f32 %v9517_v13, %v11132_v59  ;;  %v9576_v48 = vand.u32 4294901760, %v1893_v3 }
 0x2cb   : > { %v9572_v45 = vsub.f32 %v1884_v63, %v9549_v29  ;;  %v9586_v63 = vsub.f32 %v1887_v50, %v9563_v34 }
 0x2cc   : > { %v1948_v32 = vsel %vm1946_vm1, %v1847_v37, 0  ;;  %11398 = vst [vmem:[#allocation3_spill] sm:$0xff] %v9547_v4  ;;  %v288_v37 = vld [vmem:[%s9422_s29 + $0x80] sm:$0xff]  ;;  %v11129_v19 = vand.u32 4294901760, %v9547_v4  ;;  %v9595_v8 = vsub.f32 %v1893_v3, %v9576_v48  ;;  %v2090_v50 = vand.u32 4294901760, %v2089_v18  ;;  %v291_v18 = vld [vmem:[%s9422_s29 + $0x98] sm:$0xff] }
 0x2cd   : > { %v9522_v44 = vand.u32 4294901760, %v1948_v32  ;;  %11400 = vst [vmem:[#allocation4_spill] sm:$0xff] %v9572_v45  ;;  %11401 = vst [vmem:[#allocation9_spill] sm:$0xff] %v9586_v63  ;;  %v11133_v17 = vand.u32 4294901760, %v9572_v45  ;;  %v11137_v3 = vand.u32 4294901760, %v9586_v63  ;;  %v1908_v20 = vsel %vm336_vm0, %v291_v18, 0 }
 0x2ce   : > { %11403 = vst [vmem:[#allocation5_spill] sm:$0xff] %v9595_v8  ;;  %v2109_v7 = vsub.f32 %v9547_v4, %v11129_v19  ;;  %v11139_v19 = vand.u32 4294901760, %v9592_v16 }
 0x2cf   : > { %v9537_v56 = vsub.f32 %v1948_v32, %v9522_v44  ;;  %6835 = vmatprep.subr.mxu0 %v9522_v44  ;;  %v11130_v32 = vand.u32 4294901760, %v9555_v5 }
 0x2d0   : > { %6836 = vmatpush3.msra.mxu0 %v9522_v44 }
 0x2d1   : > { %6838 = vmatmul.mubr.f32.vlgmr.msra.gmra.mrb[6].mxu0 %v2030_v58  ;;  %v9552_v62 = vand.u32 4294901760, %v9537_v56  ;;  %v2099_v58 = vsub.f32 %v9532_v12, %v11131_v22  ;;  %v2119_v28 = vsub.f32 %v9555_v5, %v11130_v32  ;;  %v292_v32 = vld [vmem:[%s9422_s29 + $0xa0] sm:$0xff]  ;;  %v2110_v22 = vand.u32 4294901760, %v2109_v7 }
 0x2d2   : > { %6840 = vmatprep.mubr.f32.mxu0 %v2040_v47  ;;  %v1899_v47 = vsel %vm336_vm0, %v288_v37, 0 }
 0x2d3   : > { %v2340_v11 = vsub.f32 %v9537_v56, %v9552_v62  ;;  %v2100_v57 = vand.u32 4294901760, %v2099_v58 }
 0x2d5   : > { %6841 = vmatmul.mubr.f32.gmra.mrb[8].mxu0 %v2050_v42  ;;  %v2341_v23 = vand.u32 4294901760, %v2340_v11  ;;  %v9597_v42 = vand.u32 4294901760, %v1896_v35  ;;  %v9608_v11 = vand.u32 4294901760, %v1899_v47 }
 0x2d6   : > { %6843 = vmatprep.mubr.f32.mxu0 %v2060_v49  ;;  %v290_v49 = vld [vmem:[%s9422_s29 + $0x90] sm:$0xff] }
 0x2d7   : > { %6885 = vmatprep.subr.mxu0 %v2341_v23  ;;  %v1905_v37 = vsel %vm336_vm0, %v290_v49, 0  ;;  %v9619_v58 = vsub.f32 %v1896_v35, %v9597_v42  ;;  %v2139_v49 = vsub.f32 %v9586_v63, %v11137_v3  ;;  %v293_v35 = vld [vmem:[%s9422_s29 + $0xa8] sm:$0xff]  ;;  %v9646_v3 = vand.u32 4294901760, %v1908_v20 }
 0x2d8   : > { %6886 = vmatpush3.msra.mxu0 %v2341_v23  ;;  %v2129_v23 = vsub.f32 %v9572_v45, %v11133_v17  ;;  %v9628_v17 = vsub.f32 %v1899_v47, %v9608_v11  ;;  %v9630_v43 = vand.u32 4294901760, %v1905_v37  ;;  %v301_v63 = vld [vmem:[%s9422_s29 + $0xe8] sm:$0xff]  ;;  %v302_v45 = vld [vmem:[%s9422_s29 + $0xf0] sm:$0xff] }
 0x2d9   : > { %6844 = vmatmul.mubr.f32.gmra.mrb[10].mxu0 %v2070_v1  ;;  %6935 = vmatprep.subr.mxu0 %v9537_v56  ;;  %v1902_v1 = vsel %vm336_vm0, %v289_v15, 0  ;;  %11404 = vst [vmem:[#allocation10_spill] sm:$0xff] %v9619_v58  ;;  %v2120_v15 = vand.u32 4294901760, %v2119_v28  ;;  %v2149_v28 = vsub.f32 %v9592_v16, %v11139_v19  ;;  %v2140_v38 = vand.u32 4294901760, %v2139_v49 }
 0x2da   : > { %6846 = vmatprep.mubr.f32.mxu0 %v2080_v6  ;;  %v11141_v6 = vand.u32 4294901760, %v9595_v8  ;;  %v9622_v59 = vand.u32 4294901760, %v1902_v1  ;;  %11405 = vst [vmem:[#allocation6_spill] sm:$0xff] %v9628_v17  ;;  %v2130_v7 = vand.u32 4294901760, %v2129_v23  ;;  %v1917_v23 = vsel %vm336_vm0, %v294_v52, 0 }
 0x2db   : > { %v9652_v60 = vsub.f32 %v1905_v37, %v9630_v43  ;;  %v9663_v52 = vand.u32 4294901760, %v1917_v23  ;;  %v9667_v49 = vsub.f32 %v1908_v20, %v9646_v3  ;;  %v1920_v19 = vsel %vm336_vm0, %v295_v40, 0 }
 0x2dc   : > { %v2159_v47 = vsub.f32 %v9595_v8, %v11141_v6  ;;  %v9644_v18 = vsub.f32 %v1902_v1, %v9622_v59  ;;  %v2150_v1 = vand.u32 4294901760, %v2149_v28  ;;  %v11409_v28 = vand.u32 4294901760, %v9628_v17 }
 0x2dd   : > { %6847 = vmatmul.mubr.f32.gmra.mrb[12].mxu0 %v2090_v50  ;;  %v1911_v50 = vsel %vm336_vm0, %v292_v32, 0  ;;  %v1914_v32 = vsel %vm336_vm0, %v293_v35, 0  ;;  %11407 = vst [vmem:[#allocation17_spill] sm:$0xff] %v9652_v60  ;;  %11408 = vst [vmem:[#allocation12_spill] sm:$0xff] %v9667_v49  ;;  %v9683_v20 = vsub.f32 %v1917_v23, %v9663_v52  ;;  %v9685_v40 = vand.u32 4294901760, %v1920_v19 }
 0x2de   : > { %6849 = vmatprep.mubr.f32.mxu0 %v2100_v57  ;;  %v11145_v57 = vand.u32 4294901760, %v9619_v58  ;;  %11406 = vst [vmem:[#allocation11_spill] sm:$0xff] %v9644_v18  ;;  %v9654_v6 = vand.u32 4294901760, %v1911_v50  ;;  %v9661_v35 = vand.u32 4294901760, %v1914_v32  ;;  %v2179_v51 = vsub.f32 %v9628_v17, %v11409_v28 }
 0x2df   : > { %11412 = vst [vmem:[#allocation14_spill] sm:$0xff] %v9683_v20 }
 0x2e0   : > { %v2169_v33 = vsub.f32 %v9619_v58, %v11145_v57  ;;  %v9675_v26 = vsub.f32 %v1911_v50, %v9654_v6  ;;  %v9680_v37 = vsub.f32 %v1914_v32, %v9661_v35  ;;  %v11413_v57 = vand.u32 4294901760, %v9644_v18 }
 0x2e1   : > { %6850 = vmatmul.mubr.f32.gmra.mrb[14].mxu0 %v2110_v22  ;;  %v296_v22 = vld [vmem:[%s9422_s29 + $0xc0] sm:$0xff]  ;;  %v2180_v32 = vand.u32 4294901760, %v2179_v51  ;;  %v11415_v58 = vand.u32 4294901760, %v9652_v60 }
 0x2e2   : > { %6852 = vmatprep.mubr.f32.mxu0 %v2120_v15  ;;  %v2160_v15 = vand.u32 4294901760, %v2159_v47  ;;  %11410 = vst [vmem:[#allocation18_spill] sm:$0xff] %v9675_v26  ;;  %v297_v47 = vld [vmem:[%s9422_s29 + $0xc8] sm:$0xff]  ;;  %11411 = vst [vmem:[#allocation13_spill] sm:$0xff] %v9680_v37  ;;  %v2170_v28 = vand.u32 4294901760, %v2169_v33  ;;  %v2189_v50 = vsub.f32 %v9644_v18, %v11413_v57  ;;  %v9704_v18 = vsub.f32 %v1920_v19, %v9685_v40  ;;  %v300_v51 = vld [vmem:[%s9422_s29 + $0xe0] sm:$0xff] }
 0x2e3   : > { %v2199_v23 = vsub.f32 %v9652_v60, %v11415_v58  ;;  %v1926_v16 = vsel %vm336_vm0, %v297_v47, 0  ;;  %v11417_v58 = vand.u32 4294901760, %v9667_v49 }
 0x2e4   : > { %11416 = vst [vmem:[#allocation19_spill] sm:$0xff] %v9704_v18 }
 0x2e5   : > { %6853 = vmatmul.mubr.f32.gmra.mrb[16].mxu0 %v2130_v7  ;;  %v1923_v7 = vsel %vm336_vm0, %v296_v22, 0  ;;  %v2209_v8 = vsub.f32 %v9667_v49, %v11417_v58  ;;  %v2200_v57 = vand.u32 4294901760, %v2199_v23  ;;  %v11420_v22 = vand.u32 4294901760, %v9675_v26 }
 0x2e6   : > { %6855 = vmatprep.mubr.f32.mxu0 %v2140_v38  ;;  %v298_v38 = vld [vmem:[%s9422_s29 + $0xd0] sm:$0xff]  ;;  %v9692_v17 = vand.u32 4294901760, %v1923_v7  ;;  %v11422_v58 = vand.u32 4294901760, %v9680_v37  ;;  %v11423_v49 = vand.u32 4294901760, %v9683_v20  ;;  %v1941_v23 = vsel %vm336_vm0, %v302_v45, 0 }
 0x2e7   : > { %v1929_v33 = vsel %vm336_vm0, %v298_v38, 0  ;;  %v9713_v38 = vand.u32 4294901760, %v1926_v16  ;;  %v2219_v19 = vsub.f32 %v9675_v26, %v11420_v22  ;;  %v2210_v22 = vand.u32 4294901760, %v2209_v8 }
 0x2e8   : > { %11414 = vst [vmem:[#allocation2_spill] sm:$0xff] %v9692_v17  ;;  %v9711_v47 = vsub.f32 %v1923_v7, %v9692_v17  ;;  %v9718_v60 = vand.u32 4294901760, %v1929_v33  ;;  %v2229_v7 = vsub.f32 %v9680_v37, %v11422_v58  ;;  %v11426_v26 = vand.u32 4294901760, %v9704_v18 }
 0x2e9   : > { %6856 = vmatmul.mubr.f32.gmra.mrb[18].mxu0 %v2150_v1  ;;  %v299_v1 = vld [vmem:[%s9422_s29 + $0xd8] sm:$0xff]  ;;  %11419 = vst [vmem:[#allocation21_spill] sm:$0xff] %v9713_v38  ;;  %v2220_v5 = vand.u32 4294901760, %v2219_v19 }
 0x2ea   : > { %6858 = vmatprep.mubr.f32.mxu0 %v2160_v15  ;;  %v2190_v15 = vand.u32 4294901760, %v2189_v50  ;;  %11418 = vst [vmem:[#allocation20_spill] sm:$0xff] %v9711_v47  ;;  %11421 = vst [vmem:[#allocation22_spill] sm:$0xff] %v9718_v60  ;;  %v1935_v50 = vsel %vm336_vm0, %v300_v51, 0  ;;  %v9738_v58 = vsub.f32 %v1929_v33, %v9718_v60  ;;  %v2230_v8 = vand.u32 4294901760, %v2229_v7 }
 0x2eb   : > { %v9740_v37 = vand.u32 4294901760, %v1935_v50 }
 0x2ec   : > { %v11181_v45 = vand.u32 4294901760, %v9738_v58 }
 0x2ed   : > { %6859 = vmatmul.mubr.f32.gmra.mrb[20].mxu0 %v2170_v28  ;;  %v1932_v28 = vsel %vm336_vm0, %v299_v1, 0  ;;  %v9733_v1 = vsub.f32 %v1926_v16, %v9713_v38  ;;  %11425 = vst [vmem:[#allocation24_spill] sm:$0xff] %v9740_v37  ;;  %v2249_v16 = vsub.f32 %v9704_v18, %v11426_v26  ;;  %v9759_v7 = vsub.f32 %v1935_v50, %v9740_v37 }
 0x2ee   : > { %6861 = vmatprep.mubr.f32.mxu0 %v2180_v32  ;;  %v2239_v32 = vsub.f32 %v9683_v20, %v11423_v49  ;;  %v9735_v51 = vand.u32 4294901760, %v1932_v28  ;;  %v1938_v49 = vsel %vm336_vm0, %v301_v63, 0  ;;  %v2279_v18 = vsub.f32 %v9738_v58, %v11181_v45 }
 0x2ef   : > { %v11180_v33 = vand.u32 4294901760, %v9733_v1  ;;  %v9755_v63 = vand.u32 4294901760, %v1938_v49 }
 0x2f0   : > { %11424 = vst [vmem:[#allocation23_spill] sm:$0xff] %v9735_v51  ;;  %v2240_v20 = vand.u32 4294901760, %v2239_v32  ;;  %v9753_v4 = vsub.f32 %v1932_v28, %v9735_v51  ;;  %v9761_v32 = vand.u32 4294901760, %v1941_v23 }
 0x2f1   : > { %6862 = vmatmul.mubr.f32.gmra.mrb[22].mxu0 %v2190_v15  ;;  %v303_v15 = vld [vmem:[%s9422_s29 + $0xf8] sm:$0xff]  ;;  %11429 = vst [vmem:[#allocation26_spill] sm:$0xff] %v9755_v63 }
 0x2f2   : > { %6864 = vmatprep.mubr.f32.mxu0 %v2200_v57  ;;  %v11427_v57 = vand.u32 4294901760, %v9711_v47  ;;  %11428 = vst [vmem:[#allocation25_spill] sm:$0xff] %v9753_v4  ;;  %11430 = vst [vmem:[#allocation27_spill] sm:$0xff] %v9761_v32  ;;  %v1944_v26 = vsel %vm336_vm0, %v303_v15, 0  ;;  %v11182_v28 = vand.u32 4294901760, %v9753_v4  ;;  %v11188_v15 = vand.u32 4294901760, %v9759_v7 }
 0x2f4   : > { %v2259_v19 = vsub.f32 %v9711_v47, %v11427_v57  ;;  %v2269_v57 = vsub.f32 %v9733_v1, %v11180_v33  ;;  %v9769_v47 = vsub.f32 %v1938_v49, %v9755_v63  ;;  %v2289_v49 = vsub.f32 %v9753_v4, %v11182_v28 }
 0x2f5   : > { %6865 = vmatmul.mubr.f32.gmra.mrb[24].mxu0 %v2210_v22  ;;  %v2250_v22 = vand.u32 4294901760, %v2249_v16  ;;  %v2299_v45 = vsub.f32 %v9759_v7, %v11188_v15  ;;  %v11446_v15 = vld [vmem:[#allocation19_spill] sm:$0xff] }
 0x2f6   : > { %6867 = vmatprep.mubr.f32.mxu0 %v2220_v5  ;;  %v9771_v5 = vand.u32 4294901760, %v1944_v26  ;;  %v2260_v50 = vand.u32 4294901760, %v2259_v19  ;;  %v2270_v16 = vand.u32 4294901760, %v2269_v57  ;;  %v11187_v33 = vand.u32 4294901760, %v9769_v47 }
 0x2f7   : > { %v2280_v19 = vand.u32 4294901760, %v2279_v18  ;;  %v2300_v4 = vand.u32 4294901760, %v2299_v45  ;;  %v11434_v45 = vld [vmem:[#allocation4_spill] sm:$0xff] }
 0x2f8   : > { %11431 = vst [vmem:[#allocation28_spill] sm:$0xff] %v9771_v5  ;;  %v2309_v57 = vsub.f32 %v9769_v47, %v11187_v33  ;;  %v11445_v33 = vld [vmem:[#allocation14_spill] sm:$0xff] }
 0x2f9   : > { %6868 = vmatmul.mubr.f32.gmra.mrb[26].mxu0 %v2230_v8  ;;  %v9778_v8 = vsub.f32 %v1941_v23, %v9761_v32 }
 0x2fa   : > { %6870 = vmatprep.mubr.f32.mxu0 %v2240_v20  ;;  %v9785_v20 = vsub.f32 %v1944_v26, %v9771_v5  ;;  %v2310_v26 = vand.u32 4294901760, %v2309_v57  ;;  %v11437_v57 = vld [vmem:[#allocation5_spill] sm:$0xff] }
 0x2fb   : > { %v11186_v23 = vand.u32 4294901760, %v9778_v8 }
 0x2fc   : > { %v11185_v28 = vand.u32 4294901760, %v9785_v20 }
 0x2fd   : > { %6871 = vmatmul.mubr.f32.gmra.mrb[28].mxu0 %v2250_v22  ;;  %v2290_v22 = vand.u32 4294901760, %v2289_v49  ;;  %v2319_v18 = vsub.f32 %v9778_v8, %v11186_v23  ;;  %v11444_v23 = vld [vmem:[#allocation13_spill] sm:$0xff] }
 0x2fe   : > { %6873 = vmatprep.mubr.f32.mxu0 %v2260_v50  ;;  %v2329_v50 = vsub.f32 %v9785_v20, %v11185_v28  ;;  %v11443_v28 = vld [vmem:[#allocation18_spill] sm:$0xff] }
 0x300   : > { %v2330_v49 = vand.u32 4294901760, %v2329_v50  ;;  %v11440_v50 = vld [vmem:[#allocation11_spill] sm:$0xff] }
 0x301   : > { %6874 = vmatmul.mubr.f32.gmra.mrb[30].mxu0 %v2270_v16  ;;  %v2320_v16 = vand.u32 4294901760, %v2319_v18  ;;  %v11438_v18 = vld [vmem:[#allocation10_spill] sm:$0xff] }
 0x302   : > { %6876 = vmatprep.mubr.f32.mxu0 %v2280_v19  ;;  %v11435_v19 = vld [vmem:[#allocation9_spill] sm:$0xff] }
 0x305   : > { %6877 = vmatmul.mubr.f32.gmra.mrb[32].mxu0 %v2290_v22  ;;  %v11436_v22 = vld [vmem:[#allocation7_spill] sm:$0xff] }
 0x306   : > { %6879 = vmatprep.mubr.f32.mxu0 %v2300_v4  ;;  %v11433_v4 = vld [vmem:[#allocation8_spill] sm:$0xff] }
 0x309   : > { %6880 = vmatmul.mubr.f32.gmra.mrb[34].mxu0 %v2310_v26  ;;  %v11439_v26 = vld [vmem:[#allocation6_spill] sm:$0xff] }
 0x30a   : > { %6882 = vmatprep.mubr.f32.mxu0 %v2320_v16  ;;  %v11441_v16 = vld [vmem:[#allocation17_spill] sm:$0xff] }
 0x30d   : > { %6883 = vmatmul.mubr.f32.gmra.mrb[36].mxu0 %v2330_v49  ;;  %v11442_v49 = vld [vmem:[#allocation12_spill] sm:$0xff] }
 0x30e   : > { %6887 = vmatprep.mubr.f32.mxu0 %v9435_v0 }
 0x311   : > { %6888 = vmatmul.mubr.f32.vlgmr.msra.gmra.mrb[6].mxu0 %v9452_v21 }
 0x312   : > { %6936 = vmatpush3.msra.mxu0 %v9537_v56  ;;  %6890 = vmatprep.mubr.f32.mxu0 %v9454_v25  ;;  %v11432_v56 = vld [vmem:[#allocation3_spill] sm:$0xff] }
 0x313   : > { %6985 = vmatprep.subr.mxu0 %v9522_v44 }
 0x315   : > { %6891 = vmatmul.mubr.f32.gmra.mrb[8].mxu0 %v9459_v41 }
 0x316   : > { %6893 = vmatprep.mubr.f32.mxu0 %v9469_v30 }
 0x319   : > { %6894 = vmatmul.mubr.f32.gmra.mrb[10].mxu0 %v9472_v55 }
 0x31a   : > { %6896 = vmatprep.mubr.f32.mxu0 %v9485_v61 }
 0x31d   : > { %6897 = vmatmul.mubr.f32.gmra.mrb[12].mxu0 %v9494_v10 }
 0x31e   : > { %6899 = vmatprep.mubr.f32.mxu0 %v9507_v24 }
 0x321   : > { %6900 = vmatmul.mubr.f32.gmra.mrb[14].mxu0 %v9519_v39 }
 0x322   : > { %6902 = vmatprep.mubr.f32.mxu0 %v9524_v53 }
 0x325   : > { %6903 = vmatmul.mubr.f32.gmra.mrb[16].mxu0 %v9549_v29 }
 0x326   : > { %6905 = vmatprep.mubr.f32.mxu0 %v9563_v34 }
 0x329   : > { %6906 = vmatmul.mubr.f32.gmra.mrb[18].mxu0 %v9574_v27 }
 0x32a   : > { %6908 = vmatprep.mubr.f32.mxu0 %v9576_v48 }
 0x32d   : > { %6909 = vmatmul.mubr.f32.gmra.mrb[20].mxu0 %v9597_v42 }
 0x32e   : > { %6911 = vmatprep.mubr.f32.mxu0 %v9608_v11 }
 0x331   : > { %6912 = vmatmul.mubr.f32.gmra.mrb[22].mxu0 %v9622_v59 }
 0x332   : > { %6914 = vmatprep.mubr.f32.mxu0 %v9630_v43 }
 0x335   : > { %6915 = vmatmul.mubr.f32.gmra.mrb[24].mxu0 %v9646_v3 }
 0x336   : > { %6917 = vmatprep.mubr.f32.mxu0 %v9654_v6 }
 0x339   : > { %6918 = vmatmul.mubr.f32.gmra.mrb[26].mxu0 %v9661_v35 }
 0x33a   : > { %6920 = vmatprep.mubr.f32.mxu0 %v9663_v52 }
 0x33d   : > { %6921 = vmatmul.mubr.f32.gmra.mrb[28].mxu0 %v9685_v40 }
 0x33e   : > { %6923 = vmatprep.mubr.f32.mxu0 %v9692_v17  ;;  %v11454_v17 = vand.u32 4294901760, %v9489_v14 }
 0x341   : > { %6924 = vmatmul.mubr.f32.gmra.mrb[30].mxu0 %v9713_v38  ;;  %v11453_v38 = vand.u32 4294901760, %v9482_v9 }
 0x342   : > { %6926 = vmatprep.mubr.f32.mxu0 %v9718_v60  ;;  %v11452_v60 = vand.u32 4294901760, %v9476_v46 }
 0x345   : > { %6927 = vmatmul.mubr.f32.gmra.mrb[32].mxu0 %v9735_v51  ;;  %v11451_v51 = vand.u32 4294901760, %v9467_v36 }
 0x346   : > { %6929 = vmatprep.mubr.f32.mxu0 %v9740_v37  ;;  %v11450_v37 = vand.u32 4294901760, %v9464_v2 }
 0x349   : > { %6930 = vmatmul.mubr.f32.gmra.mrb[34].mxu0 %v9755_v63  ;;  %v11449_v63 = vand.u32 4294901760, %v9439_v31 }
 0x34a   : > { %6932 = vmatprep.mubr.f32.mxu0 %v9761_v32  ;;  %v11448_v32 = vld [vmem:[#allocation25_spill] sm:$0xff] }
 0x34d   : > { %6933 = vmatmul.mubr.f32.gmra.mrb[36].mxu0 %v9771_v5  ;;  %v11447_v5 = vld [vmem:[#allocation20_spill] sm:$0xff] }
 0x34e   : > { %6937 = vmatprep.mubr.f32.mxu0 %v9439_v31  ;;  %v11455_v31 = vand.u32 4294901760, %v9505_v54 }
 0x351   : > { %6938 = vmatmul.mubr.f32.vlgmr.msra.gmra.mrb[6].mxu0 %v9464_v2  ;;  %v11456_v2 = vand.u32 4294901760, %v9517_v13 }
 0x352   : > { %6986 = vmatpush3.msra.mxu0 %v9522_v44  ;;  %6940 = vmatprep.mubr.f32.mxu0 %v9467_v36  ;;  %v11457_v36 = vand.u32 4294901760, %v9532_v12 }
 0x353   : > { %7035 = vmatprep.subr.mxu0 %v9552_v62 }
 0x355   : > { %6941 = vmatmul.mubr.f32.gmra.mrb[8].mxu0 %v9476_v46  ;;  %v11459_v46 = vand.u32 4294901760, %v11433_v4 }
 0x356   : > { %6943 = vmatprep.mubr.f32.mxu0 %v9482_v9  ;;  %v11461_v9 = vand.u32 4294901760, %v11435_v19 }
 0x359   : > { %6944 = vmatmul.mubr.f32.gmra.mrb[10].mxu0 %v9489_v14  ;;  %v11462_v14 = vand.u32 4294901760, %v11436_v22 }
 0x35a   : > { %6946 = vmatprep.mubr.f32.mxu0 %v9505_v54  ;;  %v11463_v54 = vand.u32 4294901760, %v11437_v57 }
 0x35d   : > { %6947 = vmatmul.mubr.f32.gmra.mrb[12].mxu0 %v9517_v13  ;;  %v11464_v13 = vand.u32 4294901760, %v11438_v18 }
 0x35e   : > { %6949 = vmatprep.mubr.f32.mxu0 %v9532_v12  ;;  %v11465_v12 = vand.u32 4294901760, %v11439_v26 }
 0x361   : > { %6950 = vmatmul.mubr.f32.gmra.mrb[14].mxu0 %v11432_v56 }
 0x362   : > { %6952 = vmatprep.mubr.f32.mxu0 %v11433_v4  ;;  %v11472_v4 = vand.u32 4294901760, %v11446_v15 }
 0x365   : > { %6953 = vmatmul.mubr.f32.gmra.mrb[16].mxu0 %v11434_v45 }
 0x366   : > { %6955 = vmatprep.mubr.f32.mxu0 %v11435_v19  ;;  %v11474_v19 = vand.u32 4294901760, %v9733_v1 }
 0x369   : > { %6956 = vmatmul.mubr.f32.gmra.mrb[18].mxu0 %v11436_v22  ;;  %v11475_v22 = vand.u32 4294901760, %v9738_v58 }
 0x36a   : > { %6958 = vmatprep.mubr.f32.mxu0 %v11437_v57 }
 0x36d   : > { %6959 = vmatmul.mubr.f32.gmra.mrb[20].mxu0 %v11438_v18 }
 0x36e   : > { %6961 = vmatprep.mubr.f32.mxu0 %v11439_v26 }
 0x371   : > { %6962 = vmatmul.mubr.f32.gmra.mrb[22].mxu0 %v11440_v50 }
 0x372   : > { %6964 = vmatprep.mubr.f32.mxu0 %v11441_v16 }
 0x375   : > { %6965 = vmatmul.mubr.f32.gmra.mrb[24].mxu0 %v11442_v49 }
 0x376   : > { %6967 = vmatprep.mubr.f32.mxu0 %v11443_v28 }
 0x379   : > { %6968 = vmatmul.mubr.f32.gmra.mrb[26].mxu0 %v11444_v23 }
 0x37a   : > { %6970 = vmatprep.mubr.f32.mxu0 %v11445_v33 }
 0x37d   : > { %6971 = vmatmul.mubr.f32.gmra.mrb[28].mxu0 %v11446_v15  ;;  %v11479_v15 = vand.u32 4294901760, %v9778_v8 }
 0x37e   : > { %6973 = vmatprep.mubr.f32.mxu0 %v11447_v5 }
 0x381   : > { %6974 = vmatmul.mubr.f32.gmra.mrb[30].mxu0 %v9733_v1  ;;  %v11483_v1 = vld [vmem:[#allocation22_spill] sm:$0xff] }
 0x382   : > { %6976 = vmatprep.mubr.f32.mxu0 %v9738_v58  ;;  %v11484_v58 = vld [vmem:[#allocation23_spill] sm:$0xff] }
 0x385   : > { %6977 = vmatmul.mubr.f32.gmra.mrb[32].mxu0 %v11448_v32 }
 0x386   : > { %6979 = vmatprep.mubr.f32.mxu0 %v9759_v7 }
 0x389   : > { %6980 = vmatmul.mubr.f32.gmra.mrb[34].mxu0 %v9769_v47 }
 0x38a   : > { %6982 = vmatprep.mubr.f32.mxu0 %v9778_v8  ;;  %v11487_v8 = vld [vmem:[#allocation27_spill] sm:$0xff] }
 0x38d   : > { %6983 = vmatmul.mubr.f32.gmra.mrb[36].mxu0 %v9785_v20 }
 0x38e   : > { %6987 = vmatprep.mubr.f32.mxu0 %v11449_v63  ;;  %v11470_v63 = vand.u32 4294901760, %v11444_v23  ;;  %v11477_v23 = vand.u32 4294901760, %v9759_v7  ;;  %v11485_v7 = vld [vmem:[#allocation24_spill] sm:$0xff] }
 0x391   : > { %6988 = vmatmul.mubr.f32.vlgmr.msra.gmra.mrb[6].mxu0 %v11450_v37  ;;  %v11467_v37 = vand.u32 4294901760, %v11441_v16 }
 0x392   : > { %7036 = vmatpush3.msra.mxu0 %v9552_v62  ;;  %6990 = vmatprep.mubr.f32.mxu0 %v11451_v51  ;;  %v11458_v62 = vand.u32 4294901760, %v11432_v56  ;;  %v11469_v51 = vand.u32 4294901760, %v11443_v28  ;;  %v11471_v56 = vand.u32 4294901760, %v11445_v33  ;;  %v11476_v28 = vand.u32 4294901760, %v11448_v32  ;;  %v11486_v32 = vld [vmem:[#allocation26_spill] sm:$0xff] }
 0x393   : > { %7085 = vmatprep.subr.mxu0 %v9522_v44  ;;  %v11478_v33 = vand.u32 4294901760, %v9769_v47  ;;  %v11482_v47 = vld [vmem:[#allocation21_spill] sm:$0xff] }
 0x395   : > { %6991 = vmatmul.mubr.f32.gmra.mrb[8].mxu0 %v11452_v60  ;;  %v11460_v60 = vand.u32 4294901760, %v11434_v45  ;;  %v11473_v45 = vand.u32 4294901760, %v11447_v5  ;;  %v11480_v5 = vand.u32 4294901760, %v9785_v20  ;;  %v11488_v20 = vld [vmem:[#allocation28_spill] sm:$0xff] }
 0x396   : > { %6993 = vmatprep.mubr.f32.mxu0 %v11453_v38  ;;  %v11468_v38 = vand.u32 4294901760, %v11442_v49 }
 0x399   : > { %6994 = vmatmul.mubr.f32.gmra.mrb[10].mxu0 %v11454_v17  ;;  %v11466_v17 = vand.u32 4294901760, %v11440_v50 }
 0x39a   : > { %6996 = vmatprep.mubr.f32.mxu0 %v11455_v31 }
 0x39d   : > { %6997 = vmatmul.mubr.f32.gmra.mrb[12].mxu0 %v11456_v2 }
 0x39e   : > { %6999 = vmatprep.mubr.f32.mxu0 %v11457_v36 }
 0x3a1   : > { %7000 = vmatmul.mubr.f32.gmra.mrb[14].mxu0 %v11458_v62 }
 0x3a2   : > { %7002 = vmatprep.mubr.f32.mxu0 %v11459_v46 }
 0x3a5   : > { %7003 = vmatmul.mubr.f32.gmra.mrb[16].mxu0 %v11460_v60 }
 0x3a6   : > { %7005 = vmatprep.mubr.f32.mxu0 %v11461_v9 }
 0x3a9   : > { %7006 = vmatmul.mubr.f32.gmra.mrb[18].mxu0 %v11462_v14 }
 0x3aa   : > { %7008 = vmatprep.mubr.f32.mxu0 %v11463_v54 }
 0x3ad   : > { %7009 = vmatmul.mubr.f32.gmra.mrb[20].mxu0 %v11464_v13 }
 0x3ae   : > { %7011 = vmatprep.mubr.f32.mxu0 %v11465_v12 }
 0x3b1   : > { %7012 = vmatmul.mubr.f32.gmra.mrb[22].mxu0 %v11466_v17 }
 0x3b2   : > { %7014 = vmatprep.mubr.f32.mxu0 %v11467_v37 }
 0x3b5   : > { %7015 = vmatmul.mubr.f32.gmra.mrb[24].mxu0 %v11468_v38 }
 0x3b6   : > { %7017 = vmatprep.mubr.f32.mxu0 %v11469_v51 }
 0x3b9   : > { %7018 = vmatmul.mubr.f32.gmra.mrb[26].mxu0 %v11470_v63 }
 0x3ba   : > { %7020 = vmatprep.mubr.f32.mxu0 %v11471_v56 }
 0x3bd   : > { %7021 = vmatmul.mubr.f32.gmra.mrb[28].mxu0 %v11472_v4 }
 0x3be   : > { %7023 = vmatprep.mubr.f32.mxu0 %v11473_v45 }
 0x3c1   : > { %7024 = vmatmul.mubr.f32.gmra.mrb[30].mxu0 %v11474_v19 }
 0x3c2   : > { %7026 = vmatprep.mubr.f32.mxu0 %v11475_v22 }
 0x3c5   : > { %7027 = vmatmul.mubr.f32.gmra.mrb[32].mxu0 %v11476_v28 }
 0x3c6   : > { %7029 = vmatprep.mubr.f32.mxu0 %v11477_v23 }
 0x3c9   : > { %7030 = vmatmul.mubr.f32.gmra.mrb[34].mxu0 %v11478_v33 }
 0x3ca   : > { %7032 = vmatprep.mubr.f32.mxu0 %v11479_v15 }
 0x3cd   : > { %7033 = vmatmul.mubr.f32.gmra.mrb[36].mxu0 %v11480_v5 }
 0x3ce   : > { %7037 = vmatprep.mubr.f32.mxu0 %v9435_v0 }
 0x3d1   : > { %7038 = vmatmul.mubr.f32.vlgmr.msra.gmra.mrb[6].mxu0 %v9452_v21 }
 0x3d2   : > { %7086 = vmatpush3.msra.mxu0 %v9522_v44  ;;  %7040 = vmatprep.mubr.f32.mxu0 %v9454_v25  ;;  %v11481_v44 = vld [vmem:[#allocation2_spill] sm:$0xff] }
 0x3d5   : > { %7041 = vmatmul.mubr.f32.gmra.mrb[8].mxu0 %v9459_v41 }
 0x3d6   : > { %7043 = vmatprep.mubr.f32.mxu0 %v9469_v30 }
 0x3d9   : > { %7044 = vmatmul.mubr.f32.gmra.mrb[10].mxu0 %v9472_v55 }
 0x3da   : > { %7046 = vmatprep.mubr.f32.mxu0 %v9485_v61 }
 0x3dd   : > { %7047 = vmatmul.mubr.f32.gmra.mrb[12].mxu0 %v9494_v10 }
 0x3de   : > { %7049 = vmatprep.mubr.f32.mxu0 %v9507_v24 }
 0x3e1   : > { %7050 = vmatmul.mubr.f32.gmra.mrb[14].mxu0 %v9519_v39 }
 0x3e2   : > { %7052 = vmatprep.mubr.f32.mxu0 %v9524_v53 }
 0x3e5   : > { %7053 = vmatmul.mubr.f32.gmra.mrb[16].mxu0 %v9549_v29 }
 0x3e6   : > { %7055 = vmatprep.mubr.f32.mxu0 %v9563_v34 }
 0x3e9   : > { %7056 = vmatmul.mubr.f32.gmra.mrb[18].mxu0 %v9574_v27 }
 0x3ea   : > { %7058 = vmatprep.mubr.f32.mxu0 %v9576_v48 }
 0x3ed   : > { %7059 = vmatmul.mubr.f32.gmra.mrb[20].mxu0 %v9597_v42 }
 0x3ee   : > { %7061 = vmatprep.mubr.f32.mxu0 %v9608_v11 }
 0x3f1   : > { %7062 = vmatmul.mubr.f32.gmra.mrb[22].mxu0 %v9622_v59 }
 0x3f2   : > { %7064 = vmatprep.mubr.f32.mxu0 %v9630_v43 }
 0x3f5   : > { %7065 = vmatmul.mubr.f32.gmra.mrb[24].mxu0 %v9646_v3 }
 0x3f6   : > { %7067 = vmatprep.mubr.f32.mxu0 %v9654_v6 }
 0x3f9   : > { %7068 = vmatmul.mubr.f32.gmra.mrb[26].mxu0 %v9661_v35 }
 0x3fa   : > { %7070 = vmatprep.mubr.f32.mxu0 %v9663_v52 }
 0x3fd   : > { %7071 = vmatmul.mubr.f32.gmra.mrb[28].mxu0 %v9685_v40 }
 0x3fe   : > { %7073 = vmatprep.mubr.f32.mxu0 %v11481_v44 }
 0x401   : > { %7074 = vmatmul.mubr.f32.gmra.mrb[30].mxu0 %v11482_v47 }
 0x402   : > { %7076 = vmatprep.mubr.f32.mxu0 %v11483_v1 }
 0x405   : > { %7077 = vmatmul.mubr.f32.gmra.mrb[32].mxu0 %v11484_v58 }
 0x406   : > { %7079 = vmatprep.mubr.f32.mxu0 %v11485_v7 }
 0x409   : > { %7080 = vmatmul.mubr.f32.gmra.mrb[34].mxu0 %v11486_v32 }
 0x40a   : > { %7082 = vmatprep.mubr.f32.mxu0 %v11487_v8 }
 0x40d   : > { %7083 = vmatmul.mubr.f32.gmra.mrb[36].mxu0 %v11488_v20 }
 0x40e   : > { %7087 = vmatprep.mubr.f32.mxu0 %v9435_v0  ;;  %v11489_v0 = vld [vmem:[#allocation16_spill] sm:$0xff] }
 0x411   : > { %7088 = vmatmul.mubr.f32.vlgmr.msra.gmra.mrb[6].mxu0 %v9452_v21  ;;  %v11490_v21 = vld [vmem:[#allocation15_spill] sm:$0xff] }
 0x412   : > { %7090 = vmatprep.mubr.f32.mxu0 %v9454_v25  ;;  %v10002_v25 = vsub.f32 %v11490_v21, %v11489_v0 }
 0x415   : > { %7091 = vmatmul.mubr.f32.gmra.mrb[8].mxu0 %v9459_v41  ;;  %v10005_v41 = vand.u32 4294901760, %v10002_v25 }
 0x416   : > { %7093 = vmatprep.mubr.f32.mxu0 %v9469_v30 }
 0x417   : > { %v4226_v30 = vsub.f32 %v10002_v25, %v10005_v41 }
 0x419   : > { %7094 = vmatmul.mubr.f32.gmra.mrb[10].mxu0 %v9472_v55  ;;  %v4227_v55 = vand.u32 4294901760, %v4226_v30 }
 0x41a   : > { %7096 = vmatprep.mubr.f32.mxu0 %v9485_v61 }
 0x41b   : > { %7185 = vmatprep.subr.mxu1 %v4227_v55 }
 0x41d   : > { %7097 = vmatmul.mubr.f32.gmra.mrb[12].mxu0 %v9494_v10 }
 0x41e   : > { %7099 = vmatprep.mubr.f32.mxu0 %v9507_v24 }
 0x421   : > { %7100 = vmatmul.mubr.f32.gmra.mrb[14].mxu0 %v9519_v39 }
 0x422   : > { %7102 = vmatprep.mubr.f32.mxu0 %v9524_v53 }
 0x425   : > { %7103 = vmatmul.mubr.f32.gmra.mrb[16].mxu0 %v9549_v29 }
 0x426   : > { %7105 = vmatprep.mubr.f32.mxu0 %v9563_v34 }
 0x429   : > { %7106 = vmatmul.mubr.f32.gmra.mrb[18].mxu0 %v9574_v27 }
 0x42a   : > { %7108 = vmatprep.mubr.f32.mxu0 %v9576_v48 }
 0x42d   : > { %7109 = vmatmul.mubr.f32.gmra.mrb[20].mxu0 %v9597_v42 }
 0x42e   : > { %7111 = vmatprep.mubr.f32.mxu0 %v9608_v11 }
 0x431   : > { %7112 = vmatmul.mubr.f32.gmra.mrb[22].mxu0 %v9622_v59 }
 0x432   : > { %7114 = vmatprep.mubr.f32.mxu0 %v9630_v43 }
 0x435   : > { %7115 = vmatmul.mubr.f32.gmra.mrb[24].mxu0 %v9646_v3 }
 0x436   : > { %7117 = vmatprep.mubr.f32.mxu0 %v9654_v6 }
 0x439   : > { %7118 = vmatmul.mubr.f32.gmra.mrb[26].mxu0 %v9661_v35 }
 0x43a   : > { %7120 = vmatprep.mubr.f32.mxu0 %v9663_v52 }
 0x43d   : > { %7121 = vmatmul.mubr.f32.gmra.mrb[28].mxu0 %v9685_v40 }
 0x43e   : > { %7123 = vmatprep.mubr.f32.mxu0 %v11481_v44 }
 0x441   : > { %7124 = vmatmul.mubr.f32.gmra.mrb[30].mxu0 %v11482_v47 }
 0x442   : > { %7126 = vmatprep.mubr.f32.mxu0 %v11483_v1 }
 0x445   : > { %7127 = vmatmul.mubr.f32.gmra.mrb[32].mxu0 %v11484_v58 }
 0x446   : > { %7129 = vmatprep.mubr.f32.mxu0 %v11485_v7 }
 0x449   : > { %7130 = vmatmul.mubr.f32.gmra.mrb[34].mxu0 %v11486_v32 }
 0x44a   : > { %7132 = vmatprep.mubr.f32.mxu0 %v11487_v8 }
 0x44d   : > { %7133 = vmatmul.mubr.f32.gmra.mrb[36].mxu0 %v11488_v20 }
 0x4e4   : > { %v7089_v61 = vpop.f32.mrb[6].mxu0 }
 0x4e5   : > { %v3741_v10 = vsel %vm336_vm0, %v7089_v61, 0  ;;  %v3539_v24 = vpop.f32.mrb[7].mxu0 }
 0x4e6   : > { %v10010_v39 = vand.u32 4294901760, %v3741_v10  ;;  %v3738_v53 = vsel %vm336_vm0, %v3539_v24, 0 }
 0x4e7   : > { %v10013_v43 = vand.u32 4294901760, %v3738_v53 }
 0x4e8   : > { %v10016_v59 = vsub.f32 %v3741_v10, %v10010_v39  ;;  %v7092_v29 = vpop.f32.mrb[8].mxu0 }
 0x4e9   : > { %v10019_v34 = vsub.f32 %v3738_v53, %v10013_v43  ;;  %v3747_v27 = vsel %vm336_vm0, %v7092_v29, 0  ;;  %v3551_v48 = vpop.f32.mrb[9].mxu0 }
 0x4ea   : > { %v11223_v42 = vand.u32 4294901760, %v10016_v59  ;;  %v10023_v3 = vand.u32 4294901760, %v3747_v27  ;;  %v3744_v11 = vsel %vm336_vm0, %v3551_v48, 0 }
 0x4eb   : > { %v11224_v6 = vand.u32 4294901760, %v10019_v34  ;;  %v10027_v35 = vand.u32 4294901760, %v3744_v11 }
 0x4ec   : > { %v3915_v52 = vsub.f32 %v10016_v59, %v11223_v42  ;;  %v10033_v40 = vsub.f32 %v3747_v27, %v10023_v3  ;;  %v7095_v57 = vpop.f32.mrb[10].mxu0 }
 0x4ed   : > { %v10036_v18 = vsub.f32 %v3744_v11, %v10027_v35  ;;  %v3753_v26 = vsel %vm336_vm0, %v7095_v57, 0  ;;  %v3563_v50 = vpop.f32.mrb[11].mxu0  ;;  %v3905_v16 = vsub.f32 %v10019_v34, %v11224_v6 }
 0x4ee   : > { %v11220_v49 = vand.u32 4294901760, %v10033_v40  ;;  %v10043_v31 = vand.u32 4294901760, %v3753_v26  ;;  %v3750_v2 = vsel %vm336_vm0, %v3563_v50, 0  ;;  %v3916_v60 = vand.u32 4294901760, %v3915_v52 }
 0x4ef   : > { %v11221_v36 = vand.u32 4294901760, %v10036_v18  ;;  %v10047_v62 = vand.u32 4294901760, %v3750_v2  ;;  %v3906_v46 = vand.u32 4294901760, %v3905_v16 }
 0x4f0   : > { %v10050_v9 = vsub.f32 %v3753_v26, %v10043_v31  ;;  %v7098_v14 = vpop.f32.mrb[12].mxu0  ;;  %v3935_v54 = vsub.f32 %v10033_v40, %v11220_v49 }
 0x4f1   : > { %v10056_v13 = vsub.f32 %v3750_v2, %v10047_v62  ;;  %v3759_v12 = vsel %vm336_vm0, %v7098_v14, 0  ;;  %v3575_v17 = vpop.f32.mrb[13].mxu0  ;;  %7137 = vmatprep.mubr.f32.mxu1 %v3906_v46  ;;  %v3925_v37 = vsub.f32 %v10036_v18, %v11221_v36 }
 0x4f2   : > { %v11217_v38 = vand.u32 4294901760, %v10050_v9  ;;  %v10063_v51 = vand.u32 4294901760, %v3759_v12  ;;  %v3756_v63 = vsel %vm336_vm0, %v3575_v17, 0  ;;  %7138 = vmatmul.mubr.f32.vlgmr.msra.gmra.mrb[6].mxu1 %v3916_v60  ;;  %v3936_v28 = vand.u32 4294901760, %v3935_v54 }
 0x4f3   : > { %v11218_v56 = vand.u32 4294901760, %v10056_v13  ;;  %v10067_v4 = vand.u32 4294901760, %v3756_v63  ;;  %v3926_v45 = vand.u32 4294901760, %v3925_v37  ;;  %7186 = vmatpush3.msra.mxu1 %v4227_v55 }
 0x4f4   : > { %v10070_v19 = vsub.f32 %v3759_v12, %v10063_v51  ;;  %v7101_v22 = vpop.f32.mrb[14].mxu0  ;;  %v3955_v23 = vsub.f32 %v10050_v9, %v11217_v38  ;;  %7235 = vmatprep.subr.mxu1 %v10002_v25 }
 0x4f5   : > { %v10077_v33 = vsub.f32 %v3756_v63, %v10067_v4  ;;  %v3765_v15 = vsel %vm336_vm0, %v7101_v22, 0  ;;  %v3587_v5 = vpop.f32.mrb[15].mxu0  ;;  %7140 = vmatprep.mubr.f32.mxu1 %v3926_v45  ;;  %v3945_v44 = vsub.f32 %v10056_v13, %v11218_v56 }
 0x4f6   : > { %v11214_v47 = vand.u32 4294901760, %v10070_v19  ;;  %v10084_v1 = vand.u32 4294901760, %v3765_v15  ;;  %v3762_v58 = vsel %vm336_vm0, %v3587_v5, 0  ;;  %7141 = vmatmul.mubr.f32.gmra.mrb[8].mxu1 %v3936_v28  ;;  %v3956_v30 = vand.u32 4294901760, %v3955_v23 }
 0x4f7   : > { %v11215_v7 = vand.u32 4294901760, %v10077_v33  ;;  %v10088_v32 = vand.u32 4294901760, %v3762_v58  ;;  %v3946_v8 = vand.u32 4294901760, %v3945_v44 }
 0x4f8   : > { %v10091_v20 = vsub.f32 %v3765_v15, %v10084_v1  ;;  %v7104_v21 = vpop.f32.mrb[16].mxu0  ;;  %v3975_v55 = vsub.f32 %v10070_v19, %v11214_v47 }
 0x4f9   : > { %v10097_v61 = vsub.f32 %v3762_v58, %v10088_v32  ;;  %v3771_v10 = vsel %vm336_vm0, %v7104_v21, 0  ;;  %v3599_v24 = vpop.f32.mrb[17].mxu0  ;;  %7143 = vmatprep.mubr.f32.mxu1 %v3946_v8  ;;  %v3965_v53 = vsub.f32 %v10077_v33, %v11215_v7 }
 0x4fa   : > { %v11211_v29 = vand.u32 4294901760, %v10091_v20  ;;  %v10104_v27 = vand.u32 4294901760, %v3771_v10  ;;  %v3768_v48 = vsel %vm336_vm0, %v3599_v24, 0  ;;  %7144 = vmatmul.mubr.f32.gmra.mrb[10].mxu1 %v3956_v30  ;;  %v3976_v16 = vand.u32 4294901760, %v3975_v55 }
 0x4fb   : > { %v11212_v11 = vand.u32 4294901760, %v10097_v61  ;;  %v10108_v52 = vand.u32 4294901760, %v3768_v48  ;;  %v3966_v57 = vand.u32 4294901760, %v3965_v53 }
 0x4fc   : > { %v10111_v26 = vsub.f32 %v3771_v10, %v10104_v27  ;;  %v7107_v50 = vpop.f32.mrb[18].mxu0  ;;  %v3995_v2 = vsub.f32 %v10091_v20, %v11211_v29 }
 0x4fd   : > { %v10117_v46 = vsub.f32 %v3768_v48, %v10108_v52  ;;  %v3777_v60 = vsel %vm336_vm0, %v7107_v50, 0  ;;  %v3611_v14 = vpop.f32.mrb[19].mxu0  ;;  %7146 = vmatprep.mubr.f32.mxu1 %v3966_v57  ;;  %v3985_v54 = vsub.f32 %v10097_v61, %v11212_v11 }
 0x4fe   : > { %v11208_v12 = vand.u32 4294901760, %v10111_v26  ;;  %v10124_v17 = vand.u32 4294901760, %v3777_v60  ;;  %v3774_v37 = vsel %vm336_vm0, %v3611_v14, 0  ;;  %7147 = vmatmul.mubr.f32.gmra.mrb[12].mxu1 %v3976_v16  ;;  %v3996_v15 = vand.u32 4294901760, %v3995_v2 }
 0x4ff   : > { %v11209_v63 = vand.u32 4294901760, %v10117_v46  ;;  %v10128_v45 = vand.u32 4294901760, %v3774_v37  ;;  %v3986_v22 = vand.u32 4294901760, %v3985_v54 }
 0x500   : > { %v10131_v28 = vsub.f32 %v3777_v60, %v10124_v17  ;;  %v7110_v23 = vpop.f32.mrb[20].mxu0  ;;  %v4015_v5 = vsub.f32 %v10111_v26, %v11208_v12 }
 0x501   : > { %v10137_v44 = vsub.f32 %v3774_v37, %v10128_v45  ;;  %v3783_v58 = vsel %vm336_vm0, %v7110_v23, 0  ;;  %v3623_v8 = vpop.f32.mrb[21].mxu0  ;;  %7149 = vmatprep.mubr.f32.mxu1 %v3986_v22  ;;  %v4005_v21 = vsub.f32 %v10117_v46, %v11209_v63 }
 0x502   : > { %11491 = vst [vmem:[#allocation3_spill] sm:$0xff] %v10131_v28  ;;  %v11205_v30 = vand.u32 4294901760, %v10131_v28  ;;  %v10144_v55 = vand.u32 4294901760, %v3783_v58  ;;  %v3780_v10 = vsel %vm336_vm0, %v3623_v8, 0  ;;  %7150 = vmatmul.mubr.f32.gmra.mrb[14].mxu1 %v3996_v15  ;;  %v4016_v16 = vand.u32 4294901760, %v4015_v5 }
 0x503   : > { %v11206_v24 = vand.u32 4294901760, %v10137_v44  ;;  %v10148_v53 = vand.u32 4294901760, %v3780_v10  ;;  %v4006_v48 = vand.u32 4294901760, %v4005_v21 }
 0x504   : > { %v10151_v57 = vsub.f32 %v3783_v58, %v10144_v55  ;;  %v7113_v50 = vpop.f32.mrb[22].mxu0  ;;  %v4035_v2 = vsub.f32 %v10131_v28, %v11205_v30 }
 0x505   : > { %v10157_v60 = vsub.f32 %v3780_v10, %v10148_v53  ;;  %v3789_v14 = vsel %vm336_vm0, %v7113_v50, 0  ;;  %v3635_v54 = vpop.f32.mrb[23].mxu0  ;;  %7152 = vmatprep.mubr.f32.mxu1 %v4006_v48  ;;  %v4025_v37 = vsub.f32 %v10137_v44, %v11206_v24 }
 0x506   : > { %11492 = vst [vmem:[#allocation8_spill] sm:$0xff] %v10151_v57  ;;  %v11207_v22 = vand.u32 4294901760, %v10151_v57  ;;  %v10164_v23 = vand.u32 4294901760, %v3789_v14  ;;  %v3786_v15 = vsel %vm336_vm0, %v3635_v54, 0  ;;  %7153 = vmatmul.mubr.f32.gmra.mrb[16].mxu1 %v4016_v16  ;;  %v4036_v48 = vand.u32 4294901760, %v4035_v2 }
 0x507   : > { %11493 = vst [vmem:[#allocation4_spill] sm:$0xff] %v10157_v60  ;;  %v11210_v5 = vand.u32 4294901760, %v10157_v60  ;;  %v10168_v58 = vand.u32 4294901760, %v3786_v15  ;;  %v4026_v8 = vand.u32 4294901760, %v4025_v37 }
 0x508   : > { %v10171_v21 = vsub.f32 %v3789_v14, %v10164_v23  ;;  %v7116_v10 = vpop.f32.mrb[24].mxu0  ;;  %v4055_v50 = vsub.f32 %v10151_v57, %v11207_v22 }
 0x509   : > { %v10177_v30 = vsub.f32 %v3786_v15, %v10168_v58  ;;  %v3795_v54 = vsel %vm336_vm0, %v7116_v10, 0  ;;  %v3647_v16 = vpop.f32.mrb[25].mxu0  ;;  %7155 = vmatprep.mubr.f32.mxu1 %v4026_v8  ;;  %v4045_v37 = vsub.f32 %v10157_v60, %v11210_v5 }
 0x50a   : > { %11494 = vst [vmem:[#allocation9_spill] sm:$0xff] %v10171_v21  ;;  %v11213_v14 = vand.u32 4294901760, %v10171_v21  ;;  %v10184_v24 = vand.u32 4294901760, %v3795_v54  ;;  %v3792_v2 = vsel %vm336_vm0, %v3647_v16, 0  ;;  %7156 = vmatmul.mubr.f32.gmra.mrb[18].mxu1 %v4036_v48  ;;  %v4056_v63 = vand.u32 4294901760, %v4055_v50 }
 0x50b   : > { %11495 = vst [vmem:[#allocation7_spill] sm:$0xff] %v10177_v30  ;;  %v11216_v22 = vand.u32 4294901760, %v10177_v30  ;;  %v10188_v12 = vand.u32 4294901760, %v3792_v2  ;;  %v4046_v15 = vand.u32 4294901760, %v4045_v37 }
 0x50c   : > { %v10191_v10 = vsub.f32 %v3795_v54, %v10184_v24  ;;  %v7119_v8 = vpop.f32.mrb[26].mxu0  ;;  %v4075_v5 = vsub.f32 %v10171_v21, %v11213_v14 }
 0x50d   : > { %v10197_v29 = vsub.f32 %v3792_v2, %v10188_v12  ;;  %v3801_v16 = vsel %vm336_vm0, %v7119_v8, 0  ;;  %v3659_v48 = vpop.f32.mrb[27].mxu0  ;;  %7158 = vmatprep.mubr.f32.mxu1 %v4046_v15  ;;  %v4065_v37 = vsub.f32 %v10177_v30, %v11216_v22 }
 0x50e   : > { %11496 = vst [vmem:[#allocation5_spill] sm:$0xff] %v10191_v10  ;;  %v11219_v54 = vand.u32 4294901760, %v10191_v10  ;;  %v10204_v11 = vand.u32 4294901760, %v3801_v16  ;;  %v3798_v50 = vsel %vm336_vm0, %v3659_v48, 0  ;;  %7159 = vmatmul.mubr.f32.gmra.mrb[20].mxu1 %v4056_v63  ;;  %v4076_v7 = vand.u32 4294901760, %v4075_v5 }
 0x50f   : > { %11497 = vst [vmem:[#allocation10_spill] sm:$0xff] %v10197_v29  ;;  %v11222_v14 = vand.u32 4294901760, %v10197_v29  ;;  %v10208_v47 = vand.u32 4294901760, %v3798_v50  ;;  %v4066_v2 = vand.u32 4294901760, %v4065_v37 }
 0x510   : > { %v10211_v8 = vsub.f32 %v3801_v16, %v10204_v11  ;;  %v7122_v15 = vpop.f32.mrb[28].mxu0  ;;  %v4095_v22 = vsub.f32 %v10191_v10, %v11219_v54 }
 0x511   : > { %v10217_v38 = vsub.f32 %v3798_v50, %v10208_v47  ;;  %v3807_v48 = vsel %vm336_vm0, %v7122_v15, 0  ;;  %v3671_v63 = vpop.f32.mrb[29].mxu0  ;;  %7161 = vmatprep.mubr.f32.mxu1 %v4066_v2  ;;  %v4085_v37 = vsub.f32 %v10197_v29, %v11222_v14 }
 0x512   : > { %11498 = vst [vmem:[#allocation6_spill] sm:$0xff] %v10211_v8  ;;  %v11225_v16 = vand.u32 4294901760, %v10211_v8  ;;  %v10224_v56 = vand.u32 4294901760, %v3807_v48  ;;  %v3804_v5 = vsel %vm336_vm0, %v3671_v63, 0  ;;  %7162 = vmatmul.mubr.f32.gmra.mrb[22].mxu1 %v4076_v7  ;;  %v4096_v36 = vand.u32 4294901760, %v4095_v22 }
 0x513   : > { %11499 = vst [vmem:[#allocation11_spill] sm:$0xff] %v10217_v38  ;;  %v11230_v54 = vand.u32 4294901760, %v10217_v38  ;;  %v10228_v49 = vand.u32 4294901760, %v3804_v5  ;;  %v4086_v50 = vand.u32 4294901760, %v4085_v37 }
 0x514   : > { %v10231_v15 = vsub.f32 %v3807_v48, %v10224_v56  ;;  %v7125_v2 = vpop.f32.mrb[30].mxu0  ;;  %v4115_v14 = vsub.f32 %v10211_v8, %v11225_v16 }
 0x515   : > { %v10237_v42 = vsub.f32 %v3804_v5, %v10228_v49  ;;  %v3813_v63 = vsel %vm336_vm0, %v7125_v2, 0  ;;  %v3683_v7 = vpop.f32.mrb[31].mxu0  ;;  %7164 = vmatprep.mubr.f32.mxu1 %v4086_v50  ;;  %v4105_v37 = vsub.f32 %v10217_v38, %v11230_v54 }
 0x516   : > { %11500 = vst [vmem:[#allocation17_spill] sm:$0xff] %v10231_v15  ;;  %v11235_v48 = vand.u32 4294901760, %v10231_v15  ;;  %v10244_v6 = vand.u32 4294901760, %v3813_v63  ;;  %v3810_v22 = vsel %vm336_vm0, %v3683_v7, 0  ;;  %7165 = vmatmul.mubr.f32.gmra.mrb[24].mxu1 %v4096_v36  ;;  %v4116_v10 = vand.u32 4294901760, %v4115_v14 }
 0x517   : > { %11501 = vst [vmem:[#allocation12_spill] sm:$0xff] %v10237_v42  ;;  %v11240_v16 = vand.u32 4294901760, %v10237_v42  ;;  %v10248_v8 = vand.u32 4294901760, %v3810_v22  ;;  %v4106_v5 = vand.u32 4294901760, %v4105_v37 }
 0x518   : > { %11502 = vst [vmem:[#allocation18_spill] sm:$0xff] %v10244_v6  ;;  %v10251_v2 = vsub.f32 %v3813_v63, %v10244_v6  ;;  %v7128_v50 = vpop.f32.mrb[32].mxu0  ;;  %v4135_v54 = vsub.f32 %v10231_v15, %v11235_v48 }
 0x519   : > { %11503 = vst [vmem:[#allocation13_spill] sm:$0xff] %v10248_v8  ;;  %v10257_v38 = vsub.f32 %v3810_v22, %v10248_v8  ;;  %v3819_v7 = vsel %vm336_vm0, %v7128_v50, 0  ;;  %v3695_v36 = vpop.f32.mrb[33].mxu0  ;;  %7167 = vmatprep.mubr.f32.mxu1 %v4106_v5  ;;  %v4125_v37 = vsub.f32 %v10237_v42, %v11240_v16 }
 0x51a   : > { %11504 = vst [vmem:[#allocation14_spill] sm:$0xff] %v10251_v2  ;;  %v11245_v63 = vand.u32 4294901760, %v10251_v2  ;;  %v10264_v29 = vand.u32 4294901760, %v3819_v7  ;;  %v3816_v14 = vsel %vm336_vm0, %v3695_v36, 0  ;;  %7168 = vmatmul.mubr.f32.gmra.mrb[26].mxu1 %v4116_v10  ;;  %v4136_v21 = vand.u32 4294901760, %v4135_v54 }
 0x51b   : > { %11505 = vst [vmem:[#allocation19_spill] sm:$0xff] %v10257_v38  ;;  %v11250_v48 = vand.u32 4294901760, %v10257_v38  ;;  %v10268_v15 = vand.u32 4294901760, %v3816_v14  ;;  %v4126_v22 = vand.u32 4294901760, %v4125_v37 }
 0x51c   : > { %11506 = vst [vmem:[#allocation20_spill] sm:$0xff] %v10264_v29  ;;  %v10271_v50 = vsub.f32 %v3819_v7, %v10264_v29  ;;  %v7131_v5 = vpop.f32.mrb[34].mxu0  ;;  %v4155_v16 = vsub.f32 %v10251_v2, %v11245_v63 }
 0x51d   : > { %11507 = vst [vmem:[#allocation25_spill] sm:$0xff] %v10268_v15  ;;  %v10277_v42 = vsub.f32 %v3816_v14, %v10268_v15  ;;  %v3825_v36 = vsel %vm336_vm0, %v7131_v5, 0  ;;  %v3707_v10 = vpop.f32.mrb[35].mxu0  ;;  %7170 = vmatprep.mubr.f32.mxu1 %v4126_v22  ;;  %v4145_v37 = vsub.f32 %v10257_v38, %v11250_v48 }
 0x51e   : > { %11508 = vst [vmem:[#allocation2_spill] sm:$0xff] %v10271_v50  ;;  %v11255_v7 = vand.u32 4294901760, %v10271_v50  ;;  %v10284_v30 = vand.u32 4294901760, %v3825_v36  ;;  %v3822_v54 = vsel %vm336_vm0, %v3707_v10, 0  ;;  %7171 = vmatmul.mubr.f32.gmra.mrb[28].mxu1 %v4136_v21  ;;  %v4156_v57 = vand.u32 4294901760, %v4155_v16 }
 0x51f   : > { %11509 = vst [vmem:[#allocation21_spill] sm:$0xff] %v10277_v42  ;;  %v11258_v63 = vand.u32 4294901760, %v10277_v42  ;;  %v10288_v2 = vand.u32 4294901760, %v3822_v54  ;;  %v4146_v14 = vand.u32 4294901760, %v4145_v37 }
 0x520   : > { %11510 = vst [vmem:[#allocation22_spill] sm:$0xff] %v10284_v30  ;;  %v10291_v5 = vsub.f32 %v3825_v36, %v10284_v30  ;;  %v7134_v22 = vpop.f32.mrb[36].mxu0  ;;  %v4175_v48 = vsub.f32 %v10271_v50, %v11255_v7 }
 0x521   : > { %11511 = vst [vmem:[#allocation23_spill] sm:$0xff] %v10288_v2  ;;  %v10297_v38 = vsub.f32 %v3822_v54, %v10288_v2  ;;  %v3831_v10 = vsel %vm336_vm0, %v7134_v22, 0  ;;  %v3719_v21 = vpop.f32.mrb[37].mxu0  ;;  %7173 = vmatprep.mubr.f32.mxu1 %v4146_v14  ;;  %v4165_v37 = vsub.f32 %v10277_v42, %v11258_v63 }
 0x522   : > { %v11263_v36 = vand.u32 4294901760, %v10291_v5  ;;  %v10304_v60 = vand.u32 4294901760, %v3831_v10  ;;  %v3828_v16 = vsel %vm336_vm0, %v3719_v21, 0  ;;  %7174 = vmatmul.mubr.f32.gmra.mrb[30].mxu1 %v4156_v57  ;;  %v4176_v14 = vand.u32 4294901760, %v4175_v48 }
 0x523   : > { %v11266_v7 = vand.u32 4294901760, %v10297_v38  ;;  %v10308_v50 = vand.u32 4294901760, %v3828_v16  ;;  %v4166_v54 = vand.u32 4294901760, %v4165_v37 }
 0x524   : > { %11512 = vst [vmem:[#allocation24_spill] sm:$0xff] %v10304_v60  ;;  %v10311_v22 = vsub.f32 %v3831_v10, %v10304_v60  ;;  %v4195_v63 = vsub.f32 %v10291_v5, %v11263_v36 }
 0x525   : > { %11513 = vst [vmem:[#allocation26_spill] sm:$0xff] %v10308_v50  ;;  %v10317_v42 = vsub.f32 %v3828_v16, %v10308_v50  ;;  %7176 = vmatprep.mubr.f32.mxu1 %v4166_v54  ;;  %v4185_v57 = vsub.f32 %v10297_v38, %v11266_v7  ;;  %v11526_v7 = vld [vmem:[#allocation14_spill] sm:$0xff] }
 0x526   : > { %v11264_v21 = vand.u32 4294901760, %v10311_v22  ;;  %7177 = vmatmul.mubr.f32.gmra.mrb[32].mxu1 %v4176_v14  ;;  %v4196_v28 = vand.u32 4294901760, %v4195_v63  ;;  %v11516_v63 = vld [vmem:[#allocation8_spill] sm:$0xff]  ;;  %v11518_v14 = vld [vmem:[#allocation9_spill] sm:$0xff] }
 0x527   : > { %v11265_v37 = vand.u32 4294901760, %v10317_v42  ;;  %v4186_v10 = vand.u32 4294901760, %v4185_v57  ;;  %v11519_v57 = vld [vmem:[#allocation10_spill] sm:$0xff] }
 0x528   : > { %v4215_v48 = vsub.f32 %v10311_v22, %v11264_v21  ;;  %v11524_v21 = vld [vmem:[#allocation17_spill] sm:$0xff] }
 0x529   : > { %7179 = vmatprep.mubr.f32.mxu1 %v4186_v10  ;;  %v4205_v16 = vsub.f32 %v10317_v42, %v11265_v37  ;;  %v11520_v10 = vld [vmem:[#allocation5_spill] sm:$0xff]  ;;  %v11525_v37 = vld [vmem:[#allocation19_spill] sm:$0xff] }
 0x52a   : > { %7180 = vmatmul.mubr.f32.gmra.mrb[34].mxu1 %v4196_v28  ;;  %v4216_v36 = vand.u32 4294901760, %v4215_v48  ;;  %v11515_v28 = vld [vmem:[#allocation4_spill] sm:$0xff]  ;;  %v11521_v48 = vld [vmem:[#allocation11_spill] sm:$0xff] }
 0x52b   : > { %v4206_v54 = vand.u32 4294901760, %v4205_v16  ;;  %v11522_v16 = vld [vmem:[#allocation6_spill] sm:$0xff] }
 0x52d   : > { %7182 = vmatprep.mubr.f32.mxu1 %v4206_v54  ;;  %v11523_v54 = vld [vmem:[#allocation12_spill] sm:$0xff] }
 0x52e   : > { %7183 = vmatmul.mubr.f32.gmra.mrb[36].mxu1 %v4216_v36  ;;  %v11517_v36 = vld [vmem:[#allocation7_spill] sm:$0xff] }
 0x52f   : > { %7187 = vmatprep.mubr.f32.mxu1 %v10013_v43 }
 0x532   : > { %7188 = vmatmul.mubr.f32.vlgmr.msra.gmra.mrb[6].mxu1 %v10010_v39 }
 0x533   : > { %7190 = vmatprep.mubr.f32.mxu1 %v10027_v35  ;;  %7236 = vmatpush3.msra.mxu1 %v10002_v25  ;;  %v11514_v25 = vld [vmem:[#allocation3_spill] sm:$0xff] }
 0x534   : > { %7285 = vmatprep.subr.mxu1 %v11489_v0 }
 0x536   : > { %7191 = vmatmul.mubr.f32.gmra.mrb[8].mxu1 %v10023_v3 }
 0x537   : > { %7193 = vmatprep.mubr.f32.mxu1 %v10047_v62 }
 0x53a   : > { %7194 = vmatmul.mubr.f32.gmra.mrb[10].mxu1 %v10043_v31 }
 0x53b   : > { %7196 = vmatprep.mubr.f32.mxu1 %v10067_v4 }
 0x53e   : > { %7197 = vmatmul.mubr.f32.gmra.mrb[12].mxu1 %v10063_v51 }
 0x53f   : > { %7199 = vmatprep.mubr.f32.mxu1 %v10088_v32 }
 0x542   : > { %7200 = vmatmul.mubr.f32.gmra.mrb[14].mxu1 %v10084_v1 }
 0x543   : > { %7202 = vmatprep.mubr.f32.mxu1 %v10108_v52 }
 0x546   : > { %7203 = vmatmul.mubr.f32.gmra.mrb[16].mxu1 %v10104_v27 }
 0x547   : > { %7205 = vmatprep.mubr.f32.mxu1 %v10128_v45 }
 0x54a   : > { %7206 = vmatmul.mubr.f32.gmra.mrb[18].mxu1 %v10124_v17 }
 0x54b   : > { %7208 = vmatprep.mubr.f32.mxu1 %v10148_v53 }
 0x54e   : > { %7209 = vmatmul.mubr.f32.gmra.mrb[20].mxu1 %v10144_v55 }
 0x54f   : > { %7211 = vmatprep.mubr.f32.mxu1 %v10168_v58 }
 0x552   : > { %7212 = vmatmul.mubr.f32.gmra.mrb[22].mxu1 %v10164_v23 }
 0x553   : > { %7214 = vmatprep.mubr.f32.mxu1 %v10188_v12 }
 0x556   : > { %7215 = vmatmul.mubr.f32.gmra.mrb[24].mxu1 %v10184_v24 }
 0x557   : > { %7217 = vmatprep.mubr.f32.mxu1 %v10208_v47 }
 0x55a   : > { %7218 = vmatmul.mubr.f32.gmra.mrb[26].mxu1 %v10204_v11 }
 0x55b   : > { %7220 = vmatprep.mubr.f32.mxu1 %v10228_v49 }
 0x55e   : > { %7221 = vmatmul.mubr.f32.gmra.mrb[28].mxu1 %v10224_v56 }
 0x55f   : > { %7223 = vmatprep.mubr.f32.mxu1 %v10248_v8  ;;  %v11534_v8 = vand.u32 4294901760, %v10050_v9 }
 0x562   : > { %7224 = vmatmul.mubr.f32.gmra.mrb[30].mxu1 %v10244_v6  ;;  %v11533_v6 = vand.u32 4294901760, %v10056_v13 }
 0x563   : > { %7226 = vmatprep.mubr.f32.mxu1 %v10268_v15  ;;  %v11532_v15 = vand.u32 4294901760, %v10033_v40 }
 0x566   : > { %7227 = vmatmul.mubr.f32.gmra.mrb[32].mxu1 %v10264_v29  ;;  %v11531_v29 = vand.u32 4294901760, %v10036_v18 }
 0x567   : > { %7229 = vmatprep.mubr.f32.mxu1 %v10288_v2  ;;  %v11530_v2 = vand.u32 4294901760, %v10016_v59 }
 0x56a   : > { %7230 = vmatmul.mubr.f32.gmra.mrb[34].mxu1 %v10284_v30  ;;  %v11529_v30 = vand.u32 4294901760, %v10019_v34 }
 0x56b   : > { %7232 = vmatprep.mubr.f32.mxu1 %v10308_v50  ;;  %v11528_v50 = vld [vmem:[#allocation2_spill] sm:$0xff] }
 0x56e   : > { %7233 = vmatmul.mubr.f32.gmra.mrb[36].mxu1 %v10304_v60  ;;  %v11527_v60 = vld [vmem:[#allocation21_spill] sm:$0xff] }
 0x56f   : > { %7237 = vmatprep.mubr.f32.mxu1 %v10019_v34  ;;  %v11535_v34 = vand.u32 4294901760, %v10077_v33 }
 0x572   : > { %7238 = vmatmul.mubr.f32.vlgmr.msra.gmra.mrb[6].mxu1 %v10016_v59  ;;  %v11536_v59 = vand.u32 4294901760, %v10070_v19 }
 0x573   : > { %7240 = vmatprep.mubr.f32.mxu1 %v10036_v18  ;;  %7286 = vmatpush3.msra.mxu1 %v11489_v0  ;;  %v11537_v18 = vand.u32 4294901760, %v10097_v61 }
 0x574   : > { %7335 = vmatprep.subr.mxu1 %v10005_v41 }
 0x576   : > { %7241 = vmatmul.mubr.f32.gmra.mrb[8].mxu1 %v10033_v40  ;;  %v11539_v40 = vand.u32 4294901760, %v10117_v46 }
 0x577   : > { %7243 = vmatprep.mubr.f32.mxu1 %v10056_v13  ;;  %v11542_v13 = vand.u32 4294901760, %v11514_v25 }
 0x57a   : > { %7244 = vmatmul.mubr.f32.gmra.mrb[10].mxu1 %v10050_v9  ;;  %v11541_v9 = vand.u32 4294901760, %v10137_v44 }
 0x57b   : > { %7246 = vmatprep.mubr.f32.mxu1 %v10077_v33  ;;  %v11544_v33 = vand.u32 4294901760, %v11516_v63 }
 0x57e   : > { %7247 = vmatmul.mubr.f32.gmra.mrb[12].mxu1 %v10070_v19  ;;  %v11543_v19 = vand.u32 4294901760, %v11515_v28 }
 0x57f   : > { %7249 = vmatprep.mubr.f32.mxu1 %v10097_v61  ;;  %v11546_v61 = vand.u32 4294901760, %v11518_v14 }
 0x582   : > { %7250 = vmatmul.mubr.f32.gmra.mrb[14].mxu1 %v10091_v20 }
 0x583   : > { %7252 = vmatprep.mubr.f32.mxu1 %v10117_v46  ;;  %v11549_v46 = vand.u32 4294901760, %v11521_v48 }
 0x586   : > { %7253 = vmatmul.mubr.f32.gmra.mrb[16].mxu1 %v10111_v26 }
 0x587   : > { %7255 = vmatprep.mubr.f32.mxu1 %v10137_v44  ;;  %v11550_v44 = vand.u32 4294901760, %v11522_v16 }
 0x58a   : > { %7256 = vmatmul.mubr.f32.gmra.mrb[18].mxu1 %v11514_v25  ;;  %v11555_v25 = vand.u32 4294901760, %v11527_v60 }
 0x58b   : > { %7258 = vmatprep.mubr.f32.mxu1 %v11515_v28  ;;  %v11556_v28 = vand.u32 4294901760, %v11528_v50 }
 0x58e   : > { %7259 = vmatmul.mubr.f32.gmra.mrb[20].mxu1 %v11516_v63  ;;  %v11557_v63 = vand.u32 4294901760, %v10297_v38 }
 0x58f   : > { %7261 = vmatprep.mubr.f32.mxu1 %v11517_v36 }
 0x592   : > { %7262 = vmatmul.mubr.f32.gmra.mrb[22].mxu1 %v11518_v14 }
 0x593   : > { %7264 = vmatprep.mubr.f32.mxu1 %v11519_v57 }
 0x596   : > { %7265 = vmatmul.mubr.f32.gmra.mrb[24].mxu1 %v11520_v10 }
 0x597   : > { %7267 = vmatprep.mubr.f32.mxu1 %v11521_v48 }
 0x59a   : > { %7268 = vmatmul.mubr.f32.gmra.mrb[26].mxu1 %v11522_v16 }
 0x59b   : > { %7270 = vmatprep.mubr.f32.mxu1 %v11523_v54 }
 0x59e   : > { %7271 = vmatmul.mubr.f32.gmra.mrb[28].mxu1 %v11524_v21 }
 0x59f   : > { %7273 = vmatprep.mubr.f32.mxu1 %v11525_v37 }
 0x5a2   : > { %7274 = vmatmul.mubr.f32.gmra.mrb[30].mxu1 %v11526_v7 }
 0x5a3   : > { %7276 = vmatprep.mubr.f32.mxu1 %v11527_v60  ;;  %v11564_v60 = vld [vmem:[#allocation20_spill] sm:$0xff] }
 0x5a6   : > { %7277 = vmatmul.mubr.f32.gmra.mrb[32].mxu1 %v11528_v50  ;;  %v11565_v50 = vld [vmem:[#allocation23_spill] sm:$0xff] }
 0x5a7   : > { %7279 = vmatprep.mubr.f32.mxu1 %v10297_v38  ;;  %v11563_v38 = vld [vmem:[#allocation25_spill] sm:$0xff] }
 0x5aa   : > { %7280 = vmatmul.mubr.f32.gmra.mrb[34].mxu1 %v10291_v5 }
 0x5ab   : > { %7282 = vmatprep.mubr.f32.mxu1 %v10317_v42 }
 0x5ae   : > { %7283 = vmatmul.mubr.f32.gmra.mrb[36].mxu1 %v10311_v22 }
 0x5af   : > { %7287 = vmatprep.mubr.f32.mxu1 %v11529_v30  ;;  %v11551_v30 = vand.u32 4294901760, %v11523_v54 }
 0x5b2   : > { %7288 = vmatmul.mubr.f32.vlgmr.msra.gmra.mrb[6].mxu1 %v11530_v2  ;;  %v11554_v2 = vand.u32 4294901760, %v11526_v7  ;;  %v11566_v7 = vld [vmem:[#allocation22_spill] sm:$0xff] }
 0x5b3   : > { %7290 = vmatprep.mubr.f32.mxu1 %v11531_v29  ;;  %7336 = vmatpush3.msra.mxu1 %v10005_v41  ;;  %v11538_v41 = vand.u32 4294901760, %v10091_v20  ;;  %v11545_v20 = vand.u32 4294901760, %v11517_v36  ;;  %v11547_v29 = vand.u32 4294901760, %v11519_v57  ;;  %v11558_v36 = vand.u32 4294901760, %v10291_v5  ;;  %v11567_v5 = vld [vmem:[#allocation26_spill] sm:$0xff] }
 0x5b4   : > { %7385 = vmatprep.subr.mxu1 %v11489_v0 }
 0x5b6   : > { %7291 = vmatmul.mubr.f32.gmra.mrb[8].mxu1 %v11532_v15  ;;  %v11553_v15 = vand.u32 4294901760, %v11525_v37  ;;  %v11560_v37 = vand.u32 4294901760, %v10311_v22  ;;  %v11568_v22 = vld [vmem:[#allocation24_spill] sm:$0xff] }
 0x5b7   : > { %7293 = vmatprep.mubr.f32.mxu1 %v11533_v6  ;;  %v11540_v6 = vand.u32 4294901760, %v10111_v26  ;;  %v11548_v26 = vand.u32 4294901760, %v11520_v10 }
 0x5ba   : > { %7294 = vmatmul.mubr.f32.gmra.mrb[10].mxu1 %v11534_v8  ;;  %v11552_v8 = vand.u32 4294901760, %v11524_v21  ;;  %v11559_v21 = vand.u32 4294901760, %v10317_v42  ;;  %v11562_v42 = vld [vmem:[#allocation18_spill] sm:$0xff] }
 0x5bb   : > { %7296 = vmatprep.mubr.f32.mxu1 %v11535_v34 }
 0x5be   : > { %7297 = vmatmul.mubr.f32.gmra.mrb[12].mxu1 %v11536_v59 }
 0x5bf   : > { %7299 = vmatprep.mubr.f32.mxu1 %v11537_v18 }
 0x5c2   : > { %7300 = vmatmul.mubr.f32.gmra.mrb[14].mxu1 %v11538_v41 }
 0x5c3   : > { %7302 = vmatprep.mubr.f32.mxu1 %v11539_v40 }
 0x5c6   : > { %7303 = vmatmul.mubr.f32.gmra.mrb[16].mxu1 %v11540_v6 }
 0x5c7   : > { %7305 = vmatprep.mubr.f32.mxu1 %v11541_v9 }
 0x5ca   : > { %7306 = vmatmul.mubr.f32.gmra.mrb[18].mxu1 %v11542_v13 }
 0x5cb   : > { %7308 = vmatprep.mubr.f32.mxu1 %v11543_v19 }
 0x5ce   : > { %7309 = vmatmul.mubr.f32.gmra.mrb[20].mxu1 %v11544_v33 }
 0x5cf   : > { %7311 = vmatprep.mubr.f32.mxu1 %v11545_v20 }
 0x5d2   : > { %7312 = vmatmul.mubr.f32.gmra.mrb[22].mxu1 %v11546_v61 }
 0x5d3   : > { %7314 = vmatprep.mubr.f32.mxu1 %v11547_v29 }
 0x5d6   : > { %7315 = vmatmul.mubr.f32.gmra.mrb[24].mxu1 %v11548_v26 }
 0x5d7   : > { %7317 = vmatprep.mubr.f32.mxu1 %v11549_v46 }
 0x5da   : > { %7318 = vmatmul.mubr.f32.gmra.mrb[26].mxu1 %v11550_v44 }
 0x5db   : > { %7320 = vmatprep.mubr.f32.mxu1 %v11551_v30 }
 0x5de   : > { %7321 = vmatmul.mubr.f32.gmra.mrb[28].mxu1 %v11552_v8 }
 0x5df   : > { %7323 = vmatprep.mubr.f32.mxu1 %v11553_v15 }
 0x5e2   : > { %7324 = vmatmul.mubr.f32.gmra.mrb[30].mxu1 %v11554_v2 }
 0x5e3   : > { %7326 = vmatprep.mubr.f32.mxu1 %v11555_v25 }
 0x5e6   : > { %7327 = vmatmul.mubr.f32.gmra.mrb[32].mxu1 %v11556_v28 }
 0x5e7   : > { %7329 = vmatprep.mubr.f32.mxu1 %v11557_v63 }
 0x5ea   : > { %7330 = vmatmul.mubr.f32.gmra.mrb[34].mxu1 %v11558_v36 }
 0x5eb   : > { %7332 = vmatprep.mubr.f32.mxu1 %v11559_v21 }
 0x5ee   : > { %7333 = vmatmul.mubr.f32.gmra.mrb[36].mxu1 %v11560_v37 }
 0x5ef   : > { %7337 = vmatprep.mubr.f32.mxu1 %v10013_v43 }
 0x5f2   : > { %7338 = vmatmul.mubr.f32.vlgmr.msra.gmra.mrb[6].mxu1 %v10010_v39 }
 0x5f3   : > { %7340 = vmatprep.mubr.f32.mxu1 %v10027_v35  ;;  %7386 = vmatpush3.msra.mxu1 %v11489_v0  ;;  %v11561_v0 = vld [vmem:[#allocation13_spill] sm:$0xff] }
 0x5f6   : > { %7341 = vmatmul.mubr.f32.gmra.mrb[8].mxu1 %v10023_v3 }
 0x5f7   : > { %7343 = vmatprep.mubr.f32.mxu1 %v10047_v62 }
 0x5fa   : > { %7344 = vmatmul.mubr.f32.gmra.mrb[10].mxu1 %v10043_v31 }
 0x5fb   : > { %7346 = vmatprep.mubr.f32.mxu1 %v10067_v4 }
 0x5fe   : > { %7347 = vmatmul.mubr.f32.gmra.mrb[12].mxu1 %v10063_v51 }
 0x5ff   : > { %7349 = vmatprep.mubr.f32.mxu1 %v10088_v32 }
 0x602   : > { %7350 = vmatmul.mubr.f32.gmra.mrb[14].mxu1 %v10084_v1 }
 0x603   : > { %7352 = vmatprep.mubr.f32.mxu1 %v10108_v52 }
 0x606   : > { %7353 = vmatmul.mubr.f32.gmra.mrb[16].mxu1 %v10104_v27 }
 0x607   : > { %7355 = vmatprep.mubr.f32.mxu1 %v10128_v45 }
 0x60a   : > { %7356 = vmatmul.mubr.f32.gmra.mrb[18].mxu1 %v10124_v17 }
 0x60b   : > { %7358 = vmatprep.mubr.f32.mxu1 %v10148_v53 }
 0x60e   : > { %7359 = vmatmul.mubr.f32.gmra.mrb[20].mxu1 %v10144_v55 }
 0x60f   : > { %7361 = vmatprep.mubr.f32.mxu1 %v10168_v58 }
 0x612   : > { %7362 = vmatmul.mubr.f32.gmra.mrb[22].mxu1 %v10164_v23 }
 0x613   : > { %7364 = vmatprep.mubr.f32.mxu1 %v10188_v12 }
 0x616   : > { %7365 = vmatmul.mubr.f32.gmra.mrb[24].mxu1 %v10184_v24 }
 0x617   : > { %7367 = vmatprep.mubr.f32.mxu1 %v10208_v47 }
 0x61a   : > { %7368 = vmatmul.mubr.f32.gmra.mrb[26].mxu1 %v10204_v11 }
 0x61b   : > { %7370 = vmatprep.mubr.f32.mxu1 %v10228_v49 }
 0x61e   : > { %7371 = vmatmul.mubr.f32.gmra.mrb[28].mxu1 %v10224_v56 }
 0x61f   : > { %7373 = vmatprep.mubr.f32.mxu1 %v11561_v0 }
 0x622   : > { %7374 = vmatmul.mubr.f32.gmra.mrb[30].mxu1 %v11562_v42 }
 0x623   : > { %7376 = vmatprep.mubr.f32.mxu1 %v11563_v38 }
 0x626   : > { %7377 = vmatmul.mubr.f32.gmra.mrb[32].mxu1 %v11564_v60 }
 0x627   : > { %7379 = vmatprep.mubr.f32.mxu1 %v11565_v50 }
 0x62a   : > { %7380 = vmatmul.mubr.f32.gmra.mrb[34].mxu1 %v11566_v7 }
 0x62b   : > { %7382 = vmatprep.mubr.f32.mxu1 %v11567_v5 }
 0x62e   : > { %7383 = vmatmul.mubr.f32.gmra.mrb[36].mxu1 %v11568_v22 }
 0x62f   : > { %7387 = vmatprep.mubr.f32.mxu1 %v10013_v43 }
 0x632   : > { %7388 = vmatmul.mubr.f32.vlgmr.msra.gmra.mrb[6].mxu1 %v10010_v39  ;;  %v10532_v39 = vld [vmem:[%s11068_s3] ss:$0 sm:$0xff] }
 0x633   : > { %7390 = vmatprep.mubr.f32.mxu1 %v10027_v35 }
 0x636   : > { %7391 = vmatmul.mubr.f32.gmra.mrb[8].mxu1 %v10023_v3 }
 0x637   : > { %7393 = vmatprep.mubr.f32.mxu1 %v10047_v62 }
 0x63a   : > { %7394 = vmatmul.mubr.f32.gmra.mrb[10].mxu1 %v10043_v31 }
 0x63b   : > { %7396 = vmatprep.mubr.f32.mxu1 %v10067_v4 }
 0x63e   : > { %7397 = vmatmul.mubr.f32.gmra.mrb[12].mxu1 %v10063_v51 }
 0x63f   : > { %7399 = vmatprep.mubr.f32.mxu1 %v10088_v32 }
 0x642   : > { %7400 = vmatmul.mubr.f32.gmra.mrb[14].mxu1 %v10084_v1 }
 0x643   : > { %7402 = vmatprep.mubr.f32.mxu1 %v10108_v52 }
 0x646   : > { %7403 = vmatmul.mubr.f32.gmra.mrb[16].mxu1 %v10104_v27 }
 0x647   : > { %7405 = vmatprep.mubr.f32.mxu1 %v10128_v45 }
 0x64a   : > { %7406 = vmatmul.mubr.f32.gmra.mrb[18].mxu1 %v10124_v17 }
 0x64b   : > { %7408 = vmatprep.mubr.f32.mxu1 %v10148_v53 }
 0x64e   : > { %7409 = vmatmul.mubr.f32.gmra.mrb[20].mxu1 %v10144_v55 }
 0x64f   : > { %7411 = vmatprep.mubr.f32.mxu1 %v10168_v58 }
 0x652   : > { %7412 = vmatmul.mubr.f32.gmra.mrb[22].mxu1 %v10164_v23 }
 0x653   : > { %7414 = vmatprep.mubr.f32.mxu1 %v10188_v12 }
 0x656   : > { %7415 = vmatmul.mubr.f32.gmra.mrb[24].mxu1 %v10184_v24 }
 0x657   : > { %7417 = vmatprep.mubr.f32.mxu1 %v10208_v47 }
 0x65a   : > { %7418 = vmatmul.mubr.f32.gmra.mrb[26].mxu1 %v10204_v11 }
 0x65b   : > { %7420 = vmatprep.mubr.f32.mxu1 %v10228_v49 }
 0x65e   : > { %7421 = vmatmul.mubr.f32.gmra.mrb[28].mxu1 %v10224_v56 }
 0x65f   : > { %7423 = vmatprep.mubr.f32.mxu1 %v11561_v0 }
 0x662   : > { %7424 = vmatmul.mubr.f32.gmra.mrb[30].mxu1 %v11562_v42 }
 0x663   : > { %7426 = vmatprep.mubr.f32.mxu1 %v11563_v38 }
 0x666   : > { %7427 = vmatmul.mubr.f32.gmra.mrb[32].mxu1 %v11564_v60 }
 0x667   : > { %7429 = vmatprep.mubr.f32.mxu1 %v11565_v50 }
 0x66a   : > { %7430 = vmatmul.mubr.f32.gmra.mrb[34].mxu1 %v11566_v7 }
 0x66b   : > { %7432 = vmatprep.mubr.f32.mxu1 %v11567_v5 }
 0x66e   : > { %7433 = vmatmul.mubr.f32.gmra.mrb[36].mxu1 %v11568_v22 }
 0x705   : > { %v7389_v43 = vpop.f32.mrb[6].mxu1 }
 0x706   : > { %v10535_v3 = vadd.f32 %v7389_v43, %v10532_v39  ;;  %v5425_v35 = vpop.f32.mrb[7].mxu1 }
 0x707   : > { %v10538_v49 = vadd.f32 %v10532_v39, %v5425_v35 }
 0x708   : > { %v5619_v31 = vsel %vm5615_vm2, %v10535_v3, 0.0 }
 0x709   : > { %5620 = vadd.xlane.f32.xlu1 %v5619_v31  ;;  %v7392_v62 = vpop.f32.mrb[8].mxu1  ;;  %v5616_v51 = vsel %vm5615_vm2, %v10538_v49, 0.0 }
 0x70a   : > { %v10545_v56 = vadd.f32 %v7392_v62, %v10532_v39  ;;  %v5437_v4 = vpop.f32.mrb[9].mxu1  ;;  %5617 = vadd.xlane.f32.xlu0 %v5616_v51 }
 0x70b   : > { %v10548_v47 = vadd.f32 %v10532_v39, %v5437_v4 }
 0x70c   : > { %v5625_v1 = vsel %vm5615_vm2, %v10545_v56, 0.0 }
 0x70d   : > { %5626 = vadd.xlane.f32.xlu1 %v5625_v1  ;;  %v7395_v32 = vpop.f32.mrb[10].mxu1  ;;  %v5622_v27 = vsel %vm5615_vm2, %v10548_v47, 0.0 }
 0x70e   : > { %v10555_v11 = vadd.f32 %v7395_v32, %v10532_v39  ;;  %v5449_v52 = vpop.f32.mrb[11].mxu1  ;;  %5623 = vadd.xlane.f32.xlu0 %v5622_v27 }
 0x70f   : > { %v10558_v12 = vadd.f32 %v10532_v39, %v5449_v52 }
 0x710   : > { %v5631_v17 = vsel %vm5615_vm2, %v10555_v11, 0.0 }
 0x711   : > { %5632 = vadd.xlane.f32.xlu1 %v5631_v17  ;;  %v7398_v45 = vpop.f32.mrb[12].mxu1  ;;  %v5628_v55 = vsel %vm5615_vm2, %v10558_v12, 0.0 }
 0x712   : > { %v10565_v24 = vadd.f32 %v7398_v45, %v10532_v39  ;;  %v5461_v53 = vpop.f32.mrb[13].mxu1  ;;  %5629 = vadd.xlane.f32.xlu0 %v5628_v55 }
 0x713   : > { %v10568_v23 = vadd.f32 %v10532_v39, %v5461_v53 }
 0x714   : > { %v5637_v58 = vsel %vm5615_vm2, %v10565_v24, 0.0 }
 0x715   : > { %5638 = vadd.xlane.f32.xlu1 %v5637_v58  ;;  %v7401_v14 = vpop.f32.mrb[14].mxu1  ;;  %v5634_v57 = vsel %vm5615_vm2, %v10568_v23, 0.0 }
 0x716   : > { %v10575_v10 = vadd.f32 %v7401_v14, %v10532_v39  ;;  %v5473_v48 = vpop.f32.mrb[15].mxu1  ;;  %5635 = vadd.xlane.f32.xlu0 %v5634_v57 }
 0x717   : > { %v10578_v16 = vadd.f32 %v10532_v39, %v5473_v48 }
 0x718   : > { %v5643_v54 = vsel %vm5615_vm2, %v10575_v10, 0.0 }
 0x719   : > { %5644 = vadd.xlane.f32.xlu1 %v5643_v54  ;;  %v7404_v34 = vpop.f32.mrb[16].mxu1  ;;  %v5640_v59 = vsel %vm5615_vm2, %v10578_v16, 0.0 }
 0x71a   : > { %v10585_v18 = vadd.f32 %v7404_v34, %v10532_v39  ;;  %v5485_v41 = vpop.f32.mrb[17].mxu1  ;;  %5641 = vadd.xlane.f32.xlu0 %v5640_v59 }
 0x71b   : > { %v10588_v40 = vadd.f32 %v10532_v39, %v5485_v41 }
 0x71c   : > { %v5649_v6 = vsel %vm5615_vm2, %v10585_v18, 0.0 }
 0x71d   : > { %5650 = vadd.xlane.f32.xlu1 %v5649_v6  ;;  %v7407_v9 = vpop.f32.mrb[18].mxu1  ;;  %v5646_v13 = vsel %vm5615_vm2, %v10588_v40, 0.0 }
 0x71e   : > { %v10595_v19 = vadd.f32 %v7407_v9, %v10532_v39  ;;  %v5497_v33 = vpop.f32.mrb[19].mxu1  ;;  %5647 = vadd.xlane.f32.xlu0 %v5646_v13 }
 0x71f   : > { %v10598_v20 = vadd.f32 %v10532_v39, %v5497_v33 }
 0x720   : > { %v5655_v61 = vsel %vm5615_vm2, %v10595_v19, 0.0 }
 0x721   : > { %5656 = vadd.xlane.f32.xlu1 %v5655_v61  ;;  %v7410_v29 = vpop.f32.mrb[20].mxu1  ;;  %v5652_v26 = vsel %vm5615_vm2, %v10598_v20, 0.0 }
 0x722   : > { %v10605_v46 = vadd.f32 %v7410_v29, %v10532_v39  ;;  %v5509_v44 = vpop.f32.mrb[21].mxu1  ;;  %5653 = vadd.xlane.f32.xlu0 %v5652_v26 }
 0x723   : > { %v10608_v30 = vadd.f32 %v10532_v39, %v5509_v44 }
 0x724   : > { %v5661_v8 = vsel %vm5615_vm2, %v10605_v46, 0.0 }
 0x725   : > { %5662 = vadd.xlane.f32.xlu1 %v5661_v8  ;;  %v7413_v15 = vpop.f32.mrb[22].mxu1  ;;  %v5658_v2 = vsel %vm5615_vm2, %v10608_v30, 0.0 }
 0x726   : > { %v10615_v25 = vadd.f32 %v7413_v15, %v10532_v39  ;;  %v5521_v28 = vpop.f32.mrb[23].mxu1  ;;  %5659 = vadd.xlane.f32.xlu0 %v5658_v2 }
 0x727   : > { %v10618_v63 = vadd.f32 %v10532_v39, %v5521_v28 }
 0x728   : > { %v5667_v36 = vsel %vm5615_vm2, %v10615_v25, 0.0 }
 0x729   : > { %5668 = vadd.xlane.f32.xlu1 %v5667_v36  ;;  %v7416_v21 = vpop.f32.mrb[24].mxu1  ;;  %v5664_v37 = vsel %vm5615_vm2, %v10618_v63, 0.0 }
 0x72a   : > { %v10625_v0 = vadd.f32 %v7416_v21, %v10532_v39  ;;  %v5533_v42 = vpop.f32.mrb[25].mxu1  ;;  %5665 = vadd.xlane.f32.xlu0 %v5664_v37 }
 0x72b   : > { %v10628_v38 = vadd.f32 %v10532_v39, %v5533_v42 }
 0x72c   : > { %v5673_v60 = vsel %vm5615_vm2, %v10625_v0, 0.0 }
 0x72d   : > { %5674 = vadd.xlane.f32.xlu1 %v5673_v60  ;;  %v7419_v50 = vpop.f32.mrb[26].mxu1  ;;  %v5670_v7 = vsel %vm5615_vm2, %v10628_v38, 0.0 }
 0x72e   : > { %v10635_v5 = vadd.f32 %v7419_v50, %v10532_v39  ;;  %v5545_v22 = vpop.f32.mrb[27].mxu1  ;;  %5671 = vadd.xlane.f32.xlu0 %v5670_v7 }
 0x72f   : > { %v10638_v43 = vadd.f32 %v10532_v39, %v5545_v22 }
 0x730   : > { %v5679_v35 = vsel %vm5615_vm2, %v10635_v5, 0.0 }
 0x731   : > { %5680 = vadd.xlane.f32.xlu1 %v5679_v35  ;;  %v7422_v31 = vpop.f32.mrb[28].mxu1  ;;  %v5676_v62 = vsel %vm5615_vm2, %v10638_v43, 0.0 }
 0x732   : > { %v10645_v51 = vadd.f32 %v7422_v31, %v10532_v39  ;;  %v5557_v4 = vpop.f32.mrb[29].mxu1  ;;  %5677 = vadd.xlane.f32.xlu0 %v5676_v62 }
 0x733   : > { %v10648_v1 = vadd.f32 %v10532_v39, %v5557_v4 }
 0x734   : > { %v5685_v32 = vsel %vm5615_vm2, %v10645_v51, 0.0 }
 0x735   : > { %5686 = vadd.xlane.f32.xlu1 %v5685_v32  ;;  %v7425_v27 = vpop.f32.mrb[30].mxu1  ;;  %v5682_v52 = vsel %vm5615_vm2, %v10648_v1, 0.0 }
 0x736   : > { %v10655_v17 = vadd.f32 %v7425_v27, %v10532_v39  ;;  %v5569_v45 = vpop.f32.mrb[31].mxu1  ;;  %5683 = vadd.xlane.f32.xlu0 %v5682_v52 }
 0x737   : > { %v10658_v55 = vadd.f32 %v10532_v39, %v5569_v45 }
 0x738   : > { %v5691_v53 = vsel %vm5615_vm2, %v10655_v17, 0.0 }
 0x739   : > { %5692 = vadd.xlane.f32.xlu1 %v5691_v53  ;;  %v7428_v58 = vpop.f32.mrb[32].mxu1  ;;  %v5688_v14 = vsel %vm5615_vm2, %v10658_v55, 0.0 }
 0x73a   : > { %v10665_v57 = vadd.f32 %v7428_v58, %v10532_v39  ;;  %v5581_v48 = vpop.f32.mrb[33].mxu1  ;;  %5689 = vadd.xlane.f32.xlu0 %v5688_v14 }
 0x73b   : > { %v10668_v54 = vadd.f32 %v10532_v39, %v5581_v48 }
 0x73c   : > { %v5697_v34 = vsel %vm5615_vm2, %v10665_v57, 0.0 }
 0x73d   : > { %5698 = vadd.xlane.f32.xlu1 %v5697_v34  ;;  %v7431_v59 = vpop.f32.mrb[34].mxu1  ;;  %v5694_v41 = vsel %vm5615_vm2, %v10668_v54, 0.0 }
 0x73e   : > { %v10675_v6 = vadd.f32 %v7431_v59, %v10532_v39  ;;  %v5593_v9 = vpop.f32.mrb[35].mxu1  ;;  %5695 = vadd.xlane.f32.xlu0 %v5694_v41 }
 0x73f   : > { %v10678_v13 = vadd.f32 %v10532_v39, %v5593_v9 }
 0x740   : > { %v5703_v33 = vsel %vm5615_vm2, %v10675_v6, 0.0 }
 0x741   : > { %5704 = vadd.xlane.f32.xlu1 %v5703_v33  ;;  %v7434_v61 = vpop.f32.mrb[36].mxu1  ;;  %v5700_v29 = vsel %vm5615_vm2, %v10678_v13, 0.0 }
 0x742   : > { %v10685_v26 = vadd.f32 %v7434_v61, %v10532_v39  ;;  %v5605_v44 = vpop.f32.mrb[37].mxu1  ;;  %5701 = vadd.xlane.f32.xlu0 %v5700_v29 }
 0x743   : > { %v10688_v8 = vadd.f32 %v10532_v39, %v5605_v44 }
 0x744   : > { %v5709_v15 = vsel %vm5615_vm2, %v10685_v26, 0.0 }
 0x745   : > { %5710 = vadd.xlane.f32.xlu1 %v5709_v15  ;;  %v5706_v2 = vsel %vm5615_vm2, %v10688_v8, 0.0 }
 0x746   : > { %5707 = vadd.xlane.f32.xlu0 %v5706_v2 }
 0x796   : > { %v5621_v28 = vpop.xlane.xlu1 %5620 }
 0x797   : > { %v5714_v36 = vmul.f32 0.125, %v5621_v28  ;;  %v5618_v21 = vpop.xlane.xlu0 %5617 }
 0x798   : > { %v5713_v37 = vmul.f32 0.125, %v5618_v21 }
 0x799   : > { %v10695_v42 = vsub.f32 %v10535_v3, %v5714_v36 }
 0x79a   : > { %v10698_v60 = vsub.f32 %v10538_v49, %v5713_v37  ;;  %v5627_v39 = vpop.xlane.xlu1 %5626 }
 0x79b   : > { %v5716_v50 = vmul.f32 0.125, %v5627_v39  ;;  %v5624_v7 = vpop.xlane.xlu0 %5623  ;;  %v5778_v22 = vmul.f32 %v10695_v42, %v10695_v42 }
 0x79c   : > { %v5715_v35 = vmul.f32 0.125, %v5624_v7  ;;  %v5777_v31 = vmul.f32 %v10698_v60, %v10698_v60 }
 0x79d   : > { %v10705_v62 = vsub.f32 %v10545_v56, %v5716_v50  ;;  %v5812_v4 = vsel %vm5615_vm2, %v5778_v22, 0.0 }
 0x79e   : > { %v10709_v3 = vsub.f32 %v10548_v47, %v5715_v35  ;;  %v5633_v49 = vpop.xlane.xlu1 %5632  ;;  %5813 = vadd.xlane.f32.xlu1 %v5812_v4  ;;  %v5809_v32 = vsel %vm5615_vm2, %v5777_v31, 0.0 }
 0x79f   : > { %v5718_v27 = vmul.f32 0.125, %v5633_v49  ;;  %5810 = vadd.xlane.f32.xlu0 %v5809_v32  ;;  %v5630_v52 = vpop.xlane.xlu0 %5629  ;;  %v5780_v45 = vmul.f32 %v10705_v62, %v10705_v62 }
 0x7a0   : > { %v5717_v53 = vmul.f32 0.125, %v5630_v52  ;;  %v5779_v56 = vmul.f32 %v10709_v3, %v10709_v3 }
 0x7a1   : > { %v10717_v58 = vsub.f32 %v10555_v11, %v5718_v27  ;;  %v5818_v47 = vsel %vm5615_vm2, %v5780_v45, 0.0 }
 0x7a2   : > { %v10721_v14 = vsub.f32 %v10558_v12, %v5717_v53  ;;  %v5639_v48 = vpop.xlane.xlu1 %5638  ;;  %5819 = vadd.xlane.f32.xlu1 %v5818_v47  ;;  %v5815_v34 = vsel %vm5615_vm2, %v5779_v56, 0.0 }
 0x7a3   : > { %v5720_v59 = vmul.f32 0.125, %v5639_v48  ;;  %5816 = vadd.xlane.f32.xlu0 %v5815_v34  ;;  %v5636_v41 = vpop.xlane.xlu0 %5635  ;;  %v5782_v9 = vmul.f32 %v10717_v58, %v10717_v58 }
 0x7a4   : > { %v5719_v33 = vmul.f32 0.125, %v5636_v41  ;;  %v5781_v11 = vmul.f32 %v10721_v14, %v10721_v14 }
 0x7a5   : > { %v10729_v61 = vsub.f32 %v10565_v24, %v5720_v59  ;;  %v5824_v12 = vsel %vm5615_vm2, %v5782_v9, 0.0 }
 0x7a6   : > { %v10733_v29 = vsub.f32 %v10568_v23, %v5719_v33  ;;  %v5645_v44 = vpop.xlane.xlu1 %5644  ;;  %5825 = vadd.xlane.f32.xlu1 %v5824_v12  ;;  %v5821_v15 = vsel %vm5615_vm2, %v5781_v11, 0.0 }
 0x7a7   : > { %v5722_v2 = vmul.f32 0.125, %v5645_v44  ;;  %5822 = vadd.xlane.f32.xlu0 %v5821_v15  ;;  %v5642_v28 = vpop.xlane.xlu0 %5641  ;;  %v5784_v36 = vmul.f32 %v10729_v61, %v10729_v61 }
 0x7a8   : > { %v5721_v21 = vmul.f32 0.125, %v5642_v28  ;;  %v5783_v24 = vmul.f32 %v10733_v29, %v10733_v29 }
 0x7a9   : > { %v10741_v37 = vsub.f32 %v10575_v10, %v5722_v2  ;;  %v5830_v23 = vsel %vm5615_vm2, %v5784_v36, 0.0 }
 0x7aa   : > { %v10745_v39 = vsub.f32 %v10578_v16, %v5721_v21  ;;  %v5651_v50 = vpop.xlane.xlu1 %5650  ;;  %5831 = vadd.xlane.f32.xlu1 %v5830_v23  ;;  %v5827_v7 = vsel %vm5615_vm2, %v5783_v24, 0.0 }
 0x7ab   : > { %v5724_v22 = vmul.f32 0.125, %v5651_v50  ;;  %5828 = vadd.xlane.f32.xlu0 %v5827_v7  ;;  %v5648_v35 = vpop.xlane.xlu0 %5647  ;;  %v5786_v31 = vmul.f32 %v10741_v37, %v10741_v37 }
 0x7ac   : > { %v5723_v4 = vmul.f32 0.125, %v5648_v35  ;;  %v5785_v10 = vmul.f32 %v10745_v39, %v10745_v39 }
 0x7ad   : > { %v10753_v49 = vsub.f32 %v10585_v18, %v5724_v22  ;;  %v5836_v16 = vsel %vm5615_vm2, %v5786_v31, 0.0 }
 0x7ae   : > { %v10757_v32 = vsub.f32 %v10588_v40, %v5723_v4  ;;  %v5657_v27 = vpop.xlane.xlu1 %5656  ;;  %5837 = vadd.xlane.f32.xlu1 %v5836_v16  ;;  %v5833_v52 = vsel %vm5615_vm2, %v5785_v10, 0.0 }
 0x7af   : > { %v5726_v45 = vmul.f32 0.125, %v5657_v27  ;;  %5834 = vadd.xlane.f32.xlu0 %v5833_v52  ;;  %v5654_v53 = vpop.xlane.xlu0 %5653  ;;  %v5788_v56 = vmul.f32 %v10753_v49, %v10753_v49 }
 0x7b0   : > { %v5725_v47 = vmul.f32 0.125, %v5654_v53  ;;  %v5787_v18 = vmul.f32 %v10757_v32, %v10757_v32 }
 0x7b1   : > { %v10765_v48 = vsub.f32 %v10595_v19, %v5726_v45  ;;  %v5842_v40 = vsel %vm5615_vm2, %v5788_v56, 0.0 }
 0x7b2   : > { %v10769_v34 = vsub.f32 %v10598_v20, %v5725_v47  ;;  %v5663_v59 = vpop.xlane.xlu1 %5662  ;;  %5843 = vadd.xlane.f32.xlu1 %v5842_v40  ;;  %v5839_v41 = vsel %vm5615_vm2, %v5787_v18, 0.0 }
 0x7b3   : > { %v5728_v9 = vmul.f32 0.125, %v5663_v59  ;;  %5840 = vadd.xlane.f32.xlu0 %v5839_v41  ;;  %v5660_v33 = vpop.xlane.xlu0 %5659  ;;  %v5790_v11 = vmul.f32 %v10765_v48, %v10765_v48 }
 0x7b4   : > { %v5727_v12 = vmul.f32 0.125, %v5660_v33  ;;  %v5789_v19 = vmul.f32 %v10769_v34, %v10769_v34 }
 0x7b5   : > { %v10777_v44 = vsub.f32 %v10605_v46, %v5728_v9  ;;  %v5848_v20 = vsel %vm5615_vm2, %v5790_v11, 0.0 }
 0x7b6   : > { %v10781_v15 = vsub.f32 %v10608_v30, %v5727_v12  ;;  %v5669_v2 = vpop.xlane.xlu1 %5668  ;;  %5849 = vadd.xlane.f32.xlu1 %v5848_v20  ;;  %v5845_v28 = vsel %vm5615_vm2, %v5789_v19, 0.0 }
 0x7b7   : > { %v5730_v36 = vmul.f32 0.125, %v5669_v2  ;;  %5846 = vadd.xlane.f32.xlu0 %v5845_v28  ;;  %v5666_v21 = vpop.xlane.xlu0 %5665  ;;  %v5792_v24 = vmul.f32 %v10777_v44, %v10777_v44 }
 0x7b8   : > { %v5729_v23 = vmul.f32 0.125, %v5666_v21  ;;  %v5791_v46 = vmul.f32 %v10781_v15, %v10781_v15 }
 0x7b9   : > { %v10789_v50 = vsub.f32 %v10615_v25, %v5730_v36  ;;  %v5854_v30 = vsel %vm5615_vm2, %v5792_v24, 0.0 }
 0x7ba   : > { %v10793_v7 = vsub.f32 %v10618_v63, %v5729_v23  ;;  %v5675_v22 = vpop.xlane.xlu1 %5674  ;;  %5855 = vadd.xlane.f32.xlu1 %v5854_v30  ;;  %v5851_v35 = vsel %vm5615_vm2, %v5791_v46, 0.0 }
 0x7bb   : > { %v5732_v31 = vmul.f32 0.125, %v5675_v22  ;;  %5852 = vadd.xlane.f32.xlu0 %v5851_v35  ;;  %v5672_v4 = vpop.xlane.xlu0 %5671  ;;  %v5794_v10 = vmul.f32 %v10789_v50, %v10789_v50 }
 0x7bc   : > { %v5731_v16 = vmul.f32 0.125, %v5672_v4  ;;  %v5793_v25 = vmul.f32 %v10793_v7, %v10793_v7 }
 0x7bd   : > { %v10801_v27 = vsub.f32 %v10625_v0, %v5732_v31  ;;  %v5860_v63 = vsel %vm5615_vm2, %v5794_v10, 0.0 }
 0x7be   : > { %v10805_v52 = vsub.f32 %v10628_v38, %v5731_v16  ;;  %v5681_v45 = vpop.xlane.xlu1 %5680  ;;  %5861 = vadd.xlane.f32.xlu1 %v5860_v63  ;;  %v5857_v53 = vsel %vm5615_vm2, %v5793_v25, 0.0 }
 0x7bf   : > { %v5734_v56 = vmul.f32 0.125, %v5681_v45  ;;  %5858 = vadd.xlane.f32.xlu0 %v5857_v53  ;;  %v5678_v47 = vpop.xlane.xlu0 %5677  ;;  %v5796_v18 = vmul.f32 %v10801_v27, %v10801_v27 }
 0x7c0   : > { %v5733_v40 = vmul.f32 0.125, %v5678_v47  ;;  %v5795_v0 = vmul.f32 %v10805_v52, %v10805_v52 }
 0x7c1   : > { %v10813_v59 = vsub.f32 %v10635_v5, %v5734_v56  ;;  %v5866_v38 = vsel %vm5615_vm2, %v5796_v18, 0.0 }
 0x7c2   : > { %v10817_v41 = vsub.f32 %v10638_v43, %v5733_v40  ;;  %v5687_v9 = vpop.xlane.xlu1 %5686  ;;  %5867 = vadd.xlane.f32.xlu1 %v5866_v38  ;;  %v5863_v33 = vsel %vm5615_vm2, %v5795_v0, 0.0 }
 0x7c3   : > { %v5736_v11 = vmul.f32 0.125, %v5687_v9  ;;  %5864 = vadd.xlane.f32.xlu0 %v5863_v33  ;;  %v5684_v12 = vpop.xlane.xlu0 %5683  ;;  %v5798_v19 = vmul.f32 %v10813_v59, %v10813_v59 }
 0x7c4   : > { %v5735_v20 = vmul.f32 0.125, %v5684_v12  ;;  %v5797_v5 = vmul.f32 %v10817_v41, %v10817_v41 }
 0x7c5   : > { %v10825_v2 = vsub.f32 %v10645_v51, %v5736_v11  ;;  %v5872_v43 = vsel %vm5615_vm2, %v5798_v19, 0.0 }
 0x7c6   : > { %v10829_v28 = vsub.f32 %v10648_v1, %v5735_v20  ;;  %v5693_v36 = vpop.xlane.xlu1 %5692  ;;  %5873 = vadd.xlane.f32.xlu1 %v5872_v43  ;;  %v5869_v21 = vsel %vm5615_vm2, %v5797_v5, 0.0 }
 0x7c7   : > { %v5738_v24 = vmul.f32 0.125, %v5693_v36  ;;  %5870 = vadd.xlane.f32.xlu0 %v5869_v21  ;;  %v5690_v23 = vpop.xlane.xlu0 %5689  ;;  %v5800_v46 = vmul.f32 %v10825_v2, %v10825_v2 }
 0x7c8   : > { %v5737_v30 = vmul.f32 0.125, %v5690_v23  ;;  %v5799_v51 = vmul.f32 %v10829_v28, %v10829_v28 }
 0x7c9   : > { %v10837_v22 = vsub.f32 %v10655_v17, %v5738_v24  ;;  %v5878_v1 = vsel %vm5615_vm2, %v5800_v46, 0.0 }
 0x7ca   : > { %v10841_v35 = vsub.f32 %v10658_v55, %v5737_v30  ;;  %v5699_v31 = vpop.xlane.xlu1 %5698  ;;  %5879 = vadd.xlane.f32.xlu1 %v5878_v1  ;;  %v5875_v4 = vsel %vm5615_vm2, %v5799_v51, 0.0 }
 0x7cb   : > { %v5740_v10 = vmul.f32 0.125, %v5699_v31  ;;  %5876 = vadd.xlane.f32.xlu0 %v5875_v4  ;;  %v5696_v16 = vpop.xlane.xlu0 %5695  ;;  %v5802_v25 = vmul.f32 %v10837_v22, %v10837_v22 }
 0x7cc   : > { %v5739_v63 = vmul.f32 0.125, %v5696_v16  ;;  %v5801_v17 = vmul.f32 %v10841_v35, %v10841_v35 }
 0x7cd   : > { %v10849_v45 = vsub.f32 %v10665_v57, %v5740_v10  ;;  %v5884_v55 = vsel %vm5615_vm2, %v5802_v25, 0.0 }
 0x7ce   : > { %v10853_v53 = vsub.f32 %v10668_v54, %v5739_v63  ;;  %v5705_v56 = vpop.xlane.xlu1 %5704  ;;  %5885 = vadd.xlane.f32.xlu1 %v5884_v55  ;;  %v5881_v47 = vsel %vm5615_vm2, %v5801_v17, 0.0 }
 0x7cf   : > { %v5742_v18 = vmul.f32 0.125, %v5705_v56  ;;  %5882 = vadd.xlane.f32.xlu0 %v5881_v47  ;;  %v5702_v40 = vpop.xlane.xlu0 %5701  ;;  %v5804_v0 = vmul.f32 %v10849_v45, %v10849_v45 }
 0x7d0   : > { %v5741_v38 = vmul.f32 0.125, %v5702_v40  ;;  %v5803_v57 = vmul.f32 %v10853_v53, %v10853_v53 }
 0x7d1   : > { %v10861_v9 = vsub.f32 %v10675_v6, %v5742_v18  ;;  %v5890_v54 = vsel %vm5615_vm2, %v5804_v0, 0.0 }
 0x7d2   : > { %v10865_v33 = vsub.f32 %v10678_v13, %v5741_v38  ;;  %5891 = vadd.xlane.f32.xlu1 %v5890_v54  ;;  %v5711_v11 = vpop.xlane.xlu1 %5710  ;;  %v5887_v12 = vsel %vm5615_vm2, %v5803_v57, 0.0 }
 0x7d3   : > { %v5744_v19 = vmul.f32 0.125, %v5711_v11  ;;  %5888 = vadd.xlane.f32.xlu0 %v5887_v12  ;;  %v5708_v20 = vpop.xlane.xlu0 %5707  ;;  %v5806_v5 = vmul.f32 %v10861_v9, %v10861_v9 }
 0x7d4   : > { %v5743_v43 = vmul.f32 0.125, %v5708_v20  ;;  %v5805_v6 = vmul.f32 %v10865_v33, %v10865_v33 }
 0x7d5   : > { %v10873_v36 = vsub.f32 %v10685_v26, %v5744_v19  ;;  %v5896_v13 = vsel %vm5615_vm2, %v5806_v5, 0.0  ;;  %v10889_v5 = vld [vmem:[%s11069_s4] ss:$0 sm:$0xff] }
 0x7d6   : > { %v10877_v21 = vsub.f32 %v10688_v8, %v5743_v43  ;;  %5897 = vadd.xlane.f32.xlu1 %v5896_v13  ;;  %v5893_v24 = vsel %vm5615_vm2, %v5805_v6, 0.0 }
 0x7d7   : > { %5894 = vadd.xlane.f32.xlu0 %v5893_v24  ;;  %v5808_v23 = vmul.f32 %v10873_v36, %v10873_v36 }
 0x7d8   : > { %v5807_v46 = vmul.f32 %v10877_v21, %v10877_v21 }
 0x7d9   : > { %v5902_v30 = vsel %vm5615_vm2, %v5808_v23, 0.0 }
 0x7da   : > { %5903 = vadd.xlane.f32.xlu1 %v5902_v30  ;;  %v5899_v26 = vsel %vm5615_vm2, %v5807_v46, 0.0  ;;  %v10895_v46 = vld [vmem:[%s11070_s5] ss:$0 sm:$0xff] }
 0x7db   : > { %5900 = vadd.xlane.f32.xlu0 %v5899_v26 }
 0x82b   : > { %v5814_v51 = vpop.xlane.xlu1 %5813 }
 0x82c   : > { %v5906_v1 = vmul.f32 0.125, %v5814_v51  ;;  %v5811_v8 = vpop.xlane.xlu0 %5810 }
 0x82d   : > { %v5905_v31 = vmul.f32 0.125, %v5811_v8 }
 0x82e   : > { %v5938_v4 = vadd.f32 1e-05, %v5906_v1 }
 0x82f   : > { %v5937_v10 = vadd.f32 1e-05, %v5905_v31  ;;  %v5820_v16 = vpop.xlane.xlu1 %5819 }
 0x830   : > { %8181 = vrsqrt.f32 %v5938_v4  ;;  %v5908_v25 = vmul.f32 0.125, %v5820_v16  ;;  %v5817_v63 = vpop.xlane.xlu0 %5816 }
 0x831   : > { %8183 = vrsqrt.f32 %v5937_v10  ;;  %v5907_v17 = vmul.f32 0.125, %v5817_v63 }
 0x832   : > { %v5940_v55 = vadd.f32 1e-05, %v5908_v25 }
 0x833   : > { %v5939_v56 = vadd.f32 1e-05, %v5907_v17  ;;  %v5826_v47 = vpop.xlane.xlu1 %5825 }
 0x834   : > { %8185 = vrsqrt.f32 %v5940_v55  ;;  %v5910_v18 = vmul.f32 0.125, %v5826_v47  ;;  %v5823_v40 = vpop.xlane.xlu0 %5822 }
 0x835   : > { %8187 = vrsqrt.f32 %v5939_v56  ;;  %v5909_v0 = vmul.f32 0.125, %v5823_v40 }
 0x836   : > { %v5942_v38 = vadd.f32 1e-05, %v5910_v18 }
 0x837   : > { %v5941_v57 = vadd.f32 1e-05, %v5909_v0  ;;  %v5832_v54 = vpop.xlane.xlu1 %5831 }
 0x838   : > { %8189 = vrsqrt.f32 %v5942_v38  ;;  %v5912_v11 = vmul.f32 0.125, %v5832_v54  ;;  %v5829_v12 = vpop.xlane.xlu0 %5828 }
 0x839   : > { %8191 = vrsqrt.f32 %v5941_v57  ;;  %v5911_v19 = vmul.f32 0.125, %v5829_v12 }
 0x83a   : > { %v8182_v20 = vpop.eup %8181  ;;  %v5944_v43 = vadd.f32 1e-05, %v5912_v11 }
 0x83b   : > { %v8184_v6 = vpop.eup %8183  ;;  %v6002_v13 = vmul.f32 %v8182_v20, %v10695_v42  ;;  %v5943_v24 = vadd.f32 1e-05, %v5911_v19  ;;  %v5838_v23 = vpop.xlane.xlu1 %5837 }
 0x83c   : > { %v6001_v30 = vmul.f32 %v8184_v6, %v10698_v60  ;;  %8193 = vrsqrt.f32 %v5944_v43  ;;  %v5914_v26 = vmul.f32 0.125, %v5838_v23  ;;  %v5835_v51 = vpop.xlane.xlu0 %5834 }
 0x83d   : > { %v6041_v1 = vmul.f32 %v10889_v5, %v6002_v13  ;;  %8195 = vrsqrt.f32 %v5943_v24  ;;  %v5913_v8 = vmul.f32 0.125, %v5835_v51 }
 0x83e   : > { %v8186_v31 = vpop.eup %8185  ;;  %v6040_v42 = vmul.f32 %v10889_v5, %v6001_v30  ;;  %v5946_v4 = vadd.f32 1e-05, %v5914_v26 }
 0x83f   : > { %v8188_v10 = vpop.eup %8187  ;;  %v6080_v60 = vadd.f32 %v10895_v46, %v6041_v1  ;;  %v6004_v16 = vmul.f32 %v8186_v31, %v10705_v62  ;;  %v5945_v25 = vadd.f32 1e-05, %v5913_v8  ;;  %v5844_v63 = vpop.xlane.xlu1 %5843 }
 0x840   : > { %v6079_v17 = vadd.f32 %v10895_v46, %v6040_v42  ;;  %v6003_v55 = vmul.f32 %v8188_v10, %v10709_v3  ;;  %8197 = vrsqrt.f32 %v5946_v4  ;;  %v5916_v56 = vmul.f32 0.125, %v5844_v63  ;;  %v5841_v47 = vpop.xlane.xlu0 %5840 }
 0x841   : > { %6112 = vst.msk [vmem:[%s10903_s16 + $0x8] sm:$0xff] %vm5615_vm2, %v6080_v60  ;;  %v6043_v18 = vmul.f32 %v10889_v5, %v6004_v16  ;;  %8199 = vrsqrt.f32 %v5945_v25  ;;  %v5915_v40 = vmul.f32 0.125, %v5841_v47 }
 0x842   : > { %v8190_v0 = vpop.eup %8189  ;;  %6111 = vst.msk [vmem:[%s10903_s16] sm:$0xff] %vm5615_vm2, %v6079_v17  ;;  %v6042_v62 = vmul.f32 %v10889_v5, %v6003_v55  ;;  %v5948_v38 = vadd.f32 1e-05, %v5916_v56 }
 0x843   : > { %v8192_v57 = vpop.eup %8191  ;;  %v6082_v3 = vadd.f32 %v10895_v46, %v6043_v18  ;;  %v6006_v54 = vmul.f32 %v8190_v0, %v10717_v58  ;;  %v5947_v11 = vadd.f32 1e-05, %v5915_v40  ;;  %v5850_v12 = vpop.xlane.xlu1 %5849 }
 0x844   : > { %v6081_v19 = vadd.f32 %v10895_v46, %v6042_v62  ;;  %v6005_v20 = vmul.f32 %v8192_v57, %v10721_v14  ;;  %8201 = vrsqrt.f32 %v5948_v38  ;;  %v5918_v43 = vmul.f32 0.125, %v5850_v12  ;;  %v5847_v6 = vpop.xlane.xlu0 %5846 }
 0x845   : > { %6114 = vst.msk [vmem:[%s10903_s16 + $0x18] sm:$0xff] %vm5615_vm2, %v6082_v3  ;;  %v6045_v13 = vmul.f32 %v10889_v5, %v6006_v54  ;;  %8203 = vrsqrt.f32 %v5947_v11  ;;  %v5917_v24 = vmul.f32 0.125, %v5847_v6 }
 0x846   : > { %v8194_v23 = vpop.eup %8193  ;;  %6113 = vst.msk [vmem:[%s10903_s16 + $0x10] sm:$0xff] %vm5615_vm2, %v6081_v19  ;;  %v6044_v58 = vmul.f32 %v10889_v5, %v6005_v20  ;;  %v5950_v30 = vadd.f32 1e-05, %v5918_v43 }
 0x847   : > { %v8196_v26 = vpop.eup %8195  ;;  %v6084_v14 = vadd.f32 %v10895_v46, %v6045_v13  ;;  %v6008_v51 = vmul.f32 %v8194_v23, %v10729_v61  ;;  %v5949_v1 = vadd.f32 1e-05, %v5917_v24  ;;  %v5856_v8 = vpop.xlane.xlu1 %5855 }
 0x848   : > { %v6083_v31 = vadd.f32 %v10895_v46, %v6044_v58  ;;  %v6007_v42 = vmul.f32 %v8196_v26, %v10733_v29  ;;  %8205 = vrsqrt.f32 %v5950_v30  ;;  %v5920_v4 = vmul.f32 0.125, %v5856_v8  ;;  %v5853_v10 = vpop.xlane.xlu0 %5852 }
 0x849   : > { %6116 = vst.msk [vmem:[%s10903_s16 + $0x28] sm:$0xff] %vm5615_vm2, %v6084_v14  ;;  %v6047_v60 = vmul.f32 %v10889_v5, %v6008_v51  ;;  %8207 = vrsqrt.f32 %v5949_v1  ;;  %v5919_v16 = vmul.f32 0.125, %v5853_v10 }
 0x84a   : > { %v8198_v25 = vpop.eup %8197  ;;  %6115 = vst.msk [vmem:[%s10903_s16 + $0x20] sm:$0xff] %vm5615_vm2, %v6083_v31  ;;  %v6046_v61 = vmul.f32 %v10889_v5, %v6007_v42  ;;  %v5952_v63 = vadd.f32 1e-05, %v5920_v4 }
 0x84b   : > { %v8200_v17 = vpop.eup %8199  ;;  %v6086_v29 = vadd.f32 %v10895_v46, %v6047_v60  ;;  %v6010_v55 = vmul.f32 %v8198_v25, %v10741_v37  ;;  %v5951_v56 = vadd.f32 1e-05, %v5919_v16  ;;  %v5862_v47 = vpop.xlane.xlu1 %5861 }
 0x84c   : > { %v6085_v18 = vadd.f32 %v10895_v46, %v6046_v61  ;;  %v6009_v40 = vmul.f32 %v8200_v17, %v10745_v39  ;;  %8209 = vrsqrt.f32 %v5952_v63  ;;  %v5922_v0 = vmul.f32 0.125, %v5862_v47  ;;  %v5859_v62 = vpop.xlane.xlu0 %5858 }
 0x84d   : > { %6118 = vst.msk [vmem:[%s10903_s16 + $0x38] sm:$0xff] %vm5615_vm2, %v6086_v29  ;;  %v6049_v38 = vmul.f32 %v10889_v5, %v6010_v55  ;;  %8211 = vrsqrt.f32 %v5951_v56  ;;  %v5921_v57 = vmul.f32 0.125, %v5859_v62 }
 0x84e   : > { %v8202_v3 = vpop.eup %8201  ;;  %6117 = vst.msk [vmem:[%s10903_s16 + $0x30] sm:$0xff] %vm5615_vm2, %v6085_v18  ;;  %v6048_v37 = vmul.f32 %v10889_v5, %v6009_v40  ;;  %v5954_v54 = vadd.f32 1e-05, %v5922_v0 }
 0x84f   : > { %v8204_v11 = vpop.eup %8203  ;;  %v6088_v39 = vadd.f32 %v10895_v46, %v6049_v38  ;;  %v6012_v12 = vmul.f32 %v8202_v3, %v10753_v49  ;;  %v5953_v19 = vadd.f32 1e-05, %v5921_v57  ;;  %v5868_v20 = vpop.xlane.xlu1 %5867 }
 0x850   : > { %v6087_v43 = vadd.f32 %v10895_v46, %v6048_v37  ;;  %v6011_v6 = vmul.f32 %v8204_v11, %v10757_v32  ;;  %8213 = vrsqrt.f32 %v5954_v54  ;;  %v5924_v13 = vmul.f32 0.125, %v5868_v20  ;;  %v5865_v24 = vpop.xlane.xlu0 %5864 }
 0x851   : > { %6120 = vst.msk [vmem:[%s10903_s16 + $0x48] sm:$0xff] %vm5615_vm2, %v6088_v39  ;;  %v6051_v23 = vmul.f32 %v10889_v5, %v6012_v12  ;;  %8215 = vrsqrt.f32 %v5953_v19  ;;  %v5923_v58 = vmul.f32 0.125, %v5865_v24 }
 0x852   : > { %v8206_v30 = vpop.eup %8205  ;;  %6119 = vst.msk [vmem:[%s10903_s16 + $0x40] sm:$0xff] %vm5615_vm2, %v6087_v43  ;;  %v6050_v49 = vmul.f32 %v10889_v5, %v6011_v6  ;;  %v5956_v26 = vadd.f32 1e-05, %v5924_v13 }
 0x853   : > { %v8208_v14 = vpop.eup %8207  ;;  %v6090_v32 = vadd.f32 %v10895_v46, %v6051_v23  ;;  %v6014_v51 = vmul.f32 %v8206_v30, %v10765_v48  ;;  %v5955_v1 = vadd.f32 1e-05, %v5923_v58  ;;  %v5874_v8 = vpop.xlane.xlu1 %5873 }
 0x854   : > { %v6089_v31 = vadd.f32 %v10895_v46, %v6050_v49  ;;  %v6013_v42 = vmul.f32 %v8208_v14, %v10769_v34  ;;  %8217 = vrsqrt.f32 %v5956_v26  ;;  %v5926_v4 = vmul.f32 0.125, %v5874_v8  ;;  %v5871_v10 = vpop.xlane.xlu0 %5870 }
 0x855   : > { %6122 = vst.msk [vmem:[%s10903_s16 + $0x58] sm:$0xff] %vm5615_vm2, %v6090_v32  ;;  %v6053_v60 = vmul.f32 %v10889_v5, %v6014_v51  ;;  %8219 = vrsqrt.f32 %v5955_v1  ;;  %v5925_v16 = vmul.f32 0.125, %v5871_v10 }
 0x856   : > { %v8210_v25 = vpop.eup %8209  ;;  %6121 = vst.msk [vmem:[%s10903_s16 + $0x50] sm:$0xff] %vm5615_vm2, %v6089_v31  ;;  %v6052_v48 = vmul.f32 %v10889_v5, %v6013_v42  ;;  %v5958_v61 = vadd.f32 1e-05, %v5926_v4 }
 0x857   : > { %v8212_v63 = vpop.eup %8211  ;;  %v6092_v34 = vadd.f32 %v10895_v46, %v6053_v60  ;;  %v6016_v17 = vmul.f32 %v8210_v25, %v10777_v44  ;;  %v5957_v29 = vadd.f32 1e-05, %v5925_v16  ;;  %v5880_v55 = vpop.xlane.xlu1 %5879 }
 0x858   : > { %v6091_v56 = vadd.f32 %v10895_v46, %v6052_v48  ;;  %v6015_v47 = vmul.f32 %v8212_v63, %v10781_v15  ;;  %8221 = vrsqrt.f32 %v5958_v61  ;;  %v5928_v18 = vmul.f32 0.125, %v5880_v55  ;;  %v5877_v40 = vpop.xlane.xlu0 %5876 }
 0x859   : > { %6124 = vst.msk [vmem:[%s10903_s16 + $0x68] sm:$0xff] %vm5615_vm2, %v6092_v34  ;;  %v6055_v0 = vmul.f32 %v10889_v5, %v6016_v17  ;;  %8223 = vrsqrt.f32 %v5957_v29  ;;  %v5927_v62 = vmul.f32 0.125, %v5877_v40 }
 0x85a   : > { %v8214_v38 = vpop.eup %8213  ;;  %6123 = vst.msk [vmem:[%s10903_s16 + $0x60] sm:$0xff] %vm5615_vm2, %v6091_v56  ;;  %v6054_v44 = vmul.f32 %v10889_v5, %v6015_v47  ;;  %v5960_v57 = vadd.f32 1e-05, %v5928_v18 }
 0x85b   : > { %v8216_v3 = vpop.eup %8215  ;;  %v6094_v15 = vadd.f32 %v10895_v46, %v6055_v0  ;;  %v6018_v37 = vmul.f32 %v8214_v38, %v10789_v50  ;;  %v5959_v54 = vadd.f32 1e-05, %v5927_v62  ;;  %v5886_v11 = vpop.xlane.xlu1 %5885 }
 0x85c   : > { %v6093_v39 = vadd.f32 %v10895_v46, %v6054_v44  ;;  %v6017_v12 = vmul.f32 %v8216_v3, %v10793_v7  ;;  %8225 = vrsqrt.f32 %v5960_v57  ;;  %v5930_v19 = vmul.f32 0.125, %v5886_v11  ;;  %v5883_v20 = vpop.xlane.xlu0 %5882 }
 0x85d   : > { %6126 = vst.msk [vmem:[%s10903_s16 + $0x78] sm:$0xff] %vm5615_vm2, %v6094_v15  ;;  %v6057_v43 = vmul.f32 %v10889_v5, %v6018_v37  ;;  %8227 = vrsqrt.f32 %v5959_v54  ;;  %v5929_v6 = vmul.f32 0.125, %v5883_v20 }
 0x85e   : > { %v8218_v13 = vpop.eup %8217  ;;  %6125 = vst.msk [vmem:[%s10903_s16 + $0x70] sm:$0xff] %vm5615_vm2, %v6093_v39  ;;  %v6056_v50 = vmul.f32 %v10889_v5, %v6017_v12  ;;  %v5962_v24 = vadd.f32 1e-05, %v5930_v19 }
 0x85f   : > { %v8220_v23 = vpop.eup %8219  ;;  %v6096_v7 = vadd.f32 %v10895_v46, %v6057_v43  ;;  %v6020_v58 = vmul.f32 %v8218_v13, %v10801_v27  ;;  %v5961_v30 = vadd.f32 1e-05, %v5929_v6  ;;  %v5892_v49 = vpop.xlane.xlu1 %5891 }
 0x860   : > { %v6095_v26 = vadd.f32 %v10895_v46, %v6056_v50  ;;  %v6019_v14 = vmul.f32 %v8220_v23, %v10805_v52  ;;  %8229 = vrsqrt.f32 %v5962_v24  ;;  %v5932_v32 = vmul.f32 0.125, %v5892_v49  ;;  %v5889_v51 = vpop.xlane.xlu0 %5888 }
 0x861   : > { %6128 = vst.msk [vmem:[%s10903_s16 + $0x88] sm:$0xff] %vm5615_vm2, %v6096_v7  ;;  %v6059_v1 = vmul.f32 %v10889_v5, %v6020_v58  ;;  %8231 = vrsqrt.f32 %v5961_v30  ;;  %v5931_v8 = vmul.f32 0.125, %v5889_v51 }
 0x862   : > { %v8222_v31 = vpop.eup %8221  ;;  %6127 = vst.msk [vmem:[%s10903_s16 + $0x80] sm:$0xff] %vm5615_vm2, %v6095_v26  ;;  %v6058_v27 = vmul.f32 %v10889_v5, %v6019_v14  ;;  %v5964_v42 = vadd.f32 1e-05, %v5932_v32 }
 0x863   : > { %v8224_v4 = vpop.eup %8223  ;;  %v6098_v52 = vadd.f32 %v10895_v46, %v6059_v1  ;;  %v6022_v10 = vmul.f32 %v8222_v31, %v10813_v59  ;;  %v5963_v60 = vadd.f32 1e-05, %v5931_v8  ;;  %v5898_v16 = vpop.xlane.xlu1 %5897 }
 0x864   : > { %v6097_v25 = vadd.f32 %v10895_v46, %v6058_v27  ;;  %v6021_v48 = vmul.f32 %v8224_v4, %v10817_v41  ;;  %8233 = vrsqrt.f32 %v5964_v42  ;;  %v5934_v61 = vmul.f32 0.125, %v5898_v16  ;;  %v5895_v63 = vpop.xlane.xlu0 %5894 }
 0x865   : > { %6130 = vst.msk [vmem:[%s10903_s16 + $0x98] sm:$0xff] %vm5615_vm2, %v6098_v52  ;;  %v6061_v34 = vmul.f32 %v10889_v5, %v6022_v10  ;;  %8235 = vrsqrt.f32 %v5963_v60  ;;  %v5933_v17 = vmul.f32 0.125, %v5895_v63 }
 0x866   : > { %v8226_v29 = vpop.eup %8225  ;;  %6129 = vst.msk [vmem:[%s10903_s16 + $0x90] sm:$0xff] %vm5615_vm2, %v6097_v25  ;;  %v6060_v59 = vmul.f32 %v10889_v5, %v6021_v48  ;;  %v5966_v55 = vadd.f32 1e-05, %v5934_v61 }
 0x867   : > { %v8228_v56 = vpop.eup %8227  ;;  %v6100_v41 = vadd.f32 %v10895_v46, %v6061_v34  ;;  %v6024_v47 = vmul.f32 %v8226_v29, %v10825_v2  ;;  %v5965_v18 = vadd.f32 1e-05, %v5933_v17  ;;  %v5904_v40 = vpop.xlane.xlu1 %5903 }
 0x868   : > { %v6099_v0 = vadd.f32 %v10895_v46, %v6060_v59  ;;  %v6023_v62 = vmul.f32 %v8228_v56, %v10829_v28  ;;  %8237 = vrsqrt.f32 %v5966_v55  ;;  %v5936_v38 = vmul.f32 0.125, %v5904_v40  ;;  %v5901_v44 = vpop.xlane.xlu0 %5900 }
 0x869   : > { %6132 = vst.msk [vmem:[%s10903_s16 + $0xa8] sm:$0xff] %vm5615_vm2, %v6100_v41  ;;  %v6063_v57 = vmul.f32 %v10889_v5, %v6024_v47  ;;  %8239 = vrsqrt.f32 %v5965_v18  ;;  %v5935_v3 = vmul.f32 0.125, %v5901_v44 }
 0x86a   : > { %v8230_v15 = vpop.eup %8229  ;;  %6131 = vst.msk [vmem:[%s10903_s16 + $0xa0] sm:$0xff] %vm5615_vm2, %v6099_v0  ;;  %v6062_v2 = vmul.f32 %v10889_v5, %v6023_v62  ;;  %v5968_v37 = vadd.f32 1e-05, %v5936_v38 }
 0x86b   : > { %v8232_v54 = vpop.eup %8231  ;;  %v6102_v28 = vadd.f32 %v10895_v46, %v6063_v57  ;;  %v6026_v11 = vmul.f32 %v8230_v15, %v10837_v22  ;;  %v5967_v39 = vadd.f32 1e-05, %v5935_v3 }
 0x86c   : > { %v6101_v12 = vadd.f32 %v10895_v46, %v6062_v2  ;;  %v6025_v19 = vmul.f32 %v8232_v54, %v10841_v35  ;;  %8241 = vrsqrt.f32 %v5968_v37 }
 0x86d   : > { %6134 = vst.msk [vmem:[%s10903_s16 + $0xb8] sm:$0xff] %vm5615_vm2, %v6102_v28  ;;  %v6065_v20 = vmul.f32 %v10889_v5, %v6026_v11  ;;  %8243 = vrsqrt.f32 %v5967_v39 }
 0x86e   : > { %v8234_v43 = vpop.eup %8233  ;;  %6133 = vst.msk [vmem:[%s10903_s16 + $0xb0] sm:$0xff] %vm5615_vm2, %v6101_v12  ;;  %v6064_v6 = vmul.f32 %v10889_v5, %v6025_v19 }
 0x86f   : > { %v8236_v22 = vpop.eup %8235  ;;  %v6104_v13 = vadd.f32 %v10895_v46, %v6065_v20  ;;  %v6028_v50 = vmul.f32 %v8234_v43, %v10849_v45 }
 0x870   : > { %v6103_v35 = vadd.f32 %v10895_v46, %v6064_v6  ;;  %v6027_v24 = vmul.f32 %v8236_v22, %v10853_v53 }
 0x871   : > { %6136 = vst.msk [vmem:[%s10903_s16 + $0xc8] sm:$0xff] %vm5615_vm2, %v6104_v13  ;;  %v6067_v23 = vmul.f32 %v10889_v5, %v6028_v50 }
 0x872   : > { %v8238_v7 = vpop.eup %8237  ;;  %6135 = vst.msk [vmem:[%s10903_s16 + $0xc0] sm:$0xff] %vm5615_vm2, %v6103_v35  ;;  %v6066_v58 = vmul.f32 %v10889_v5, %v6027_v24 }
 0x873   : > { %v8240_v30 = vpop.eup %8239  ;;  %v6106_v49 = vadd.f32 %v10895_v46, %v6067_v23  ;;  %v6030_v45 = vmul.f32 %v8238_v7, %v10861_v9 }
 0x874   : > { %v6105_v26 = vadd.f32 %v10895_v46, %v6066_v58  ;;  %v6029_v53 = vmul.f32 %v8240_v30, %v10865_v33 }
 0x875   : > { %6138 = vst.msk [vmem:[%s10903_s16 + $0xd8] sm:$0xff] %vm5615_vm2, %v6106_v49  ;;  %v6069_v14 = vmul.f32 %v10889_v5, %v6030_v45 }
 0x876   : > { %v8242_v32 = vpop.eup %8241  ;;  %6137 = vst.msk [vmem:[%s10903_s16 + $0xd0] sm:$0xff] %vm5615_vm2, %v6105_v26  ;;  %v6068_v51 = vmul.f32 %v10889_v5, %v6029_v53 }
 0x877   : > { %v8244_v1 = vpop.eup %8243  ;;  %v6108_v8 = vadd.f32 %v10895_v46, %v6069_v14  ;;  %v6032_v9 = vmul.f32 %v8242_v32, %v10873_v36 }
 0x878   : > { %v6107_v31 = vadd.f32 %v10895_v46, %v6068_v51  ;;  %v6031_v33 = vmul.f32 %v8244_v1, %v10877_v21 }
 0x879   : > { %6140 = vst.msk [vmem:[%s10903_s16 + $0xe8] sm:$0xff] %vm5615_vm2, %v6108_v8  ;;  %v6071_v27 = vmul.f32 %v10889_v5, %v6032_v9 }
 0x87a   : > { %6139 = vst.msk [vmem:[%s10903_s16 + $0xe0] sm:$0xff] %vm5615_vm2, %v6107_v31  ;;  %v6070_v42 = vmul.f32 %v10889_v5, %v6031_v33 }
 0x87b   : > { %v6110_v4 = vadd.f32 %v10895_v46, %v6071_v27 }
 0x87c   : > { %v6109_v52 = vadd.f32 %v10895_v46, %v6070_v42 }
 0x87d   : > { %6142 = vst.msk [vmem:[%s10903_s16 + $0xf8] sm:$0xff] %vm5615_vm2, %v6110_v4 }
 0x87e   : > { %6141 = vst.msk [vmem:[%s10903_s16 + $0xf0] sm:$0xff] %vm5615_vm2, %v6109_v52 }
 0x87f PF: > { %s16_s21 = sadd.s32 1, %s8251_s21  }
 0x880   : > { %p13_p4 = scmp.ge.s32.totalorder %s16_s21, 4  }
 0x882   :  { %15 = sbr.rel (!%p13_p4) target bundleno = 1 (0x1), region = 77 }

</bundles_post_ra>
